<compile_context>
chip_gen: v7x
topology: tpu7x:2x2x1
jax: 0.10.0
libtpu: 0.0.40
codegen_flags: <defaults>
</compile_context>

<pallas_src>
import functools

import jax
import jax.numpy as jnp
from jax import lax
from jax.experimental import pallas as pl
from jax.experimental.pallas import tpu as pltpu


# ----------------------------- Pallas kernel --------------------------------

def infer_kernel(x_ref, idx_ref, w_ref, out_ref, r_state, oht_ref, *,
                 C, G, S, L, M, gamma):
    # x_ref:   (B, G)            f32  initial valuation vector
    # idx_ref: (C, 1, S*L*G)     i32  I rearranged so column q = (s*L + l)*G + g
    # w_ref:   (M, C)            f32  softmax(W, dim=1), in SMEM (scalar reads)
    # out_ref: (B, G)            f32  final R
    # r_state: (B, G)            f32  VMEM scratch, carries R across grid steps
    # oht_ref: (C, G, S*L*G)     bf16 VMEM scratch, per-clause wide gather matrices
    step = pl.program_id(0)
    inv_gamma = 1.0 / gamma          # hoisted: multiply instead of divide by gamma
    SL = S * L

    @pl.when(step == 0)
    def _init():
        # Build per-clause wide one-hot gather matrices directly in VMEM from the int32
        # index tensor: oht[c, j, (s*L+l)*G + g] = 1  iff  I[c, g, s, l] == j,
        # so that (R @ oht[c])[b, (s*L+l)*G + g] == R[b, I[c, g, s, l]].
        iota = lax.broadcasted_iota(jnp.int32, (G, G), 0)        # iota[j, g] = j (hoisted)
        for c in range(C):
            for sl in range(SL):
                idx_slice = idx_ref[c, :, sl * G:(sl + 1) * G]   # (1, G) int32
                eq = idx_slice == iota                           # (G, G) bool
                oht_ref[c, :, sl * G:(sl + 1) * G] = (
                    jnp.where(eq, 1.0, 0.0).astype(jnp.bfloat16))
        r_state[...] = x_ref[...]

    R = r_state[...]                                             # (B, G) f32
    Rb = R.astype(jnp.bfloat16)                                  # bf16 LHS for MXU gathers

    def _softor_norm(v):
        # softor tail: divide by the global max if it exceeds 1 (reciprocal + multiply).
        gmax = jnp.max(v, axis=(0, 1), keepdims=True)            # (1, 1)
        scale = jnp.where(gmax > 1.0,
                          pl.reciprocal(gmax, approx=True),
                          jnp.ones_like(gmax))
        return v * scale

    # ---- ClauseFunction per clause: one wide bf16 gather-matmul, then prod_L / softor_S
    Cs = []
    for c in range(C):
        wide = jnp.dot(Rb, oht_ref[c],
                       preferred_element_type=jnp.float32)       # (B, S*L*G) f32
        prods = []
        for s in range(S):
            p = wide[:, (s * L) * G:(s * L + 1) * G]             # (B, G), 128-aligned slice
            for l in range(1, L):
                p = p * wide[:, (s * L + l) * G:(s * L + l + 1) * G]
            prods.append(p)
        # stable gamma-logsumexp over the S candidate substitutions
        mx = prods[0]
        for s in range(1, S):
            mx = jnp.maximum(mx, prods[s])
        se = jnp.exp((prods[0] - mx) * inv_gamma)
        for s in range(1, S):
            se = se + jnp.exp((prods[s] - mx) * inv_gamma)
        Cs.append(_softor_norm(mx + gamma * jnp.log(se)))        # (B, G)

    # ---- r(R): H[m] = sum_c softmax(W)[m, c] * C[c];  softor over m --------------------
    Hs = []
    for mi in range(M):
        h = w_ref[mi, 0] * Cs[0]                                 # SMEM scalar * (B, G)
        for ci in range(1, C):
            h = h + w_ref[mi, ci] * Cs[ci]
        Hs.append(h)
    mH = Hs[0]
    for mi in range(1, M):
        mH = jnp.maximum(mH, Hs[mi])
    se = jnp.exp((Hs[0] - mH) * inv_gamma)
    for mi in range(1, M):
        se = se + jnp.exp((Hs[mi] - mH) * inv_gamma)
    rR = _softor_norm(mH + gamma * jnp.log(se))                  # (B, G)

    # ---- step merge: R_{t+1} = softor([R, r(R)], dim=1) --------------------------------
    mm = jnp.maximum(R, rR)
    se2 = jnp.exp((R - mm) * inv_gamma) + jnp.exp((rR - mm) * inv_gamma)
    R_new = _softor_norm(mm + gamma * jnp.log(se2))

    r_state[...] = R_new

    @pl.when(step == pl.num_programs(0) - 1)
    def _finalize():
        out_ref[...] = R_new


# ------------------------------ host wrapper ---------------------------------

def infer_forward(x, I, W, infer_step, gamma=0.01):
    """Pallas TPU implementation of InferModule.forward (I_bk=None)."""
    C, G, S, L = I.shape
    B = x.shape[0]
    M = W.shape[0]

    # softmax(W, dim=1): tiny (M, C) weight matrix, read as scalars from SMEM in-kernel.
    W_star = jax.nn.softmax(W.astype(jnp.float32), axis=1)
    # Rearrange I so the wide gather column index is q = (s*L + l)*G + g; only this small
    # int32 tensor crosses HBM (no Gx-inflated one-hot is ever materialized host-side).
    I_wide = jnp.transpose(I, (0, 2, 3, 1)).reshape(C, 1, S * L * G).astype(jnp.int32)

    kernel = functools.partial(infer_kernel, C=C, G=G, S=S, L=L, M=M, gamma=gamma)

    # NOTE: the arithmetic-efficiency lever is B (sublanes against the 128/256-wide MXU):
    # callers with multiple problems should stack them along B (up to ~128 rows).
    return pl.pallas_call(
        kernel,
        out_shape=jax.ShapeDtypeStruct((B, G), jnp.float32),
        grid=(infer_step,),
        in_specs=[
            pl.BlockSpec((B, G), lambda t: (0, 0)),
            pl.BlockSpec((C, 1, S * L * G), lambda t: (0, 0, 0)),
            pl.BlockSpec(memory_space=pltpu.MemorySpace.SMEM),
        ],
        out_specs=pl.BlockSpec((B, G), lambda t: (0, 0)),
        scratch_shapes=[
            pltpu.VMEM((B, G), jnp.float32),               # persistent R across steps
            pltpu.VMEM((C, G, S * L * G), jnp.bfloat16),   # wide gather matrices (bf16)
        ],
        compiler_params=pltpu.CompilerParams(
            dimension_semantics=("arbitrary",)),           # steps are sequential
    )(x.astype(jnp.float32), I_wide, W_star)


# ----------------------- pure-JAX reference (for checking) -------------------

def _softor_ref(xs, dim, gamma):
    if isinstance(xs, (list, tuple)):
        xs = jnp.stack(xs, axis=dim)
    lse = gamma * jax.scipy.special.logsumexp(xs / gamma, axis=dim)
    mx = jnp.max(lse)
    return jnp.where(mx > 1.0, lse / mx, lse)


def _clause_fn_ref(x, I_i, gamma):
    gathered = x[:, I_i]                    # (B, G, S, L): x[b, I_i[g, s, l]]
    prod = jnp.prod(gathered, axis=3)       # (B, G, S)
    return _softor_ref(prod, dim=2, gamma=gamma)


def _forward_ref(x, I, W, infer_step, gamma):
    C = I.shape[0]
    W_star = jax.nn.softmax(W, axis=1)      # (m, C)
    R = x
    for _ in range(infer_step):
        Cs = jnp.stack([_clause_fn_ref(R, I[i], gamma) for i in range(C)], 0)  # (C,B,G)
        H = jnp.einsum('mc,cbg->mbg', W_star, Cs)                              # (m,B,G)
        rR = _softor_ref(H, dim=0, gamma=gamma)
        R = _softor_ref([R, rR], dim=1, gamma=gamma)
    return R


# ---------------------------------- main --------------------------------------

if __name__ == "__main__":
    # Small, TPU-friendly sizes: C clauses, G ground atoms (lane dim, multiple of 128),
    # S substitutions, L body length, B batch (sublane dim).
    B, C, G, S, L = 8, 2, 128, 4, 3
    infer_step, gamma, m = 3, 0.01, 2
    assert m == C, "non-train InferModule requires m == C (W = diag(100) is C x C)"

    key = jax.random.PRNGKey(0)
    k1, k2 = jax.random.split(key)
    x = jax.random.uniform(k1, (B, G), dtype=jnp.float32)              # valuations in [0, 1]
    I = jax.random.randint(k2, (C, G, S, L), 0, G, dtype=jnp.int32)    # index tensor
    W = 100.0 * jnp.eye(C, dtype=jnp.float32)                          # init_identity_weights

    out = infer_forward(x, I, W, infer_step, gamma=gamma)
    out = jax.block_until_ready(out)

    ref = _forward_ref(x, I, W, infer_step, gamma)
    assert out.shape == (B, G) and out.dtype == jnp.float32
    # bf16 gather path (one-hot is exact in bf16; only R's <=2^-9 relative rounding
    # enters) + approx reciprocal => compare against the f32 reference with a slightly
    # relaxed tolerance.
    assert jnp.allclose(out, ref, atol=2e-2, rtol=2e-2), "mismatch vs pure-JAX reference"

    print("KERNEL_OK")
</pallas_src>

<mosaic_0001>
module attributes {stable_mosaic.version = 11 : i64} {
  func.func @infer_kernel(%arg0: i32, %arg1: memref<8x128xf32, #tpu.memory_space<vmem>>, %arg2: memref<2x1x1536xi32, #tpu.memory_space<vmem>>, %arg3: memref<2x2xf32, #tpu.memory_space<smem>>, %arg4: memref<8x128xf32, #tpu.memory_space<vmem>>, %arg5: memref<8x128xf32, #tpu.memory_space<vmem>>, %arg6: memref<2x128x1536xbf16, #tpu.memory_space<vmem>>) attributes {dimension_semantics = [#tpu.dimension_semantics<arbitrary>], iteration_bounds = array<i64: 3>, scalar_prefetch = 0 : i64, scratch_operands = 2 : i64, tpu.core_type = #tpu.core_type<tc>, window_params = [{pipeline_mode = #tpu.pipeline_mode<synchronous>, transform_indices = @transform_0, window_bounds = array<i64: 8, 128>}, {pipeline_mode = #tpu.pipeline_mode<synchronous>, transform_indices = @transform_1, window_bounds = array<i64: 2, 1, 1536>}, {transform_indices = @transform_2, window_bounds = array<i64: 2, 2>}, {pipeline_mode = #tpu.pipeline_mode<synchronous>, transform_indices = @transform_3, window_bounds = array<i64: 8, 128>}]} {
    %c0_i32 = arith.constant 0 : i32
    %0 = arith.cmpi eq, %arg0, %c0_i32 : i32
    %1 = arith.extui %0 : i1 to i32
    %c0_i32_0 = arith.constant 0 : i32
    %2 = arith.cmpi ne, %1, %c0_i32_0 : i32
    scf.if %2 {
      %197 = tpu.iota {dimensions = array<i32: 0>} : vector<128x128xi32>
      %c0_47 = arith.constant 0 : index
      %c0_48 = arith.constant 0 : index
      %c0_49 = arith.constant 0 : index
      %198 = vector.load %arg2[%c0_47, %c0_48, %c0_49] : memref<2x1x1536xi32, #tpu.memory_space<vmem>>, vector<1x1x128xi32>
      %199 = vector.shape_cast %198 : vector<1x1x128xi32> to vector<1x128xi32>
      %200 = vector.broadcast %199 : vector<1x128xi32> to vector<128x128xi32>
      %201 = arith.cmpi eq, %200, %197 : vector<128x128xi32>
      %cst_50 = arith.constant 1.000000e+00 : f32
      %cst_51 = arith.constant 0.000000e+00 : f32
      %202 = vector.broadcast %cst_50 : f32 to vector<128x128xf32>
      %203 = vector.broadcast %cst_51 : f32 to vector<128x128xf32>
      %204 = arith.select %201, %202, %203 : vector<128x128xi1>, vector<128x128xf32>
      %205 = arith.truncf %204 : vector<128x128xf32> to vector<128x128xbf16>
      %c0_52 = arith.constant 0 : index
      %c0_53 = arith.constant 0 : index
      %c0_54 = arith.constant 0 : index
      %206 = vector.load %arg6[%c0_52, %c0_53, %c0_54] : memref<2x128x1536xbf16, #tpu.memory_space<vmem>>, vector<1x128x128xbf16>
      %207 = vector.shape_cast %206 : vector<1x128x128xbf16> to vector<128x128xbf16>
      %208 = vector.shape_cast %205 : vector<128x128xbf16> to vector<1x128x128xbf16>
      tpu.vector_store %arg6[%c0_52, %c0_53, %c0_54], %208 {strides = array<i32>} : memref<2x128x1536xbf16, #tpu.memory_space<vmem>>, vector<1x128x128xbf16>,
      %c0_55 = arith.constant 0 : index
      %c0_56 = arith.constant 0 : index
      %c128 = arith.constant 128 : index
      %209 = vector.load %arg2[%c0_55, %c0_56, %c128] : memref<2x1x1536xi32, #tpu.memory_space<vmem>>, vector<1x1x128xi32>
      %210 = vector.shape_cast %209 : vector<1x1x128xi32> to vector<1x128xi32>
      %211 = vector.broadcast %210 : vector<1x128xi32> to vector<128x128xi32>
      %212 = arith.cmpi eq, %211, %197 : vector<128x128xi32>
      %cst_57 = arith.constant 1.000000e+00 : f32
      %cst_58 = arith.constant 0.000000e+00 : f32
      %213 = vector.broadcast %cst_57 : f32 to vector<128x128xf32>
      %214 = vector.broadcast %cst_58 : f32 to vector<128x128xf32>
      %215 = arith.select %212, %213, %214 : vector<128x128xi1>, vector<128x128xf32>
      %216 = arith.truncf %215 : vector<128x128xf32> to vector<128x128xbf16>
      %c0_59 = arith.constant 0 : index
      %c0_60 = arith.constant 0 : index
      %c128_61 = arith.constant 128 : index
      %217 = vector.load %arg6[%c0_59, %c0_60, %c128_61] : memref<2x128x1536xbf16, #tpu.memory_space<vmem>>, vector<1x128x128xbf16>
      %218 = vector.shape_cast %217 : vector<1x128x128xbf16> to vector<128x128xbf16>
      %219 = vector.shape_cast %216 : vector<128x128xbf16> to vector<1x128x128xbf16>
      tpu.vector_store %arg6[%c0_59, %c0_60, %c128_61], %219 {strides = array<i32>} : memref<2x128x1536xbf16, #tpu.memory_space<vmem>>, vector<1x128x128xbf16>,
      %c0_62 = arith.constant 0 : index
      %c0_63 = arith.constant 0 : index
      %c256 = arith.constant 256 : index
      %220 = vector.load %arg2[%c0_62, %c0_63, %c256] : memref<2x1x1536xi32, #tpu.memory_space<vmem>>, vector<1x1x128xi32>
      %221 = vector.shape_cast %220 : vector<1x1x128xi32> to vector<1x128xi32>
      %222 = vector.broadcast %221 : vector<1x128xi32> to vector<128x128xi32>
      %223 = arith.cmpi eq, %222, %197 : vector<128x128xi32>
      %cst_64 = arith.constant 1.000000e+00 : f32
      %cst_65 = arith.constant 0.000000e+00 : f32
      %224 = vector.broadcast %cst_64 : f32 to vector<128x128xf32>
      %225 = vector.broadcast %cst_65 : f32 to vector<128x128xf32>
      %226 = arith.select %223, %224, %225 : vector<128x128xi1>, vector<128x128xf32>
      %227 = arith.truncf %226 : vector<128x128xf32> to vector<128x128xbf16>
      %c0_66 = arith.constant 0 : index
      %c0_67 = arith.constant 0 : index
      %c256_68 = arith.constant 256 : index
      %228 = vector.load %arg6[%c0_66, %c0_67, %c256_68] : memref<2x128x1536xbf16, #tpu.memory_space<vmem>>, vector<1x128x128xbf16>
      %229 = vector.shape_cast %228 : vector<1x128x128xbf16> to vector<128x128xbf16>
      %230 = vector.shape_cast %227 : vector<128x128xbf16> to vector<1x128x128xbf16>
      tpu.vector_store %arg6[%c0_66, %c0_67, %c256_68], %230 {strides = array<i32>} : memref<2x128x1536xbf16, #tpu.memory_space<vmem>>, vector<1x128x128xbf16>,
      %c0_69 = arith.constant 0 : index
      %c0_70 = arith.constant 0 : index
      %c384 = arith.constant 384 : index
      %231 = vector.load %arg2[%c0_69, %c0_70, %c384] : memref<2x1x1536xi32, #tpu.memory_space<vmem>>, vector<1x1x128xi32>
      %232 = vector.shape_cast %231 : vector<1x1x128xi32> to vector<1x128xi32>
      %233 = vector.broadcast %232 : vector<1x128xi32> to vector<128x128xi32>
      %234 = arith.cmpi eq, %233, %197 : vector<128x128xi32>
      %cst_71 = arith.constant 1.000000e+00 : f32
      %cst_72 = arith.constant 0.000000e+00 : f32
      %235 = vector.broadcast %cst_71 : f32 to vector<128x128xf32>
      %236 = vector.broadcast %cst_72 : f32 to vector<128x128xf32>
      %237 = arith.select %234, %235, %236 : vector<128x128xi1>, vector<128x128xf32>
      %238 = arith.truncf %237 : vector<128x128xf32> to vector<128x128xbf16>
      %c0_73 = arith.constant 0 : index
      %c0_74 = arith.constant 0 : index
      %c384_75 = arith.constant 384 : index
      %239 = vector.load %arg6[%c0_73, %c0_74, %c384_75] : memref<2x128x1536xbf16, #tpu.memory_space<vmem>>, vector<1x128x128xbf16>
      %240 = vector.shape_cast %239 : vector<1x128x128xbf16> to vector<128x128xbf16>
      %241 = vector.shape_cast %238 : vector<128x128xbf16> to vector<1x128x128xbf16>
      tpu.vector_store %arg6[%c0_73, %c0_74, %c384_75], %241 {strides = array<i32>} : memref<2x128x1536xbf16, #tpu.memory_space<vmem>>, vector<1x128x128xbf16>,
      %c0_76 = arith.constant 0 : index
      %c0_77 = arith.constant 0 : index
      %c512 = arith.constant 512 : index
      %242 = vector.load %arg2[%c0_76, %c0_77, %c512] : memref<2x1x1536xi32, #tpu.memory_space<vmem>>, vector<1x1x128xi32>
      %243 = vector.shape_cast %242 : vector<1x1x128xi32> to vector<1x128xi32>
      %244 = vector.broadcast %243 : vector<1x128xi32> to vector<128x128xi32>
      %245 = arith.cmpi eq, %244, %197 : vector<128x128xi32>
      %cst_78 = arith.constant 1.000000e+00 : f32
      %cst_79 = arith.constant 0.000000e+00 : f32
      %246 = vector.broadcast %cst_78 : f32 to vector<128x128xf32>
      %247 = vector.broadcast %cst_79 : f32 to vector<128x128xf32>
      %248 = arith.select %245, %246, %247 : vector<128x128xi1>, vector<128x128xf32>
      %249 = arith.truncf %248 : vector<128x128xf32> to vector<128x128xbf16>
      %c0_80 = arith.constant 0 : index
      %c0_81 = arith.constant 0 : index
      %c512_82 = arith.constant 512 : index
      %250 = vector.load %arg6[%c0_80, %c0_81, %c512_82] : memref<2x128x1536xbf16, #tpu.memory_space<vmem>>, vector<1x128x128xbf16>
      %251 = vector.shape_cast %250 : vector<1x128x128xbf16> to vector<128x128xbf16>
      %252 = vector.shape_cast %249 : vector<128x128xbf16> to vector<1x128x128xbf16>
      tpu.vector_store %arg6[%c0_80, %c0_81, %c512_82], %252 {strides = array<i32>} : memref<2x128x1536xbf16, #tpu.memory_space<vmem>>, vector<1x128x128xbf16>,
      %c0_83 = arith.constant 0 : index
      %c0_84 = arith.constant 0 : index
      %c640 = arith.constant 640 : index
      %253 = vector.load %arg2[%c0_83, %c0_84, %c640] : memref<2x1x1536xi32, #tpu.memory_space<vmem>>, vector<1x1x128xi32>
      %254 = vector.shape_cast %253 : vector<1x1x128xi32> to vector<1x128xi32>
      %255 = vector.broadcast %254 : vector<1x128xi32> to vector<128x128xi32>
      %256 = arith.cmpi eq, %255, %197 : vector<128x128xi32>
      %cst_85 = arith.constant 1.000000e+00 : f32
      %cst_86 = arith.constant 0.000000e+00 : f32
      %257 = vector.broadcast %cst_85 : f32 to vector<128x128xf32>
      %258 = vector.broadcast %cst_86 : f32 to vector<128x128xf32>
      %259 = arith.select %256, %257, %258 : vector<128x128xi1>, vector<128x128xf32>
      %260 = arith.truncf %259 : vector<128x128xf32> to vector<128x128xbf16>
      %c0_87 = arith.constant 0 : index
      %c0_88 = arith.constant 0 : index
      %c640_89 = arith.constant 640 : index
      %261 = vector.load %arg6[%c0_87, %c0_88, %c640_89] : memref<2x128x1536xbf16, #tpu.memory_space<vmem>>, vector<1x128x128xbf16>
      %262 = vector.shape_cast %261 : vector<1x128x128xbf16> to vector<128x128xbf16>
      %263 = vector.shape_cast %260 : vector<128x128xbf16> to vector<1x128x128xbf16>
      tpu.vector_store %arg6[%c0_87, %c0_88, %c640_89], %263 {strides = array<i32>} : memref<2x128x1536xbf16, #tpu.memory_space<vmem>>, vector<1x128x128xbf16>,
      %c0_90 = arith.constant 0 : index
      %c0_91 = arith.constant 0 : index
      %c768 = arith.constant 768 : index
      %264 = vector.load %arg2[%c0_90, %c0_91, %c768] : memref<2x1x1536xi32, #tpu.memory_space<vmem>>, vector<1x1x128xi32>
      %265 = vector.shape_cast %264 : vector<1x1x128xi32> to vector<1x128xi32>
      %266 = vector.broadcast %265 : vector<1x128xi32> to vector<128x128xi32>
      %267 = arith.cmpi eq, %266, %197 : vector<128x128xi32>
      %cst_92 = arith.constant 1.000000e+00 : f32
      %cst_93 = arith.constant 0.000000e+00 : f32
      %268 = vector.broadcast %cst_92 : f32 to vector<128x128xf32>
      %269 = vector.broadcast %cst_93 : f32 to vector<128x128xf32>
      %270 = arith.select %267, %268, %269 : vector<128x128xi1>, vector<128x128xf32>
      %271 = arith.truncf %270 : vector<128x128xf32> to vector<128x128xbf16>
      %c0_94 = arith.constant 0 : index
      %c0_95 = arith.constant 0 : index
      %c768_96 = arith.constant 768 : index
      %272 = vector.load %arg6[%c0_94, %c0_95, %c768_96] : memref<2x128x1536xbf16, #tpu.memory_space<vmem>>, vector<1x128x128xbf16>
      %273 = vector.shape_cast %272 : vector<1x128x128xbf16> to vector<128x128xbf16>
      %274 = vector.shape_cast %271 : vector<128x128xbf16> to vector<1x128x128xbf16>
      tpu.vector_store %arg6[%c0_94, %c0_95, %c768_96], %274 {strides = array<i32>} : memref<2x128x1536xbf16, #tpu.memory_space<vmem>>, vector<1x128x128xbf16>,
      %c0_97 = arith.constant 0 : index
      %c0_98 = arith.constant 0 : index
      %c896 = arith.constant 896 : index
      %275 = vector.load %arg2[%c0_97, %c0_98, %c896] : memref<2x1x1536xi32, #tpu.memory_space<vmem>>, vector<1x1x128xi32>
      %276 = vector.shape_cast %275 : vector<1x1x128xi32> to vector<1x128xi32>
      %277 = vector.broadcast %276 : vector<1x128xi32> to vector<128x128xi32>
      %278 = arith.cmpi eq, %277, %197 : vector<128x128xi32>
      %cst_99 = arith.constant 1.000000e+00 : f32
      %cst_100 = arith.constant 0.000000e+00 : f32
      %279 = vector.broadcast %cst_99 : f32 to vector<128x128xf32>
      %280 = vector.broadcast %cst_100 : f32 to vector<128x128xf32>
      %281 = arith.select %278, %279, %280 : vector<128x128xi1>, vector<128x128xf32>
      %282 = arith.truncf %281 : vector<128x128xf32> to vector<128x128xbf16>
      %c0_101 = arith.constant 0 : index
      %c0_102 = arith.constant 0 : index
      %c896_103 = arith.constant 896 : index
      %283 = vector.load %arg6[%c0_101, %c0_102, %c896_103] : memref<2x128x1536xbf16, #tpu.memory_space<vmem>>, vector<1x128x128xbf16>
      %284 = vector.shape_cast %283 : vector<1x128x128xbf16> to vector<128x128xbf16>
      %285 = vector.shape_cast %282 : vector<128x128xbf16> to vector<1x128x128xbf16>
      tpu.vector_store %arg6[%c0_101, %c0_102, %c896_103], %285 {strides = array<i32>} : memref<2x128x1536xbf16, #tpu.memory_space<vmem>>, vector<1x128x128xbf16>,
      %c0_104 = arith.constant 0 : index
      %c0_105 = arith.constant 0 : index
      %c1024 = arith.constant 1024 : index
      %286 = vector.load %arg2[%c0_104, %c0_105, %c1024] : memref<2x1x1536xi32, #tpu.memory_space<vmem>>, vector<1x1x128xi32>
      %287 = vector.shape_cast %286 : vector<1x1x128xi32> to vector<1x128xi32>
      %288 = vector.broadcast %287 : vector<1x128xi32> to vector<128x128xi32>
      %289 = arith.cmpi eq, %288, %197 : vector<128x128xi32>
      %cst_106 = arith.constant 1.000000e+00 : f32
      %cst_107 = arith.constant 0.000000e+00 : f32
      %290 = vector.broadcast %cst_106 : f32 to vector<128x128xf32>
      %291 = vector.broadcast %cst_107 : f32 to vector<128x128xf32>
      %292 = arith.select %289, %290, %291 : vector<128x128xi1>, vector<128x128xf32>
      %293 = arith.truncf %292 : vector<128x128xf32> to vector<128x128xbf16>
      %c0_108 = arith.constant 0 : index
      %c0_109 = arith.constant 0 : index
      %c1024_110 = arith.constant 1024 : index
      %294 = vector.load %arg6[%c0_108, %c0_109, %c1024_110] : memref<2x128x1536xbf16, #tpu.memory_space<vmem>>, vector<1x128x128xbf16>
      %295 = vector.shape_cast %294 : vector<1x128x128xbf16> to vector<128x128xbf16>
      %296 = vector.shape_cast %293 : vector<128x128xbf16> to vector<1x128x128xbf16>
      tpu.vector_store %arg6[%c0_108, %c0_109, %c1024_110], %296 {strides = array<i32>} : memref<2x128x1536xbf16, #tpu.memory_space<vmem>>, vector<1x128x128xbf16>,
      %c0_111 = arith.constant 0 : index
      %c0_112 = arith.constant 0 : index
      %c1152 = arith.constant 1152 : index
      %297 = vector.load %arg2[%c0_111, %c0_112, %c1152] : memref<2x1x1536xi32, #tpu.memory_space<vmem>>, vector<1x1x128xi32>
      %298 = vector.shape_cast %297 : vector<1x1x128xi32> to vector<1x128xi32>
      %299 = vector.broadcast %298 : vector<1x128xi32> to vector<128x128xi32>
      %300 = arith.cmpi eq, %299, %197 : vector<128x128xi32>
      %cst_113 = arith.constant 1.000000e+00 : f32
      %cst_114 = arith.constant 0.000000e+00 : f32
      %301 = vector.broadcast %cst_113 : f32 to vector<128x128xf32>
      %302 = vector.broadcast %cst_114 : f32 to vector<128x128xf32>
      %303 = arith.select %300, %301, %302 : vector<128x128xi1>, vector<128x128xf32>
      %304 = arith.truncf %303 : vector<128x128xf32> to vector<128x128xbf16>
      %c0_115 = arith.constant 0 : index
      %c0_116 = arith.constant 0 : index
      %c1152_117 = arith.constant 1152 : index
      %305 = vector.load %arg6[%c0_115, %c0_116, %c1152_117] : memref<2x128x1536xbf16, #tpu.memory_space<vmem>>, vector<1x128x128xbf16>
      %306 = vector.shape_cast %305 : vector<1x128x128xbf16> to vector<128x128xbf16>
      %307 = vector.shape_cast %304 : vector<128x128xbf16> to vector<1x128x128xbf16>
      tpu.vector_store %arg6[%c0_115, %c0_116, %c1152_117], %307 {strides = array<i32>} : memref<2x128x1536xbf16, #tpu.memory_space<vmem>>, vector<1x128x128xbf16>,
      %c0_118 = arith.constant 0 : index
      %c0_119 = arith.constant 0 : index
      %c1280 = arith.constant 1280 : index
      %308 = vector.load %arg2[%c0_118, %c0_119, %c1280] : memref<2x1x1536xi32, #tpu.memory_space<vmem>>, vector<1x1x128xi32>
      %309 = vector.shape_cast %308 : vector<1x1x128xi32> to vector<1x128xi32>
      %310 = vector.broadcast %309 : vector<1x128xi32> to vector<128x128xi32>
      %311 = arith.cmpi eq, %310, %197 : vector<128x128xi32>
      %cst_120 = arith.constant 1.000000e+00 : f32
      %cst_121 = arith.constant 0.000000e+00 : f32
      %312 = vector.broadcast %cst_120 : f32 to vector<128x128xf32>
      %313 = vector.broadcast %cst_121 : f32 to vector<128x128xf32>
      %314 = arith.select %311, %312, %313 : vector<128x128xi1>, vector<128x128xf32>
      %315 = arith.truncf %314 : vector<128x128xf32> to vector<128x128xbf16>
      %c0_122 = arith.constant 0 : index
      %c0_123 = arith.constant 0 : index
      %c1280_124 = arith.constant 1280 : index
      %316 = vector.load %arg6[%c0_122, %c0_123, %c1280_124] : memref<2x128x1536xbf16, #tpu.memory_space<vmem>>, vector<1x128x128xbf16>
      %317 = vector.shape_cast %316 : vector<1x128x128xbf16> to vector<128x128xbf16>
      %318 = vector.shape_cast %315 : vector<128x128xbf16> to vector<1x128x128xbf16>
      tpu.vector_store %arg6[%c0_122, %c0_123, %c1280_124], %318 {strides = array<i32>} : memref<2x128x1536xbf16, #tpu.memory_space<vmem>>, vector<1x128x128xbf16>,
      %c0_125 = arith.constant 0 : index
      %c0_126 = arith.constant 0 : index
      %c1408 = arith.constant 1408 : index
      %319 = vector.load %arg2[%c0_125, %c0_126, %c1408] : memref<2x1x1536xi32, #tpu.memory_space<vmem>>, vector<1x1x128xi32>
      %320 = vector.shape_cast %319 : vector<1x1x128xi32> to vector<1x128xi32>
      %321 = vector.broadcast %320 : vector<1x128xi32> to vector<128x128xi32>
      %322 = arith.cmpi eq, %321, %197 : vector<128x128xi32>
      %cst_127 = arith.constant 1.000000e+00 : f32
      %cst_128 = arith.constant 0.000000e+00 : f32
      %323 = vector.broadcast %cst_127 : f32 to vector<128x128xf32>
      %324 = vector.broadcast %cst_128 : f32 to vector<128x128xf32>
      %325 = arith.select %322, %323, %324 : vector<128x128xi1>, vector<128x128xf32>
      %326 = arith.truncf %325 : vector<128x128xf32> to vector<128x128xbf16>
      %c0_129 = arith.constant 0 : index
      %c0_130 = arith.constant 0 : index
      %c1408_131 = arith.constant 1408 : index
      %327 = vector.load %arg6[%c0_129, %c0_130, %c1408_131] : memref<2x128x1536xbf16, #tpu.memory_space<vmem>>, vector<1x128x128xbf16>
      %328 = vector.shape_cast %327 : vector<1x128x128xbf16> to vector<128x128xbf16>
      %329 = vector.shape_cast %326 : vector<128x128xbf16> to vector<1x128x128xbf16>
      tpu.vector_store %arg6[%c0_129, %c0_130, %c1408_131], %329 {strides = array<i32>} : memref<2x128x1536xbf16, #tpu.memory_space<vmem>>, vector<1x128x128xbf16>,
      %c1_132 = arith.constant 1 : index
      %c0_133 = arith.constant 0 : index
      %c0_134 = arith.constant 0 : index
      %330 = vector.load %arg2[%c1_132, %c0_133, %c0_134] : memref<2x1x1536xi32, #tpu.memory_space<vmem>>, vector<1x1x128xi32>
      %331 = vector.shape_cast %330 : vector<1x1x128xi32> to vector<1x128xi32>
      %332 = vector.broadcast %331 : vector<1x128xi32> to vector<128x128xi32>
      %333 = arith.cmpi eq, %332, %197 : vector<128x128xi32>
      %cst_135 = arith.constant 1.000000e+00 : f32
      %cst_136 = arith.constant 0.000000e+00 : f32
      %334 = vector.broadcast %cst_135 : f32 to vector<128x128xf32>
      %335 = vector.broadcast %cst_136 : f32 to vector<128x128xf32>
      %336 = arith.select %333, %334, %335 : vector<128x128xi1>, vector<128x128xf32>
      %337 = arith.truncf %336 : vector<128x128xf32> to vector<128x128xbf16>
      %c1_137 = arith.constant 1 : index
      %c0_138 = arith.constant 0 : index
      %c0_139 = arith.constant 0 : index
      %338 = vector.load %arg6[%c1_137, %c0_138, %c0_139] : memref<2x128x1536xbf16, #tpu.memory_space<vmem>>, vector<1x128x128xbf16>
      %339 = vector.shape_cast %338 : vector<1x128x128xbf16> to vector<128x128xbf16>
      %340 = vector.shape_cast %337 : vector<128x128xbf16> to vector<1x128x128xbf16>
      tpu.vector_store %arg6[%c1_137, %c0_138, %c0_139], %340 {strides = array<i32>} : memref<2x128x1536xbf16, #tpu.memory_space<vmem>>, vector<1x128x128xbf16>,
      %c1_140 = arith.constant 1 : index
      %c0_141 = arith.constant 0 : index
      %c128_142 = arith.constant 128 : index
      %341 = vector.load %arg2[%c1_140, %c0_141, %c128_142] : memref<2x1x1536xi32, #tpu.memory_space<vmem>>, vector<1x1x128xi32>
      %342 = vector.shape_cast %341 : vector<1x1x128xi32> to vector<1x128xi32>
      %343 = vector.broadcast %342 : vector<1x128xi32> to vector<128x128xi32>
      %344 = arith.cmpi eq, %343, %197 : vector<128x128xi32>
      %cst_143 = arith.constant 1.000000e+00 : f32
      %cst_144 = arith.constant 0.000000e+00 : f32
      %345 = vector.broadcast %cst_143 : f32 to vector<128x128xf32>
      %346 = vector.broadcast %cst_144 : f32 to vector<128x128xf32>
      %347 = arith.select %344, %345, %346 : vector<128x128xi1>, vector<128x128xf32>
      %348 = arith.truncf %347 : vector<128x128xf32> to vector<128x128xbf16>
      %c1_145 = arith.constant 1 : index
      %c0_146 = arith.constant 0 : index
      %c128_147 = arith.constant 128 : index
      %349 = vector.load %arg6[%c1_145, %c0_146, %c128_147] : memref<2x128x1536xbf16, #tpu.memory_space<vmem>>, vector<1x128x128xbf16>
      %350 = vector.shape_cast %349 : vector<1x128x128xbf16> to vector<128x128xbf16>
      %351 = vector.shape_cast %348 : vector<128x128xbf16> to vector<1x128x128xbf16>
      tpu.vector_store %arg6[%c1_145, %c0_146, %c128_147], %351 {strides = array<i32>} : memref<2x128x1536xbf16, #tpu.memory_space<vmem>>, vector<1x128x128xbf16>,
      %c1_148 = arith.constant 1 : index
      %c0_149 = arith.constant 0 : index
      %c256_150 = arith.constant 256 : index
      %352 = vector.load %arg2[%c1_148, %c0_149, %c256_150] : memref<2x1x1536xi32, #tpu.memory_space<vmem>>, vector<1x1x128xi32>
      %353 = vector.shape_cast %352 : vector<1x1x128xi32> to vector<1x128xi32>
      %354 = vector.broadcast %353 : vector<1x128xi32> to vector<128x128xi32>
      %355 = arith.cmpi eq, %354, %197 : vector<128x128xi32>
      %cst_151 = arith.constant 1.000000e+00 : f32
      %cst_152 = arith.constant 0.000000e+00 : f32
      %356 = vector.broadcast %cst_151 : f32 to vector<128x128xf32>
      %357 = vector.broadcast %cst_152 : f32 to vector<128x128xf32>
      %358 = arith.select %355, %356, %357 : vector<128x128xi1>, vector<128x128xf32>
      %359 = arith.truncf %358 : vector<128x128xf32> to vector<128x128xbf16>
      %c1_153 = arith.constant 1 : index
      %c0_154 = arith.constant 0 : index
      %c256_155 = arith.constant 256 : index
      %360 = vector.load %arg6[%c1_153, %c0_154, %c256_155] : memref<2x128x1536xbf16, #tpu.memory_space<vmem>>, vector<1x128x128xbf16>
      %361 = vector.shape_cast %360 : vector<1x128x128xbf16> to vector<128x128xbf16>
      %362 = vector.shape_cast %359 : vector<128x128xbf16> to vector<1x128x128xbf16>
      tpu.vector_store %arg6[%c1_153, %c0_154, %c256_155], %362 {strides = array<i32>} : memref<2x128x1536xbf16, #tpu.memory_space<vmem>>, vector<1x128x128xbf16>,
      %c1_156 = arith.constant 1 : index
      %c0_157 = arith.constant 0 : index
      %c384_158 = arith.constant 384 : index
      %363 = vector.load %arg2[%c1_156, %c0_157, %c384_158] : memref<2x1x1536xi32, #tpu.memory_space<vmem>>, vector<1x1x128xi32>
      %364 = vector.shape_cast %363 : vector<1x1x128xi32> to vector<1x128xi32>
      %365 = vector.broadcast %364 : vector<1x128xi32> to vector<128x128xi32>
      %366 = arith.cmpi eq, %365, %197 : vector<128x128xi32>
      %cst_159 = arith.constant 1.000000e+00 : f32
      %cst_160 = arith.constant 0.000000e+00 : f32
      %367 = vector.broadcast %cst_159 : f32 to vector<128x128xf32>
      %368 = vector.broadcast %cst_160 : f32 to vector<128x128xf32>
      %369 = arith.select %366, %367, %368 : vector<128x128xi1>, vector<128x128xf32>
      %370 = arith.truncf %369 : vector<128x128xf32> to vector<128x128xbf16>
      %c1_161 = arith.constant 1 : index
      %c0_162 = arith.constant 0 : index
      %c384_163 = arith.constant 384 : index
      %371 = vector.load %arg6[%c1_161, %c0_162, %c384_163] : memref<2x128x1536xbf16, #tpu.memory_space<vmem>>, vector<1x128x128xbf16>
      %372 = vector.shape_cast %371 : vector<1x128x128xbf16> to vector<128x128xbf16>
      %373 = vector.shape_cast %370 : vector<128x128xbf16> to vector<1x128x128xbf16>
      tpu.vector_store %arg6[%c1_161, %c0_162, %c384_163], %373 {strides = array<i32>} : memref<2x128x1536xbf16, #tpu.memory_space<vmem>>, vector<1x128x128xbf16>,
      %c1_164 = arith.constant 1 : index
      %c0_165 = arith.constant 0 : index
      %c512_166 = arith.constant 512 : index
      %374 = vector.load %arg2[%c1_164, %c0_165, %c512_166] : memref<2x1x1536xi32, #tpu.memory_space<vmem>>, vector<1x1x128xi32>
      %375 = vector.shape_cast %374 : vector<1x1x128xi32> to vector<1x128xi32>
      %376 = vector.broadcast %375 : vector<1x128xi32> to vector<128x128xi32>
      %377 = arith.cmpi eq, %376, %197 : vector<128x128xi32>
      %cst_167 = arith.constant 1.000000e+00 : f32
      %cst_168 = arith.constant 0.000000e+00 : f32
      %378 = vector.broadcast %cst_167 : f32 to vector<128x128xf32>
      %379 = vector.broadcast %cst_168 : f32 to vector<128x128xf32>
      %380 = arith.select %377, %378, %379 : vector<128x128xi1>, vector<128x128xf32>
      %381 = arith.truncf %380 : vector<128x128xf32> to vector<128x128xbf16>
      %c1_169 = arith.constant 1 : index
      %c0_170 = arith.constant 0 : index
      %c512_171 = arith.constant 512 : index
      %382 = vector.load %arg6[%c1_169, %c0_170, %c512_171] : memref<2x128x1536xbf16, #tpu.memory_space<vmem>>, vector<1x128x128xbf16>
      %383 = vector.shape_cast %382 : vector<1x128x128xbf16> to vector<128x128xbf16>
      %384 = vector.shape_cast %381 : vector<128x128xbf16> to vector<1x128x128xbf16>
      tpu.vector_store %arg6[%c1_169, %c0_170, %c512_171], %384 {strides = array<i32>} : memref<2x128x1536xbf16, #tpu.memory_space<vmem>>, vector<1x128x128xbf16>,
      %c1_172 = arith.constant 1 : index
      %c0_173 = arith.constant 0 : index
      %c640_174 = arith.constant 640 : index
      %385 = vector.load %arg2[%c1_172, %c0_173, %c640_174] : memref<2x1x1536xi32, #tpu.memory_space<vmem>>, vector<1x1x128xi32>
      %386 = vector.shape_cast %385 : vector<1x1x128xi32> to vector<1x128xi32>
      %387 = vector.broadcast %386 : vector<1x128xi32> to vector<128x128xi32>
      %388 = arith.cmpi eq, %387, %197 : vector<128x128xi32>
      %cst_175 = arith.constant 1.000000e+00 : f32
      %cst_176 = arith.constant 0.000000e+00 : f32
      %389 = vector.broadcast %cst_175 : f32 to vector<128x128xf32>
      %390 = vector.broadcast %cst_176 : f32 to vector<128x128xf32>
      %391 = arith.select %388, %389, %390 : vector<128x128xi1>, vector<128x128xf32>
      %392 = arith.truncf %391 : vector<128x128xf32> to vector<128x128xbf16>
      %c1_177 = arith.constant 1 : index
      %c0_178 = arith.constant 0 : index
      %c640_179 = arith.constant 640 : index
      %393 = vector.load %arg6[%c1_177, %c0_178, %c640_179] : memref<2x128x1536xbf16, #tpu.memory_space<vmem>>, vector<1x128x128xbf16>
      %394 = vector.shape_cast %393 : vector<1x128x128xbf16> to vector<128x128xbf16>
      %395 = vector.shape_cast %392 : vector<128x128xbf16> to vector<1x128x128xbf16>
      tpu.vector_store %arg6[%c1_177, %c0_178, %c640_179], %395 {strides = array<i32>} : memref<2x128x1536xbf16, #tpu.memory_space<vmem>>, vector<1x128x128xbf16>,
      %c1_180 = arith.constant 1 : index
      %c0_181 = arith.constant 0 : index
      %c768_182 = arith.constant 768 : index
      %396 = vector.load %arg2[%c1_180, %c0_181, %c768_182] : memref<2x1x1536xi32, #tpu.memory_space<vmem>>, vector<1x1x128xi32>
      %397 = vector.shape_cast %396 : vector<1x1x128xi32> to vector<1x128xi32>
      %398 = vector.broadcast %397 : vector<1x128xi32> to vector<128x128xi32>
      %399 = arith.cmpi eq, %398, %197 : vector<128x128xi32>
      %cst_183 = arith.constant 1.000000e+00 : f32
      %cst_184 = arith.constant 0.000000e+00 : f32
      %400 = vector.broadcast %cst_183 : f32 to vector<128x128xf32>
      %401 = vector.broadcast %cst_184 : f32 to vector<128x128xf32>
      %402 = arith.select %399, %400, %401 : vector<128x128xi1>, vector<128x128xf32>
      %403 = arith.truncf %402 : vector<128x128xf32> to vector<128x128xbf16>
      %c1_185 = arith.constant 1 : index
      %c0_186 = arith.constant 0 : index
      %c768_187 = arith.constant 768 : index
      %404 = vector.load %arg6[%c1_185, %c0_186, %c768_187] : memref<2x128x1536xbf16, #tpu.memory_space<vmem>>, vector<1x128x128xbf16>
      %405 = vector.shape_cast %404 : vector<1x128x128xbf16> to vector<128x128xbf16>
      %406 = vector.shape_cast %403 : vector<128x128xbf16> to vector<1x128x128xbf16>
      tpu.vector_store %arg6[%c1_185, %c0_186, %c768_187], %406 {strides = array<i32>} : memref<2x128x1536xbf16, #tpu.memory_space<vmem>>, vector<1x128x128xbf16>,
      %c1_188 = arith.constant 1 : index
      %c0_189 = arith.constant 0 : index
      %c896_190 = arith.constant 896 : index
      %407 = vector.load %arg2[%c1_188, %c0_189, %c896_190] : memref<2x1x1536xi32, #tpu.memory_space<vmem>>, vector<1x1x128xi32>
      %408 = vector.shape_cast %407 : vector<1x1x128xi32> to vector<1x128xi32>
      %409 = vector.broadcast %408 : vector<1x128xi32> to vector<128x128xi32>
      %410 = arith.cmpi eq, %409, %197 : vector<128x128xi32>
      %cst_191 = arith.constant 1.000000e+00 : f32
      %cst_192 = arith.constant 0.000000e+00 : f32
      %411 = vector.broadcast %cst_191 : f32 to vector<128x128xf32>
      %412 = vector.broadcast %cst_192 : f32 to vector<128x128xf32>
      %413 = arith.select %410, %411, %412 : vector<128x128xi1>, vector<128x128xf32>
      %414 = arith.truncf %413 : vector<128x128xf32> to vector<128x128xbf16>
      %c1_193 = arith.constant 1 : index
      %c0_194 = arith.constant 0 : index
      %c896_195 = arith.constant 896 : index
      %415 = vector.load %arg6[%c1_193, %c0_194, %c896_195] : memref<2x128x1536xbf16, #tpu.memory_space<vmem>>, vector<1x128x128xbf16>
      %416 = vector.shape_cast %415 : vector<1x128x128xbf16> to vector<128x128xbf16>
      %417 = vector.shape_cast %414 : vector<128x128xbf16> to vector<1x128x128xbf16>
      tpu.vector_store %arg6[%c1_193, %c0_194, %c896_195], %417 {strides = array<i32>} : memref<2x128x1536xbf16, #tpu.memory_space<vmem>>, vector<1x128x128xbf16>,
      %c1_196 = arith.constant 1 : index
      %c0_197 = arith.constant 0 : index
      %c1024_198 = arith.constant 1024 : index
      %418 = vector.load %arg2[%c1_196, %c0_197, %c1024_198] : memref<2x1x1536xi32, #tpu.memory_space<vmem>>, vector<1x1x128xi32>
      %419 = vector.shape_cast %418 : vector<1x1x128xi32> to vector<1x128xi32>
      %420 = vector.broadcast %419 : vector<1x128xi32> to vector<128x128xi32>
      %421 = arith.cmpi eq, %420, %197 : vector<128x128xi32>
      %cst_199 = arith.constant 1.000000e+00 : f32
      %cst_200 = arith.constant 0.000000e+00 : f32
      %422 = vector.broadcast %cst_199 : f32 to vector<128x128xf32>
      %423 = vector.broadcast %cst_200 : f32 to vector<128x128xf32>
      %424 = arith.select %421, %422, %423 : vector<128x128xi1>, vector<128x128xf32>
      %425 = arith.truncf %424 : vector<128x128xf32> to vector<128x128xbf16>
      %c1_201 = arith.constant 1 : index
      %c0_202 = arith.constant 0 : index
      %c1024_203 = arith.constant 1024 : index
      %426 = vector.load %arg6[%c1_201, %c0_202, %c1024_203] : memref<2x128x1536xbf16, #tpu.memory_space<vmem>>, vector<1x128x128xbf16>
      %427 = vector.shape_cast %426 : vector<1x128x128xbf16> to vector<128x128xbf16>
      %428 = vector.shape_cast %425 : vector<128x128xbf16> to vector<1x128x128xbf16>
      tpu.vector_store %arg6[%c1_201, %c0_202, %c1024_203], %428 {strides = array<i32>} : memref<2x128x1536xbf16, #tpu.memory_space<vmem>>, vector<1x128x128xbf16>,
      %c1_204 = arith.constant 1 : index
      %c0_205 = arith.constant 0 : index
      %c1152_206 = arith.constant 1152 : index
      %429 = vector.load %arg2[%c1_204, %c0_205, %c1152_206] : memref<2x1x1536xi32, #tpu.memory_space<vmem>>, vector<1x1x128xi32>
      %430 = vector.shape_cast %429 : vector<1x1x128xi32> to vector<1x128xi32>
      %431 = vector.broadcast %430 : vector<1x128xi32> to vector<128x128xi32>
      %432 = arith.cmpi eq, %431, %197 : vector<128x128xi32>
      %cst_207 = arith.constant 1.000000e+00 : f32
      %cst_208 = arith.constant 0.000000e+00 : f32
      %433 = vector.broadcast %cst_207 : f32 to vector<128x128xf32>
      %434 = vector.broadcast %cst_208 : f32 to vector<128x128xf32>
      %435 = arith.select %432, %433, %434 : vector<128x128xi1>, vector<128x128xf32>
      %436 = arith.truncf %435 : vector<128x128xf32> to vector<128x128xbf16>
      %c1_209 = arith.constant 1 : index
      %c0_210 = arith.constant 0 : index
      %c1152_211 = arith.constant 1152 : index
      %437 = vector.load %arg6[%c1_209, %c0_210, %c1152_211] : memref<2x128x1536xbf16, #tpu.memory_space<vmem>>, vector<1x128x128xbf16>
      %438 = vector.shape_cast %437 : vector<1x128x128xbf16> to vector<128x128xbf16>
      %439 = vector.shape_cast %436 : vector<128x128xbf16> to vector<1x128x128xbf16>
      tpu.vector_store %arg6[%c1_209, %c0_210, %c1152_211], %439 {strides = array<i32>} : memref<2x128x1536xbf16, #tpu.memory_space<vmem>>, vector<1x128x128xbf16>,
      %c1_212 = arith.constant 1 : index
      %c0_213 = arith.constant 0 : index
      %c1280_214 = arith.constant 1280 : index
      %440 = vector.load %arg2[%c1_212, %c0_213, %c1280_214] : memref<2x1x1536xi32, #tpu.memory_space<vmem>>, vector<1x1x128xi32>
      %441 = vector.shape_cast %440 : vector<1x1x128xi32> to vector<1x128xi32>
      %442 = vector.broadcast %441 : vector<1x128xi32> to vector<128x128xi32>
      %443 = arith.cmpi eq, %442, %197 : vector<128x128xi32>
      %cst_215 = arith.constant 1.000000e+00 : f32
      %cst_216 = arith.constant 0.000000e+00 : f32
      %444 = vector.broadcast %cst_215 : f32 to vector<128x128xf32>
      %445 = vector.broadcast %cst_216 : f32 to vector<128x128xf32>
      %446 = arith.select %443, %444, %445 : vector<128x128xi1>, vector<128x128xf32>
      %447 = arith.truncf %446 : vector<128x128xf32> to vector<128x128xbf16>
      %c1_217 = arith.constant 1 : index
      %c0_218 = arith.constant 0 : index
      %c1280_219 = arith.constant 1280 : index
      %448 = vector.load %arg6[%c1_217, %c0_218, %c1280_219] : memref<2x128x1536xbf16, #tpu.memory_space<vmem>>, vector<1x128x128xbf16>
      %449 = vector.shape_cast %448 : vector<1x128x128xbf16> to vector<128x128xbf16>
      %450 = vector.shape_cast %447 : vector<128x128xbf16> to vector<1x128x128xbf16>
      tpu.vector_store %arg6[%c1_217, %c0_218, %c1280_219], %450 {strides = array<i32>} : memref<2x128x1536xbf16, #tpu.memory_space<vmem>>, vector<1x128x128xbf16>,
      %c1_220 = arith.constant 1 : index
      %c0_221 = arith.constant 0 : index
      %c1408_222 = arith.constant 1408 : index
      %451 = vector.load %arg2[%c1_220, %c0_221, %c1408_222] : memref<2x1x1536xi32, #tpu.memory_space<vmem>>, vector<1x1x128xi32>
      %452 = vector.shape_cast %451 : vector<1x1x128xi32> to vector<1x128xi32>
      %453 = vector.broadcast %452 : vector<1x128xi32> to vector<128x128xi32>
      %454 = arith.cmpi eq, %453, %197 : vector<128x128xi32>
      %cst_223 = arith.constant 1.000000e+00 : f32
      %cst_224 = arith.constant 0.000000e+00 : f32
      %455 = vector.broadcast %cst_223 : f32 to vector<128x128xf32>
      %456 = vector.broadcast %cst_224 : f32 to vector<128x128xf32>
      %457 = arith.select %454, %455, %456 : vector<128x128xi1>, vector<128x128xf32>
      %458 = arith.truncf %457 : vector<128x128xf32> to vector<128x128xbf16>
      %c1_225 = arith.constant 1 : index
      %c0_226 = arith.constant 0 : index
      %c1408_227 = arith.constant 1408 : index
      %459 = vector.load %arg6[%c1_225, %c0_226, %c1408_227] : memref<2x128x1536xbf16, #tpu.memory_space<vmem>>, vector<1x128x128xbf16>
      %460 = vector.shape_cast %459 : vector<1x128x128xbf16> to vector<128x128xbf16>
      %461 = vector.shape_cast %458 : vector<128x128xbf16> to vector<1x128x128xbf16>
      tpu.vector_store %arg6[%c1_225, %c0_226, %c1408_227], %461 {strides = array<i32>} : memref<2x128x1536xbf16, #tpu.memory_space<vmem>>, vector<1x128x128xbf16>,
      %c0_228 = arith.constant 0 : index
      %c0_229 = arith.constant 0 : index
      %462 = vector.load %arg1[%c0_228, %c0_229] : memref<8x128xf32, #tpu.memory_space<vmem>>, vector<8x128xf32>
      %c0_230 = arith.constant 0 : index
      %c0_231 = arith.constant 0 : index
      %463 = vector.load %arg5[%c0_230, %c0_231] : memref<8x128xf32, #tpu.memory_space<vmem>>, vector<8x128xf32>
      tpu.vector_store %arg5[%c0_230, %c0_231], %462 {strides = array<i32>} : memref<8x128xf32, #tpu.memory_space<vmem>>, vector<8x128xf32>,
    } else {
    }
    %c0 = arith.constant 0 : index
    %c0_1 = arith.constant 0 : index
    %3 = vector.load %arg5[%c0, %c0_1] : memref<8x128xf32, #tpu.memory_space<vmem>>, vector<8x128xf32>
    %4 = arith.truncf %3 : vector<8x128xf32> to vector<8x128xbf16>
    %c0_2 = arith.constant 0 : index
    %c0_3 = arith.constant 0 : index
    %c0_4 = arith.constant 0 : index
    %5 = vector.load %arg6[%c0_2, %c0_3, %c0_4] : memref<2x128x1536xbf16, #tpu.memory_space<vmem>>, vector<1x128x1536xbf16>
    %6 = vector.shape_cast %5 : vector<1x128x1536xbf16> to vector<128x1536xbf16>
    %cst = arith.constant dense<0.000000e+00> : vector<8x1536xf32>
    %7 = tpu.matmul %4, %6, %cst {dimension_numbers = #tpu.dot_dimension_numbers<[1], [0], [0], [1], [0, 0, 1, 1], [], []>} : vector<8x128xbf16>, vector<128x1536xbf16>, vector<8x1536xf32> -> vector<8x1536xf32>
    %8 = vector.extract_strided_slice %7 {offsets = [0, 0], sizes = [8, 128], strides = [1, 1]} : vector<8x1536xf32> to vector<8x128xf32>
    %9 = vector.extract_strided_slice %7 {offsets = [0, 128], sizes = [8, 128], strides = [1, 1]} : vector<8x1536xf32> to vector<8x128xf32>
    %10 = arith.mulf %8, %9 : vector<8x128xf32>
    %11 = vector.extract_strided_slice %7 {offsets = [0, 256], sizes = [8, 128], strides = [1, 1]} : vector<8x1536xf32> to vector<8x128xf32>
    %12 = arith.mulf %10, %11 : vector<8x128xf32>
    %13 = vector.extract_strided_slice %7 {offsets = [0, 384], sizes = [8, 128], strides = [1, 1]} : vector<8x1536xf32> to vector<8x128xf32>
    %14 = vector.extract_strided_slice %7 {offsets = [0, 512], sizes = [8, 128], strides = [1, 1]} : vector<8x1536xf32> to vector<8x128xf32>
    %15 = arith.mulf %13, %14 : vector<8x128xf32>
    %16 = vector.extract_strided_slice %7 {offsets = [0, 640], sizes = [8, 128], strides = [1, 1]} : vector<8x1536xf32> to vector<8x128xf32>
    %17 = arith.mulf %15, %16 : vector<8x128xf32>
    %18 = vector.extract_strided_slice %7 {offsets = [0, 768], sizes = [8, 128], strides = [1, 1]} : vector<8x1536xf32> to vector<8x128xf32>
    %19 = vector.extract_strided_slice %7 {offsets = [0, 896], sizes = [8, 128], strides = [1, 1]} : vector<8x1536xf32> to vector<8x128xf32>
    %20 = arith.mulf %18, %19 : vector<8x128xf32>
    %21 = vector.extract_strided_slice %7 {offsets = [0, 1024], sizes = [8, 128], strides = [1, 1]} : vector<8x1536xf32> to vector<8x128xf32>
    %22 = arith.mulf %20, %21 : vector<8x128xf32>
    %23 = vector.extract_strided_slice %7 {offsets = [0, 1152], sizes = [8, 128], strides = [1, 1]} : vector<8x1536xf32> to vector<8x128xf32>
    %24 = vector.extract_strided_slice %7 {offsets = [0, 1280], sizes = [8, 128], strides = [1, 1]} : vector<8x1536xf32> to vector<8x128xf32>
    %25 = arith.mulf %23, %24 : vector<8x128xf32>
    %26 = vector.extract_strided_slice %7 {offsets = [0, 1408], sizes = [8, 128], strides = [1, 1]} : vector<8x1536xf32> to vector<8x128xf32>
    %27 = arith.mulf %25, %26 : vector<8x128xf32>
    %28 = arith.maximumf %12, %17 : vector<8x128xf32>
    %29 = arith.maximumf %28, %22 : vector<8x128xf32>
    %30 = arith.maximumf %29, %27 : vector<8x128xf32>
    %31 = arith.subf %12, %30 : vector<8x128xf32>
    %cst_5 = arith.constant 1.000000e+02 : f32
    %32 = vector.broadcast %cst_5 : f32 to vector<8x128xf32>
    %33 = arith.mulf %31, %32 : vector<8x128xf32>
    %34 = math.exp %33 : vector<8x128xf32>
    %35 = arith.subf %17, %30 : vector<8x128xf32>
    %cst_6 = arith.constant 1.000000e+02 : f32
    %36 = vector.broadcast %cst_6 : f32 to vector<8x128xf32>
    %37 = arith.mulf %35, %36 : vector<8x128xf32>
    %38 = math.exp %37 : vector<8x128xf32>
    %39 = arith.addf %34, %38 : vector<8x128xf32>
    %40 = arith.subf %22, %30 : vector<8x128xf32>
    %cst_7 = arith.constant 1.000000e+02 : f32
    %41 = vector.broadcast %cst_7 : f32 to vector<8x128xf32>
    %42 = arith.mulf %40, %41 : vector<8x128xf32>
    %43 = math.exp %42 : vector<8x128xf32>
    %44 = arith.addf %39, %43 : vector<8x128xf32>
    %45 = arith.subf %27, %30 : vector<8x128xf32>
    %cst_8 = arith.constant 1.000000e+02 : f32
    %46 = vector.broadcast %cst_8 : f32 to vector<8x128xf32>
    %47 = arith.mulf %45, %46 : vector<8x128xf32>
    %48 = math.exp %47 : vector<8x128xf32>
    %49 = arith.addf %44, %48 : vector<8x128xf32>
    %50 = math.log %49 : vector<8x128xf32>
    %cst_9 = arith.constant 0.00999999977 : f32
    %51 = vector.broadcast %cst_9 : f32 to vector<8x128xf32>
    %52 = arith.mulf %51, %50 : vector<8x128xf32>
    %53 = arith.addf %30, %52 : vector<8x128xf32>
    %54 = vector.shape_cast %53 : vector<8x128xf32> to vector<1x8x128xf32>
    %cst_10 = arith.constant dense<0xFF800000> : vector<1xf32>
    %55 = vector.multi_reduction <maximumf>, %54, %cst_10 [1, 2] : vector<1x8x128xf32> to vector<1xf32>
    %56 = vector.shape_cast %55 : vector<1xf32> to vector<1x1x1xf32>
    %57 = vector.extract %56[0, 0, 0] : f32 from vector<1x1x1xf32>
    %58 = vector.broadcast %57 : f32 to vector<1x1xf32>
    %cst_11 = arith.constant 1.000000e+00 : f32
    %59 = vector.broadcast %cst_11 : f32 to vector<1x1xf32>
    %60 = arith.cmpf ogt, %58, %59 : vector<1x1xf32>
    %61 = tpu.reciprocal %58 {approx = true} : vector<1x1xf32> -> vector<1x1xf32>
    %cst_12 = arith.constant 1.000000e+00 : f32
    %62 = vector.broadcast %cst_12 : f32 to vector<1x1xf32>
    %63 = arith.select %60, %61, %62 : vector<1x1xi1>, vector<1x1xf32>
    %64 = vector.broadcast %63 : vector<1x1xf32> to vector<8x128xf32>
    %65 = arith.mulf %53, %64 : vector<8x128xf32>
    %c1 = arith.constant 1 : index
    %c0_13 = arith.constant 0 : index
    %c0_14 = arith.constant 0 : index
    %66 = vector.load %arg6[%c1, %c0_13, %c0_14] : memref<2x128x1536xbf16, #tpu.memory_space<vmem>>, vector<1x128x1536xbf16>
    %67 = vector.shape_cast %66 : vector<1x128x1536xbf16> to vector<128x1536xbf16>
    %cst_15 = arith.constant dense<0.000000e+00> : vector<8x1536xf32>
    %68 = tpu.matmul %4, %67, %cst_15 {dimension_numbers = #tpu.dot_dimension_numbers<[1], [0], [0], [1], [0, 0, 1, 1], [], []>} : vector<8x128xbf16>, vector<128x1536xbf16>, vector<8x1536xf32> -> vector<8x1536xf32>
    %69 = vector.extract_strided_slice %68 {offsets = [0, 0], sizes = [8, 128], strides = [1, 1]} : vector<8x1536xf32> to vector<8x128xf32>
    %70 = vector.extract_strided_slice %68 {offsets = [0, 128], sizes = [8, 128], strides = [1, 1]} : vector<8x1536xf32> to vector<8x128xf32>
    %71 = arith.mulf %69, %70 : vector<8x128xf32>
    %72 = vector.extract_strided_slice %68 {offsets = [0, 256], sizes = [8, 128], strides = [1, 1]} : vector<8x1536xf32> to vector<8x128xf32>
    %73 = arith.mulf %71, %72 : vector<8x128xf32>
    %74 = vector.extract_strided_slice %68 {offsets = [0, 384], sizes = [8, 128], strides = [1, 1]} : vector<8x1536xf32> to vector<8x128xf32>
    %75 = vector.extract_strided_slice %68 {offsets = [0, 512], sizes = [8, 128], strides = [1, 1]} : vector<8x1536xf32> to vector<8x128xf32>
    %76 = arith.mulf %74, %75 : vector<8x128xf32>
    %77 = vector.extract_strided_slice %68 {offsets = [0, 640], sizes = [8, 128], strides = [1, 1]} : vector<8x1536xf32> to vector<8x128xf32>
    %78 = arith.mulf %76, %77 : vector<8x128xf32>
    %79 = vector.extract_strided_slice %68 {offsets = [0, 768], sizes = [8, 128], strides = [1, 1]} : vector<8x1536xf32> to vector<8x128xf32>
    %80 = vector.extract_strided_slice %68 {offsets = [0, 896], sizes = [8, 128], strides = [1, 1]} : vector<8x1536xf32> to vector<8x128xf32>
    %81 = arith.mulf %79, %80 : vector<8x128xf32>
    %82 = vector.extract_strided_slice %68 {offsets = [0, 1024], sizes = [8, 128], strides = [1, 1]} : vector<8x1536xf32> to vector<8x128xf32>
    %83 = arith.mulf %81, %82 : vector<8x128xf32>
    %84 = vector.extract_strided_slice %68 {offsets = [0, 1152], sizes = [8, 128], strides = [1, 1]} : vector<8x1536xf32> to vector<8x128xf32>
    %85 = vector.extract_strided_slice %68 {offsets = [0, 1280], sizes = [8, 128], strides = [1, 1]} : vector<8x1536xf32> to vector<8x128xf32>
    %86 = arith.mulf %84, %85 : vector<8x128xf32>
    %87 = vector.extract_strided_slice %68 {offsets = [0, 1408], sizes = [8, 128], strides = [1, 1]} : vector<8x1536xf32> to vector<8x128xf32>
    %88 = arith.mulf %86, %87 : vector<8x128xf32>
    %89 = arith.maximumf %73, %78 : vector<8x128xf32>
    %90 = arith.maximumf %89, %83 : vector<8x128xf32>
    %91 = arith.maximumf %90, %88 : vector<8x128xf32>
    %92 = arith.subf %73, %91 : vector<8x128xf32>
    %cst_16 = arith.constant 1.000000e+02 : f32
    %93 = vector.broadcast %cst_16 : f32 to vector<8x128xf32>
    %94 = arith.mulf %92, %93 : vector<8x128xf32>
    %95 = math.exp %94 : vector<8x128xf32>
    %96 = arith.subf %78, %91 : vector<8x128xf32>
    %cst_17 = arith.constant 1.000000e+02 : f32
    %97 = vector.broadcast %cst_17 : f32 to vector<8x128xf32>
    %98 = arith.mulf %96, %97 : vector<8x128xf32>
    %99 = math.exp %98 : vector<8x128xf32>
    %100 = arith.addf %95, %99 : vector<8x128xf32>
    %101 = arith.subf %83, %91 : vector<8x128xf32>
    %cst_18 = arith.constant 1.000000e+02 : f32
    %102 = vector.broadcast %cst_18 : f32 to vector<8x128xf32>
    %103 = arith.mulf %101, %102 : vector<8x128xf32>
    %104 = math.exp %103 : vector<8x128xf32>
    %105 = arith.addf %100, %104 : vector<8x128xf32>
    %106 = arith.subf %88, %91 : vector<8x128xf32>
    %cst_19 = arith.constant 1.000000e+02 : f32
    %107 = vector.broadcast %cst_19 : f32 to vector<8x128xf32>
    %108 = arith.mulf %106, %107 : vector<8x128xf32>
    %109 = math.exp %108 : vector<8x128xf32>
    %110 = arith.addf %105, %109 : vector<8x128xf32>
    %111 = math.log %110 : vector<8x128xf32>
    %cst_20 = arith.constant 0.00999999977 : f32
    %112 = vector.broadcast %cst_20 : f32 to vector<8x128xf32>
    %113 = arith.mulf %112, %111 : vector<8x128xf32>
    %114 = arith.addf %91, %113 : vector<8x128xf32>
    %115 = vector.shape_cast %114 : vector<8x128xf32> to vector<1x8x128xf32>
    %cst_21 = arith.constant dense<0xFF800000> : vector<1xf32>
    %116 = vector.multi_reduction <maximumf>, %115, %cst_21 [1, 2] : vector<1x8x128xf32> to vector<1xf32>
    %117 = vector.shape_cast %116 : vector<1xf32> to vector<1x1x1xf32>
    %118 = vector.extract %117[0, 0, 0] : f32 from vector<1x1x1xf32>
    %119 = vector.broadcast %118 : f32 to vector<1x1xf32>
    %cst_22 = arith.constant 1.000000e+00 : f32
    %120 = vector.broadcast %cst_22 : f32 to vector<1x1xf32>
    %121 = arith.cmpf ogt, %119, %120 : vector<1x1xf32>
    %122 = tpu.reciprocal %119 {approx = true} : vector<1x1xf32> -> vector<1x1xf32>
    %cst_23 = arith.constant 1.000000e+00 : f32
    %123 = vector.broadcast %cst_23 : f32 to vector<1x1xf32>
    %124 = arith.select %121, %122, %123 : vector<1x1xi1>, vector<1x1xf32>
    %125 = vector.broadcast %124 : vector<1x1xf32> to vector<8x128xf32>
    %126 = arith.mulf %114, %125 : vector<8x128xf32>
    %c0_24 = arith.constant 0 : index
    %c0_25 = arith.constant 0 : index
    %127 = memref.load %arg3[%c0_24, %c0_25] : memref<2x2xf32, #tpu.memory_space<smem>>
    %128 = vector.broadcast %127 : f32 to vector<8x128xf32>
    %129 = arith.mulf %128, %65 : vector<8x128xf32>
    %c0_26 = arith.constant 0 : index
    %c1_27 = arith.constant 1 : index
    %130 = memref.load %arg3[%c0_26, %c1_27] : memref<2x2xf32, #tpu.memory_space<smem>>
    %131 = vector.broadcast %130 : f32 to vector<8x128xf32>
    %132 = arith.mulf %131, %126 : vector<8x128xf32>
    %133 = arith.addf %129, %132 : vector<8x128xf32>
    %c1_28 = arith.constant 1 : index
    %c0_29 = arith.constant 0 : index
    %134 = memref.load %arg3[%c1_28, %c0_29] : memref<2x2xf32, #tpu.memory_space<smem>>
    %135 = vector.broadcast %134 : f32 to vector<8x128xf32>
    %136 = arith.mulf %135, %65 : vector<8x128xf32>
    %c1_30 = arith.constant 1 : index
    %c1_31 = arith.constant 1 : index
    %137 = memref.load %arg3[%c1_30, %c1_31] : memref<2x2xf32, #tpu.memory_space<smem>>
    %138 = vector.broadcast %137 : f32 to vector<8x128xf32>
    %139 = arith.mulf %138, %126 : vector<8x128xf32>
    %140 = arith.addf %136, %139 : vector<8x128xf32>
    %141 = arith.maximumf %133, %140 : vector<8x128xf32>
    %142 = arith.subf %133, %141 : vector<8x128xf32>
    %cst_32 = arith.constant 1.000000e+02 : f32
    %143 = vector.broadcast %cst_32 : f32 to vector<8x128xf32>
    %144 = arith.mulf %142, %143 : vector<8x128xf32>
    %145 = math.exp %144 : vector<8x128xf32>
    %146 = arith.subf %140, %141 : vector<8x128xf32>
    %cst_33 = arith.constant 1.000000e+02 : f32
    %147 = vector.broadcast %cst_33 : f32 to vector<8x128xf32>
    %148 = arith.mulf %146, %147 : vector<8x128xf32>
    %149 = math.exp %148 : vector<8x128xf32>
    %150 = arith.addf %145, %149 : vector<8x128xf32>
    %151 = math.log %150 : vector<8x128xf32>
    %cst_34 = arith.constant 0.00999999977 : f32
    %152 = vector.broadcast %cst_34 : f32 to vector<8x128xf32>
    %153 = arith.mulf %152, %151 : vector<8x128xf32>
    %154 = arith.addf %141, %153 : vector<8x128xf32>
    %155 = vector.shape_cast %154 : vector<8x128xf32> to vector<1x8x128xf32>
    %cst_35 = arith.constant dense<0xFF800000> : vector<1xf32>
    %156 = vector.multi_reduction <maximumf>, %155, %cst_35 [1, 2] : vector<1x8x128xf32> to vector<1xf32>
    %157 = vector.shape_cast %156 : vector<1xf32> to vector<1x1x1xf32>
    %158 = vector.extract %157[0, 0, 0] : f32 from vector<1x1x1xf32>
    %159 = vector.broadcast %158 : f32 to vector<1x1xf32>
    %cst_36 = arith.constant 1.000000e+00 : f32
    %160 = vector.broadcast %cst_36 : f32 to vector<1x1xf32>
    %161 = arith.cmpf ogt, %159, %160 : vector<1x1xf32>
    %162 = tpu.reciprocal %159 {approx = true} : vector<1x1xf32> -> vector<1x1xf32>
    %cst_37 = arith.constant 1.000000e+00 : f32
    %163 = vector.broadcast %cst_37 : f32 to vector<1x1xf32>
    %164 = arith.select %161, %162, %163 : vector<1x1xi1>, vector<1x1xf32>
    %165 = vector.broadcast %164 : vector<1x1xf32> to vector<8x128xf32>
    %166 = arith.mulf %154, %165 : vector<8x128xf32>
    %167 = arith.maximumf %3, %166 : vector<8x128xf32>
    %168 = arith.subf %3, %167 : vector<8x128xf32>
    %cst_38 = arith.constant 1.000000e+02 : f32
    %169 = vector.broadcast %cst_38 : f32 to vector<8x128xf32>
    %170 = arith.mulf %168, %169 : vector<8x128xf32>
    %171 = math.exp %170 : vector<8x128xf32>
    %172 = arith.subf %166, %167 : vector<8x128xf32>
    %cst_39 = arith.constant 1.000000e+02 : f32
    %173 = vector.broadcast %cst_39 : f32 to vector<8x128xf32>
    %174 = arith.mulf %172, %173 : vector<8x128xf32>
    %175 = math.exp %174 : vector<8x128xf32>
    %176 = arith.addf %171, %175 : vector<8x128xf32>
    %177 = math.log %176 : vector<8x128xf32>
    %cst_40 = arith.constant 0.00999999977 : f32
    %178 = vector.broadcast %cst_40 : f32 to vector<8x128xf32>
    %179 = arith.mulf %178, %177 : vector<8x128xf32>
    %180 = arith.addf %167, %179 : vector<8x128xf32>
    %181 = vector.shape_cast %180 : vector<8x128xf32> to vector<1x8x128xf32>
    %cst_41 = arith.constant dense<0xFF800000> : vector<1xf32>
    %182 = vector.multi_reduction <maximumf>, %181, %cst_41 [1, 2] : vector<1x8x128xf32> to vector<1xf32>
    %183 = vector.shape_cast %182 : vector<1xf32> to vector<1x1x1xf32>
    %184 = vector.extract %183[0, 0, 0] : f32 from vector<1x1x1xf32>
    %185 = vector.broadcast %184 : f32 to vector<1x1xf32>
    %cst_42 = arith.constant 1.000000e+00 : f32
    %186 = vector.broadcast %cst_42 : f32 to vector<1x1xf32>
    %187 = arith.cmpf ogt, %185, %186 : vector<1x1xf32>
    %188 = tpu.reciprocal %185 {approx = true} : vector<1x1xf32> -> vector<1x1xf32>
    %cst_43 = arith.constant 1.000000e+00 : f32
    %189 = vector.broadcast %cst_43 : f32 to vector<1x1xf32>
    %190 = arith.select %187, %188, %189 : vector<1x1xi1>, vector<1x1xf32>
    %191 = vector.broadcast %190 : vector<1x1xf32> to vector<8x128xf32>
    %192 = arith.mulf %180, %191 : vector<8x128xf32>
    %c0_44 = arith.constant 0 : index
    %c0_45 = arith.constant 0 : index
    %193 = vector.load %arg5[%c0_44, %c0_45] : memref<8x128xf32, #tpu.memory_space<vmem>>, vector<8x128xf32>
    tpu.vector_store %arg5[%c0_44, %c0_45], %192 {strides = array<i32>} : memref<8x128xf32, #tpu.memory_space<vmem>>, vector<8x128xf32>,
    %c2_i32 = arith.constant 2 : i32
    %194 = arith.cmpi eq, %arg0, %c2_i32 : i32
    %195 = arith.extui %194 : i1 to i32
    %c0_i32_46 = arith.constant 0 : i32
    %196 = arith.cmpi ne, %195, %c0_i32_46 : i32
    scf.if %196 {
      %c0_47 = arith.constant 0 : index
      %c0_48 = arith.constant 0 : index
      %197 = vector.load %arg4[%c0_47, %c0_48] : memref<8x128xf32, #tpu.memory_space<vmem>>, vector<8x128xf32>
      tpu.vector_store %arg4[%c0_47, %c0_48], %192 {strides = array<i32>} : memref<8x128xf32, #tpu.memory_space<vmem>>, vector<8x128xf32>,
    } else {
    }
    return
  }
  func.func @transform_0(%arg0: i32) -> (i32, i32) {
    %c0_i32 = arith.constant 0 : i32
    %c0_i32_0 = arith.constant 0 : i32
    %c0_i32_1 = arith.constant 0 : i32
    return %c0_i32, %c0_i32_0 : i32, i32
  }
  func.func @transform_1(%arg0: i32) -> (i32, i32, i32) {
    %c0_i32 = arith.constant 0 : i32
    %c0_i32_0 = arith.constant 0 : i32
    %c0_i32_1 = arith.constant 0 : i32
    %c0_i32_2 = arith.constant 0 : i32
    return %c0_i32, %c0_i32_0, %c0_i32_1 : i32, i32, i32
  }
  func.func @transform_2(%arg0: i32) -> (i32, i32) {
    %c0_i32 = arith.constant 0 : i32
    %c0_i32_0 = arith.constant 0 : i32
    %c0_i32_1 = arith.constant 0 : i32
    return %c0_i32, %c0_i32_0 : i32, i32
  }
  func.func @transform_3(%arg0: i32) -> (i32, i32) {
    %c0_i32 = arith.constant 0 : i32
    %c0_i32_0 = arith.constant 0 : i32
    %c0_i32_1 = arith.constant 0 : i32
    return %c0_i32, %c0_i32_0 : i32, i32
  }
}

</mosaic_0001>

<bundles_post_ra>
// kernel: tpu_custom_call.1
= control target key start
LH: loop header
LB: loop body
LE: loop exit
PB: predicated region body
PF: predicated region fallthrough
CT: control target
= control target key end

     0   :  { %8 = vsyncpa [#allocation5], 0  ;;  %s3723_s0 = inlined_call_operand.hbm [shape: f32[8,128], index: 0, kind: input, shape index: {}]   ;;  %s3724_s1 = inlined_call_operand.hbm [shape: s32[2,1,1536], index: 1, kind: input, shape index: {}]   ;;  %s3725_s2 = inlined_call_operand.vmem [shape: f32[2,2], index: 2, kind: input, shape index: {}]   ;;  %s3726_s3 = inlined_call_operand.hbm [shape: f32[8,128], index: 3, kind: output, shape index: {}]  }
   0x1   :  { %9 = vsyncpa [#allocation9], 0 }
   0x2   :  { %10 = vsyncpa [#allocation7], 0 }
   0x3   :  { %11 = vsyncpa [#allocation6], 0  ;;  %s2694_s12 = smov 0  }
   0x4 LB: > { %s2700_s13 = sadd.s32 4294967295, %s2664_s12   ;;  %p2405_p0 = scmp.ge.s32.totalorder %s2664_s12, 1  ;;  %s2664_s12 = sphi %s2694_s12, %s17_s12  }
   0x5   : > { %p106_p1 = scmp.lt.s32.totalorder %s2664_s12, 4  ;;  %p3727_p3 = scmp.eq.s32.totalorder %s2700_s13, 0 }
   0x6   : > { %s2666_s14 = smov [#allocation4]   ;;  %s2667_s17 = smov [#allocation8]  }
   0x7   : > { %s119_s15 = sshll.u32 %s2666_s14, 4  ;;  %p2706_p4 = pnand %p2405_p0, %p106_p1  ;;  %s120_s15 = int_to_ptr.vmem [resolvable:$true] %s119_s15 }
   0x8   : > { %s129_s18 = sshll.u32 %s2667_s17, 4  ;;  %s143_s21 = sshll.u32 %s3725_s2, 4  ;;  %s2721_s18 = int_to_ptr.vmem [resolvable:$true] %s129_s18  ;;  %s2723_s21 = int_to_ptr.vmem [resolvable:$true] %s143_s21 }
   0x9   : > { %s3729_s16 = scalar_select %p2706_p4, 1, 0 }
   0xa   : > { %p2470_p5 = pneg %p2706_p4  ;;  %s2545_s25 = scalar_lea.hbm %s3723_s0, 128 }
   0xb   : > { %p2546_p7 = scmp.ne.s32.totalorder %s3723_s0, %s2545_s25  ;;  %p2552_p11 = scmp.lt.u32.totalorder %s2545_s25, %s3723_s0 }
   0xc   : > { %p2717_p6 = pnand %p3727_p3, %p2470_p5 }
   0xe   : > { %p2733_p8 = pneg %p2717_p6 }
  0x10   : > { %p2548_p9 = pnand %p2733_p8, %p2546_p7 }
  0x12   : > { %p2549_p10 = pneg %p2548_p9 }
  0x14   : > { %p2554_p12 = pnand %p2552_p11, %p2549_p10 }
  0x16   : > { %2557 = shalt.err (!%p2554_p12)
}
  0x17   : > { %s2558_s4 = scalar_lea.vmem %s120_s15, 128  ;;  %p2566_p5 = scmp.lt.s32.totalorder %s120_s15, %s120_s15 }
  0x18   : > { %p2559_p13 = scmp.ne.s32.totalorder %s120_s15, %s2558_s4  ;;  %p2567_p2 = scmp.lt.s32.totalorder %s2558_s4, %s2558_s4 }
  0x1a   : > { %p2561_p0 = pnand %p2559_p13, %p2733_p8  ;;  %p2568_p3 = por %p2567_p2, %p2566_p5 }
  0x1c   : > { %p2562_p1 = pneg %p2561_p0 }
  0x1e   : > { %p2569_p4 = pnand %p2568_p3, %p2562_p1 }
  0x20   : > { %2572 = shalt.err (!%p2569_p4)
}
  0x21   : > { %2473 = dma.hbm_to_vmem [thread:$0]  (!%p2717_p6), %s3723_s0, 128, %s120_s15, [#allocation5]  }
  0x22   : > { %s2573_s9 = scalar_lea.hbm %s3724_s1, 384 }
  0x23   : > { %p2574_p7 = scmp.ne.s32.totalorder %s3724_s1, %s2573_s9  ;;  %p2580_p3 = scmp.lt.u32.totalorder %s2573_s9, %s3724_s1 }
  0x25   : > { %p2576_p9 = pnand %p2574_p7, %p2733_p8 }
  0x27   : > { %p2577_p2 = pneg %p2576_p9 }
  0x29   : > { %p2582_p4 = pnand %p2580_p3, %p2577_p2 }
  0x2b   : > { %2585 = shalt.err (!%p2582_p4)
}
  0x2c   : > { %s2586_s15 = scalar_lea.vmem %s2721_s18, 384  ;;  %p2594_p13 = scmp.lt.s32.totalorder %s2721_s18, %s2721_s18 }
  0x2d   : > { %p2587_p10 = scmp.ne.s32.totalorder %s2721_s18, %s2586_s15  ;;  %p2595_p0 = scmp.lt.s32.totalorder %s2586_s15, %s2586_s15 }
  0x2f   : > { %p2589_p11 = pnand %p2587_p10, %p2733_p8  ;;  %p2596_p1 = por %p2595_p0, %p2594_p13 }
  0x31   : > { %p2590_p12 = pneg %p2589_p11 }
  0x33   : > { %p2597_p5 = pnand %p2596_p1, %p2590_p12 }
  0x35   : > { %2600 = shalt.err (!%p2597_p5)
}
  0x36   : > { %s2668_s19 = smov 192   ;;  %s2669_s20 = smov 12  }
  0x37   : > { %2476 = dma.hbm_to_vmem [thread:$0]  (!%p2717_p6), %s3724_s1, 384, %s2721_s18, [#allocation9], %s2668_s19, %s2668_s19, %s2669_s20  }
  0x38   : > { %s2601_s25 = scalar_lea.vmem %s2723_s21, 32  ;;  %p2609_p3 = scmp.lt.s32.totalorder %s2723_s21, %s2723_s21 }
  0x39   : > { %p2602_p7 = scmp.ne.s32.totalorder %s2723_s21, %s2601_s25  ;;  %p2610_p4 = scmp.lt.s32.totalorder %s2601_s25, %s2601_s25 }
  0x3b   : > { %p2604_p9 = pnand %p2602_p7, %p2733_p8  ;;  %p2611_p10 = por %p2610_p4, %p2609_p3 }
  0x3d   : > { %p2605_p2 = pneg %p2604_p9 }
  0x3f   : > { %p2612_p11 = pnand %p2611_p10, %p2605_p2 }
  0x41   : > { %2615 = shalt.err (!%p2612_p11)
}
  0x42   : > { %s2670_s26 = smov [#allocation10]   ;;  %p3732_p12 = scmp.ne.s32.totalorder %s3729_s16, 0 }
  0x43   : > { %2479 = dma.vmem_to_smem (!%p2717_p6), %s2723_s21, 32, %s2670_s26, [#allocation7]  }
  0x44   : > { %156 = sbr.rel (%p3732_p12) target bundleno = 1556 (0x614), region = 32  ;;  %p3733_p13 = scmp.eq.s32.totalorder (!%p3732_p12), %s2700_s13, 0 }
  0x4b   : > { %2647 = dma.done.wait (%p3733_p13), [#allocation5], 128   ;;  %p3734_p8 = pmov %p3733_p13 }
  0x4d   : > { %2649 = vsyncadd (%p3734_p8), [#allocation5], 4294967168  ;;  %p3735_p0 = pmov %p3734_p8 }
  0x4f   : > { %2651 = dma.done.wait (%p3735_p0), [#allocation9], 384   ;;  %p3736_p1 = pmov %p3735_p0 }
  0x50   : > { %p3737_p5 = pmov %p3735_p0 }
  0x51   : > { %2653 = vsyncadd (%p3736_p1), [#allocation9], 4294966912 }
  0x52   : > { %2655 = dma.done.wait (%p3737_p5), [#allocation7], 32   ;;  %p3738_p6 = pmov %p3735_p0 }
  0x54   : > { %2657 = vsyncadd (%p3738_p6), [#allocation7], 4294967264 }
  0x55   : > { %170 = sfence }
  0x56   : > { %p3739_p7 = scmp.ne.s32.totalorder %s2700_s13, 0 }
  0x57   : > { %v184_v0 = vlaneseq (!%p3739_p7)  ;;  %v2797_v1 = vld [vmem:[#allocation8] ss:$0 sm:$0xff] (!%p3739_p7)  ;;  %v2671_v6 = vmov (!%p3739_p7), 0.0   ;;  %v2877_v32 = vld [vmem:[#allocation8 + $0x1] ss:$0 sm:$0xff] (!%p3739_p7) }
  0x58   : > { %183 = sbr.rel (%p3739_p7) target bundleno = 338 (0x152), region = 48  ;;  %v2416_v60 = vld [vmem:[#allocation8 + $0x2] ss:$0 sm:$0xff] (!%p3739_p7) }
  0x59   : > { %v2799_v2 = vshrl.u32 (!%p3739_p7), %v184_v0, 7 }
  0x5b   : > { %v2802_v3 = vadd.s32 (!%p3739_p7), 8, %v2799_v2  ;;  %vm206_vm0 = vcmp.eq.s32.totalorder (!%p3739_p7), %v2797_v1, %v2799_v2  ;;  %v2807_v4 = vadd.s32 (!%p3739_p7), 16, %v2799_v2  ;;  %v2810_v5 = vadd.s32 (!%p3739_p7), 24, %v2799_v2 }
  0x5c   : > { %v222_v7 = vsel (!%p3739_p7), %vm206_vm0, 1.0, %v2671_v6  ;;  %v2814_v8 = vadd.s32 (!%p3739_p7), 32, %v2799_v2  ;;  %v2817_v9 = vadd.s32 (!%p3739_p7), 40, %v2799_v2  ;;  %v2820_v10 = vadd.s32 (!%p3739_p7), 48, %v2799_v2 }
  0x5d   : > { %vm207_vm1 = vcmp.eq.s32.totalorder (!%p3739_p7), %v2797_v1, %v2802_v3  ;;  %vm208_vm2 = vcmp.eq.s32.totalorder (!%p3739_p7), %v2797_v1, %v2807_v4  ;;  %vm209_vm3 = vcmp.eq.s32.totalorder (!%p3739_p7), %v2797_v1, %v2810_v5  ;;  %v2829_v11 = vadd.s32 (!%p3739_p7), 56, %v2799_v2 }
  0x5e   : > { %v223_v12 = vsel (!%p3739_p7), %vm207_vm1, 1.0, %v2671_v6  ;;  %v224_v13 = vsel (!%p3739_p7), %vm208_vm2, 1.0, %v2671_v6  ;;  %v225_v14 = vsel (!%p3739_p7), %vm209_vm3, 1.0, %v2671_v6  ;;  %vm210_vm4 = vcmp.eq.s32.totalorder (!%p3739_p7), %v2797_v1, %v2814_v8 }
  0x5f   : > { %v238_v15 = vpack.c.bf16 %v223_v12, %v222_v7  ;;  %v239_v16 = vpack.c.bf16 %v225_v14, %v224_v13  ;;  %vm211_vm5 = vcmp.eq.s32.totalorder %v2797_v1, %v2817_v9  ;;  %v226_v17 = vsel %vm210_vm4, 1.0, %v2671_v6 }
  0x60   : > { %v227_v18 = vsel %vm211_vm5, 1.0, %v2671_v6  ;;  %vm212_vm6 = vcmp.eq.s32.totalorder %v2797_v1, %v2820_v10  ;;  %vm213_vm7 = vcmp.eq.s32.totalorder %v2797_v1, %v2829_v11  ;;  %v2845_v19 = vadd.s32 64, %v2799_v2 }
  0x61   : > { %246 = vst [vmem:[#allocation3] sm:$0xff] %v238_v15  ;;  %247 = vst [vmem:[#allocation3 + $0x60] sm:$0xff] %v239_v16  ;;  %v240_v20 = vpack.c.bf16 %v227_v18, %v226_v17  ;;  %v228_v21 = vsel %vm212_vm6, 1.0, %v2671_v6  ;;  %v229_v22 = vsel %vm213_vm7, 1.0, %v2671_v6  ;;  %v2850_v23 = vadd.s32 72, %v2799_v2 }
  0x62   : > { %v241_v24 = vpack.c.bf16 %v229_v22, %v228_v21  ;;  %vm214_vm8 = vcmp.eq.s32.totalorder %v2797_v1, %v2845_v19  ;;  %v2855_v25 = vadd.s32 80, %v2799_v2  ;;  %v2858_v26 = vadd.s32 88, %v2799_v2 }
  0x63   : > { %248 = vst [vmem:[#allocation3 + $0xc0] sm:$0xff] %v240_v20  ;;  %vm215_vm9 = vcmp.eq.s32.totalorder %v2797_v1, %v2850_v23  ;;  %v230_v27 = vsel %vm214_vm8, 1.0, %v2671_v6  ;;  %v2864_v28 = vadd.s32 96, %v2799_v2  ;;  %v2867_v29 = vadd.s32 104, %v2799_v2 }
  0x64   : > { %249 = vst [vmem:[#allocation3 + $0x120] sm:$0xff] %v241_v24  ;;  %v231_v30 = vsel %vm215_vm9, 1.0, %v2671_v6  ;;  %vm216_vm10 = vcmp.eq.s32.totalorder %v2797_v1, %v2855_v25  ;;  %vm217_vm11 = vcmp.eq.s32.totalorder %v2797_v1, %v2858_v26  ;;  %v2875_v31 = vadd.s32 112, %v2799_v2 }
  0x65   : > { %v242_v33 = vpack.c.bf16 %v231_v30, %v230_v27  ;;  %v232_v34 = vsel %vm216_vm10, 1.0, %v2671_v6  ;;  %v233_v35 = vsel %vm217_vm11, 1.0, %v2671_v6  ;;  %vm218_vm12 = vcmp.eq.s32.totalorder %v2797_v1, %v2864_v28 }
  0x66   : > { %v243_v36 = vpack.c.bf16 %v233_v35, %v232_v34  ;;  %vm219_vm13 = vcmp.eq.s32.totalorder %v2797_v1, %v2867_v29  ;;  %v234_v37 = vsel %vm218_vm12, 1.0, %v2671_v6  ;;  %v2887_v38 = vadd.s32 120, %v2799_v2 }
  0x67   : > { %250 = vst [vmem:[#allocation3 + $0x180] sm:$0xff] %v242_v33  ;;  %v235_v39 = vsel %vm219_vm13, 1.0, %v2671_v6  ;;  %vm220_vm14 = vcmp.eq.s32.totalorder %v2797_v1, %v2875_v31  ;;  %vm259_vm15 = vcmp.eq.s32.totalorder %v2877_v32, %v2799_v2  ;;  %vm260_vm0 = vcmp.eq.s32.totalorder %v2877_v32, %v2802_v3 }
  0x68   : > { %251 = vst [vmem:[#allocation3 + $0x1e0] sm:$0xff] %v243_v36  ;;  %v244_v40 = vpack.c.bf16 %v235_v39, %v234_v37  ;;  %vm221_vm1 = vcmp.eq.s32.totalorder %v2797_v1, %v2887_v38  ;;  %v236_v41 = vsel %vm220_vm14, 1.0, %v2671_v6  ;;  %v275_v42 = vsel %vm259_vm15, 1.0, %v2671_v6  ;;  %v2417_v37 = vld [vmem:[#allocation8 + $0x3] ss:$0 sm:$0xff] }
  0x69   : > { %v237_v43 = vsel %vm221_vm1, 1.0, %v2671_v6  ;;  %v276_v44 = vsel %vm260_vm0, 1.0, %v2671_v6  ;;  %vm261_vm2 = vcmp.eq.s32.totalorder %v2877_v32, %v2807_v4  ;;  %vm262_vm3 = vcmp.eq.s32.totalorder %v2877_v32, %v2810_v5 }
  0x6a   : > { %252 = vst [vmem:[#allocation3 + $0x240] sm:$0xff] %v244_v40  ;;  %v245_v45 = vpack.c.bf16 %v237_v43, %v236_v41  ;;  %v291_v46 = vpack.c.bf16 %v276_v44, %v275_v42  ;;  %v277_v47 = vsel %vm261_vm2, 1.0, %v2671_v6  ;;  %v278_v48 = vsel %vm262_vm3, 1.0, %v2671_v6 }
  0x6b   : > { %v292_v49 = vpack.c.bf16 %v278_v48, %v277_v47  ;;  %vm263_vm4 = vcmp.eq.s32.totalorder %v2877_v32, %v2814_v8  ;;  %vm264_vm5 = vcmp.eq.s32.totalorder %v2877_v32, %v2817_v9  ;;  %vm265_vm6 = vcmp.eq.s32.totalorder %v2877_v32, %v2820_v10 }
  0x6c   : > { %253 = vst [vmem:[#allocation3 + $0x2a0] sm:$0xff] %v245_v45  ;;  %299 = vst [vmem:[#allocation3 + $0x8] sm:$0xff] %v291_v46  ;;  %v279_v50 = vsel %vm263_vm4, 1.0, %v2671_v6  ;;  %v280_v51 = vsel %vm264_vm5, 1.0, %v2671_v6  ;;  %vm266_vm7 = vcmp.eq.s32.totalorder %v2877_v32, %v2829_v11  ;;  %v281_v52 = vsel %vm265_vm6, 1.0, %v2671_v6 }
  0x6d   : > { %300 = vst [vmem:[#allocation3 + $0x68] sm:$0xff] %v292_v49  ;;  %v293_v53 = vpack.c.bf16 %v280_v51, %v279_v50  ;;  %v282_v54 = vsel %vm266_vm7, 1.0, %v2671_v6  ;;  %vm267_vm8 = vcmp.eq.s32.totalorder %v2877_v32, %v2845_v19  ;;  %vm268_vm9 = vcmp.eq.s32.totalorder %v2877_v32, %v2850_v23 }
  0x6e   : > { %v294_v55 = vpack.c.bf16 %v282_v54, %v281_v52  ;;  %v283_v56 = vsel %vm267_vm8, 1.0, %v2671_v6  ;;  %v284_v57 = vsel %vm268_vm9, 1.0, %v2671_v6  ;;  %vm269_vm10 = vcmp.eq.s32.totalorder %v2877_v32, %v2855_v25 }
  0x6f   : > { %301 = vst [vmem:[#allocation3 + $0xc8] sm:$0xff] %v293_v53  ;;  %v295_v58 = vpack.c.bf16 %v284_v57, %v283_v56  ;;  %vm270_vm11 = vcmp.eq.s32.totalorder %v2877_v32, %v2858_v26  ;;  %v285_v59 = vsel %vm269_vm10, 1.0, %v2671_v6  ;;  %vm271_vm12 = vcmp.eq.s32.totalorder %v2877_v32, %v2864_v28 }
  0x70   : > { %302 = vst [vmem:[#allocation3 + $0x128] sm:$0xff] %v294_v55  ;;  %v286_v61 = vsel %vm270_vm11, 1.0, %v2671_v6  ;;  %vm272_vm13 = vcmp.eq.s32.totalorder %v2877_v32, %v2867_v29  ;;  %v287_v62 = vsel %vm271_vm12, 1.0, %v2671_v6  ;;  %vm273_vm14 = vcmp.eq.s32.totalorder %v2877_v32, %v2875_v31 }
  0x71   : > { %303 = vst [vmem:[#allocation3 + $0x188] sm:$0xff] %v295_v58  ;;  %v296_v63 = vpack.c.bf16 %v286_v61, %v285_v59  ;;  %v288_v0 = vsel %vm272_vm13, 1.0, %v2671_v6  ;;  %vm274_vm15 = vcmp.eq.s32.totalorder %v2877_v32, %v2887_v38  ;;  %v289_v1 = vsel %vm273_vm14, 1.0, %v2671_v6 }
  0x72   : > { %v297_v7 = vpack.c.bf16 %v288_v0, %v287_v62  ;;  %v290_v12 = vsel %vm274_vm15, 1.0, %v2671_v6  ;;  %vm312_vm0 = vcmp.eq.s32.totalorder %v2416_v60, %v2799_v2  ;;  %vm313_vm1 = vcmp.eq.s32.totalorder %v2416_v60, %v2802_v3 }
  0x73   : > { %304 = vst [vmem:[#allocation3 + $0x1e8] sm:$0xff] %v296_v63  ;;  %v298_v13 = vpack.c.bf16 %v290_v12, %v289_v1  ;;  %v328_v14 = vsel %vm312_vm0, 1.0, %v2671_v6  ;;  %v329_v15 = vsel %vm313_vm1, 1.0, %v2671_v6  ;;  %vm314_vm2 = vcmp.eq.s32.totalorder %v2416_v60, %v2807_v4  ;;  %v2418_v63 = vld [vmem:[#allocation8 + $0x4] ss:$0 sm:$0xff] }
  0x74   : > { %305 = vst [vmem:[#allocation3 + $0x248] sm:$0xff] %v297_v7  ;;  %v344_v16 = vpack.c.bf16 %v329_v15, %v328_v14  ;;  %vm315_vm3 = vcmp.eq.s32.totalorder %v2416_v60, %v2810_v5  ;;  %v330_v17 = vsel %vm314_vm2, 1.0, %v2671_v6  ;;  %vm316_vm4 = vcmp.eq.s32.totalorder %v2416_v60, %v2814_v8 }
  0x75   : > { %306 = vst [vmem:[#allocation3 + $0x2a8] sm:$0xff] %v298_v13  ;;  %v331_v18 = vsel %vm315_vm3, 1.0, %v2671_v6  ;;  %vm317_vm5 = vcmp.eq.s32.totalorder %v2416_v60, %v2817_v9  ;;  %v332_v20 = vsel %vm316_vm4, 1.0, %v2671_v6  ;;  %vm318_vm6 = vcmp.eq.s32.totalorder %v2416_v60, %v2820_v10 }
  0x76   : > { %352 = vst [vmem:[#allocation3 + $0x10] sm:$0xff] %v344_v16  ;;  %v345_v21 = vpack.c.bf16 %v331_v18, %v330_v17  ;;  %v333_v22 = vsel %vm317_vm5, 1.0, %v2671_v6  ;;  %vm319_vm7 = vcmp.eq.s32.totalorder %v2416_v60, %v2829_v11  ;;  %v334_v24 = vsel %vm318_vm6, 1.0, %v2671_v6 }
  0x77   : > { %v346_v27 = vpack.c.bf16 %v333_v22, %v332_v20  ;;  %v335_v30 = vsel %vm319_vm7, 1.0, %v2671_v6  ;;  %vm320_vm8 = vcmp.eq.s32.totalorder %v2416_v60, %v2845_v19  ;;  %vm321_vm9 = vcmp.eq.s32.totalorder %v2416_v60, %v2850_v23 }
  0x78   : > { %353 = vst [vmem:[#allocation3 + $0x70] sm:$0xff] %v345_v21  ;;  %v347_v32 = vpack.c.bf16 %v335_v30, %v334_v24  ;;  %v336_v33 = vsel %vm320_vm8, 1.0, %v2671_v6  ;;  %v337_v34 = vsel %vm321_vm9, 1.0, %v2671_v6  ;;  %vm322_vm10 = vcmp.eq.s32.totalorder %v2416_v60, %v2855_v25 }
  0x79   : > { %354 = vst [vmem:[#allocation3 + $0xd0] sm:$0xff] %v346_v27  ;;  %v348_v35 = vpack.c.bf16 %v337_v34, %v336_v33  ;;  %vm323_vm11 = vcmp.eq.s32.totalorder %v2416_v60, %v2858_v26  ;;  %v338_v36 = vsel %vm322_vm10, 1.0, %v2671_v6  ;;  %vm324_vm12 = vcmp.eq.s32.totalorder %v2416_v60, %v2864_v28 }
  0x7a   : > { %355 = vst [vmem:[#allocation3 + $0x130] sm:$0xff] %v347_v32  ;;  %v339_v39 = vsel %vm323_vm11, 1.0, %v2671_v6  ;;  %vm325_vm13 = vcmp.eq.s32.totalorder %v2416_v60, %v2867_v29  ;;  %v340_v40 = vsel %vm324_vm12, 1.0, %v2671_v6  ;;  %vm326_vm14 = vcmp.eq.s32.totalorder %v2416_v60, %v2875_v31 }
  0x7b   : > { %356 = vst [vmem:[#allocation3 + $0x190] sm:$0xff] %v348_v35  ;;  %v349_v41 = vpack.c.bf16 %v339_v39, %v338_v36  ;;  %v341_v42 = vsel %vm325_vm13, 1.0, %v2671_v6  ;;  %vm327_vm15 = vcmp.eq.s32.totalorder %v2416_v60, %v2887_v38  ;;  %v342_v43 = vsel %vm326_vm14, 1.0, %v2671_v6 }
  0x7c   : > { %v350_v44 = vpack.c.bf16 %v341_v42, %v340_v40  ;;  %v343_v45 = vsel %vm327_vm15, 1.0, %v2671_v6  ;;  %vm365_vm0 = vcmp.eq.s32.totalorder %v2417_v37, %v2799_v2  ;;  %vm366_vm1 = vcmp.eq.s32.totalorder %v2417_v37, %v2802_v3 }
  0x7d   : > { %357 = vst [vmem:[#allocation3 + $0x1f0] sm:$0xff] %v349_v41  ;;  %v351_v46 = vpack.c.bf16 %v343_v45, %v342_v43  ;;  %v381_v47 = vsel %vm365_vm0, 1.0, %v2671_v6  ;;  %v382_v48 = vsel %vm366_vm1, 1.0, %v2671_v6  ;;  %vm367_vm2 = vcmp.eq.s32.totalorder %v2417_v37, %v2807_v4  ;;  %v2419_v41 = vld [vmem:[#allocation8 + $0x5] ss:$0 sm:$0xff] }
  0x7e   : > { %358 = vst [vmem:[#allocation3 + $0x250] sm:$0xff] %v350_v44  ;;  %v397_v49 = vpack.c.bf16 %v382_v48, %v381_v47  ;;  %vm368_vm3 = vcmp.eq.s32.totalorder %v2417_v37, %v2810_v5  ;;  %v383_v50 = vsel %vm367_vm2, 1.0, %v2671_v6  ;;  %vm369_vm4 = vcmp.eq.s32.totalorder %v2417_v37, %v2814_v8 }
  0x7f   : > { %359 = vst [vmem:[#allocation3 + $0x2b0] sm:$0xff] %v351_v46  ;;  %v384_v51 = vsel %vm368_vm3, 1.0, %v2671_v6  ;;  %vm370_vm5 = vcmp.eq.s32.totalorder %v2417_v37, %v2817_v9  ;;  %v385_v52 = vsel %vm369_vm4, 1.0, %v2671_v6  ;;  %vm371_vm6 = vcmp.eq.s32.totalorder %v2417_v37, %v2820_v10 }
  0x80   : > { %405 = vst [vmem:[#allocation3 + $0x18] sm:$0xff] %v397_v49  ;;  %v398_v53 = vpack.c.bf16 %v384_v51, %v383_v50  ;;  %v386_v54 = vsel %vm370_vm5, 1.0, %v2671_v6  ;;  %vm372_vm7 = vcmp.eq.s32.totalorder %v2417_v37, %v2829_v11  ;;  %v387_v55 = vsel %vm371_vm6, 1.0, %v2671_v6 }
  0x81   : > { %v399_v56 = vpack.c.bf16 %v386_v54, %v385_v52  ;;  %v388_v57 = vsel %vm372_vm7, 1.0, %v2671_v6  ;;  %vm373_vm8 = vcmp.eq.s32.totalorder %v2417_v37, %v2845_v19  ;;  %vm374_vm9 = vcmp.eq.s32.totalorder %v2417_v37, %v2850_v23 }
  0x82   : > { %406 = vst [vmem:[#allocation3 + $0x78] sm:$0xff] %v398_v53  ;;  %v400_v58 = vpack.c.bf16 %v388_v57, %v387_v55  ;;  %v389_v59 = vsel %vm373_vm8, 1.0, %v2671_v6  ;;  %v390_v60 = vsel %vm374_vm9, 1.0, %v2671_v6  ;;  %vm375_vm10 = vcmp.eq.s32.totalorder %v2417_v37, %v2855_v25 }
  0x83   : > { %407 = vst [vmem:[#allocation3 + $0xd8] sm:$0xff] %v399_v56  ;;  %v401_v61 = vpack.c.bf16 %v390_v60, %v389_v59  ;;  %vm376_vm11 = vcmp.eq.s32.totalorder %v2417_v37, %v2858_v26  ;;  %v391_v62 = vsel %vm375_vm10, 1.0, %v2671_v6  ;;  %vm377_vm12 = vcmp.eq.s32.totalorder %v2417_v37, %v2864_v28 }
  0x84   : > { %408 = vst [vmem:[#allocation3 + $0x138] sm:$0xff] %v400_v58  ;;  %v392_v0 = vsel %vm376_vm11, 1.0, %v2671_v6  ;;  %vm378_vm13 = vcmp.eq.s32.totalorder %v2417_v37, %v2867_v29  ;;  %v393_v1 = vsel %vm377_vm12, 1.0, %v2671_v6  ;;  %vm379_vm14 = vcmp.eq.s32.totalorder %v2417_v37, %v2875_v31 }
  0x85   : > { %409 = vst [vmem:[#allocation3 + $0x198] sm:$0xff] %v401_v61  ;;  %v402_v7 = vpack.c.bf16 %v392_v0, %v391_v62  ;;  %v394_v12 = vsel %vm378_vm13, 1.0, %v2671_v6  ;;  %vm380_vm15 = vcmp.eq.s32.totalorder %v2417_v37, %v2887_v38  ;;  %v395_v13 = vsel %vm379_vm14, 1.0, %v2671_v6 }
  0x86   : > { %v403_v14 = vpack.c.bf16 %v394_v12, %v393_v1  ;;  %v396_v15 = vsel %vm380_vm15, 1.0, %v2671_v6  ;;  %vm418_vm0 = vcmp.eq.s32.totalorder %v2418_v63, %v2799_v2  ;;  %vm419_vm1 = vcmp.eq.s32.totalorder %v2418_v63, %v2802_v3 }
  0x87   : > { %410 = vst [vmem:[#allocation3 + $0x1f8] sm:$0xff] %v402_v7  ;;  %v404_v16 = vpack.c.bf16 %v396_v15, %v395_v13  ;;  %v434_v17 = vsel %vm418_vm0, 1.0, %v2671_v6  ;;  %v435_v18 = vsel %vm419_vm1, 1.0, %v2671_v6  ;;  %vm420_vm2 = vcmp.eq.s32.totalorder %v2418_v63, %v2807_v4  ;;  %v2420_v7 = vld [vmem:[#allocation8 + $0x6] ss:$0 sm:$0xff] }
  0x88   : > { %411 = vst [vmem:[#allocation3 + $0x258] sm:$0xff] %v403_v14  ;;  %v450_v20 = vpack.c.bf16 %v435_v18, %v434_v17  ;;  %vm421_vm3 = vcmp.eq.s32.totalorder %v2418_v63, %v2810_v5  ;;  %v436_v21 = vsel %vm420_vm2, 1.0, %v2671_v6  ;;  %vm422_vm4 = vcmp.eq.s32.totalorder %v2418_v63, %v2814_v8 }
  0x89   : > { %412 = vst [vmem:[#allocation3 + $0x2b8] sm:$0xff] %v404_v16  ;;  %v437_v22 = vsel %vm421_vm3, 1.0, %v2671_v6  ;;  %vm423_vm5 = vcmp.eq.s32.totalorder %v2418_v63, %v2817_v9  ;;  %v438_v24 = vsel %vm422_vm4, 1.0, %v2671_v6  ;;  %vm424_vm6 = vcmp.eq.s32.totalorder %v2418_v63, %v2820_v10 }
  0x8a   : > { %458 = vst [vmem:[#allocation3 + $0x20] sm:$0xff] %v450_v20  ;;  %v451_v27 = vpack.c.bf16 %v437_v22, %v436_v21  ;;  %v439_v30 = vsel %vm423_vm5, 1.0, %v2671_v6  ;;  %vm425_vm7 = vcmp.eq.s32.totalorder %v2418_v63, %v2829_v11  ;;  %v440_v32 = vsel %vm424_vm6, 1.0, %v2671_v6 }
  0x8b   : > { %v452_v33 = vpack.c.bf16 %v439_v30, %v438_v24  ;;  %v441_v34 = vsel %vm425_vm7, 1.0, %v2671_v6  ;;  %vm426_vm8 = vcmp.eq.s32.totalorder %v2418_v63, %v2845_v19  ;;  %vm427_vm9 = vcmp.eq.s32.totalorder %v2418_v63, %v2850_v23 }
  0x8c   : > { %459 = vst [vmem:[#allocation3 + $0x80] sm:$0xff] %v451_v27  ;;  %v453_v35 = vpack.c.bf16 %v441_v34, %v440_v32  ;;  %v442_v36 = vsel %vm426_vm8, 1.0, %v2671_v6  ;;  %v443_v37 = vsel %vm427_vm9, 1.0, %v2671_v6  ;;  %vm428_vm10 = vcmp.eq.s32.totalorder %v2418_v63, %v2855_v25 }
  0x8d   : > { %460 = vst [vmem:[#allocation3 + $0xe0] sm:$0xff] %v452_v33  ;;  %v454_v39 = vpack.c.bf16 %v443_v37, %v442_v36  ;;  %vm429_vm11 = vcmp.eq.s32.totalorder %v2418_v63, %v2858_v26  ;;  %v444_v40 = vsel %vm428_vm10, 1.0, %v2671_v6  ;;  %vm430_vm12 = vcmp.eq.s32.totalorder %v2418_v63, %v2864_v28 }
  0x8e   : > { %461 = vst [vmem:[#allocation3 + $0x140] sm:$0xff] %v453_v35  ;;  %v445_v42 = vsel %vm429_vm11, 1.0, %v2671_v6  ;;  %vm431_vm13 = vcmp.eq.s32.totalorder %v2418_v63, %v2867_v29  ;;  %v446_v43 = vsel %vm430_vm12, 1.0, %v2671_v6  ;;  %vm432_vm14 = vcmp.eq.s32.totalorder %v2418_v63, %v2875_v31 }
  0x8f   : > { %462 = vst [vmem:[#allocation3 + $0x1a0] sm:$0xff] %v454_v39  ;;  %v455_v44 = vpack.c.bf16 %v445_v42, %v444_v40  ;;  %v447_v45 = vsel %vm431_vm13, 1.0, %v2671_v6  ;;  %vm433_vm15 = vcmp.eq.s32.totalorder %v2418_v63, %v2887_v38  ;;  %v448_v46 = vsel %vm432_vm14, 1.0, %v2671_v6 }
  0x90   : > { %v456_v47 = vpack.c.bf16 %v447_v45, %v446_v43  ;;  %v449_v48 = vsel %vm433_vm15, 1.0, %v2671_v6  ;;  %vm471_vm0 = vcmp.eq.s32.totalorder %v2419_v41, %v2799_v2  ;;  %vm472_vm1 = vcmp.eq.s32.totalorder %v2419_v41, %v2802_v3 }
  0x91   : > { %463 = vst [vmem:[#allocation3 + $0x200] sm:$0xff] %v455_v44  ;;  %v457_v49 = vpack.c.bf16 %v449_v48, %v448_v46  ;;  %v487_v50 = vsel %vm471_vm0, 1.0, %v2671_v6  ;;  %v488_v51 = vsel %vm472_vm1, 1.0, %v2671_v6  ;;  %vm473_vm2 = vcmp.eq.s32.totalorder %v2419_v41, %v2807_v4  ;;  %v2421_v44 = vld [vmem:[#allocation8 + $0x7] ss:$0 sm:$0xff] }
  0x92   : > { %464 = vst [vmem:[#allocation3 + $0x260] sm:$0xff] %v456_v47  ;;  %v503_v52 = vpack.c.bf16 %v488_v51, %v487_v50  ;;  %vm474_vm3 = vcmp.eq.s32.totalorder %v2419_v41, %v2810_v5  ;;  %v489_v53 = vsel %vm473_vm2, 1.0, %v2671_v6  ;;  %vm475_vm4 = vcmp.eq.s32.totalorder %v2419_v41, %v2814_v8 }
  0x93   : > { %465 = vst [vmem:[#allocation3 + $0x2c0] sm:$0xff] %v457_v49  ;;  %v490_v54 = vsel %vm474_vm3, 1.0, %v2671_v6  ;;  %vm476_vm5 = vcmp.eq.s32.totalorder %v2419_v41, %v2817_v9  ;;  %v491_v55 = vsel %vm475_vm4, 1.0, %v2671_v6  ;;  %vm477_vm6 = vcmp.eq.s32.totalorder %v2419_v41, %v2820_v10 }
  0x94   : > { %511 = vst [vmem:[#allocation3 + $0x28] sm:$0xff] %v503_v52  ;;  %v504_v56 = vpack.c.bf16 %v490_v54, %v489_v53  ;;  %v492_v57 = vsel %vm476_vm5, 1.0, %v2671_v6  ;;  %vm478_vm7 = vcmp.eq.s32.totalorder %v2419_v41, %v2829_v11  ;;  %v493_v58 = vsel %vm477_vm6, 1.0, %v2671_v6 }
  0x95   : > { %v505_v59 = vpack.c.bf16 %v492_v57, %v491_v55  ;;  %v494_v60 = vsel %vm478_vm7, 1.0, %v2671_v6  ;;  %vm479_vm8 = vcmp.eq.s32.totalorder %v2419_v41, %v2845_v19  ;;  %vm480_vm9 = vcmp.eq.s32.totalorder %v2419_v41, %v2850_v23 }
  0x96   : > { %512 = vst [vmem:[#allocation3 + $0x88] sm:$0xff] %v504_v56  ;;  %v506_v61 = vpack.c.bf16 %v494_v60, %v493_v58  ;;  %v495_v62 = vsel %vm479_vm8, 1.0, %v2671_v6  ;;  %v496_v63 = vsel %vm480_vm9, 1.0, %v2671_v6  ;;  %vm481_vm10 = vcmp.eq.s32.totalorder %v2419_v41, %v2855_v25 }
  0x97   : > { %513 = vst [vmem:[#allocation3 + $0xe8] sm:$0xff] %v505_v59  ;;  %v507_v0 = vpack.c.bf16 %v496_v63, %v495_v62  ;;  %vm482_vm11 = vcmp.eq.s32.totalorder %v2419_v41, %v2858_v26  ;;  %v497_v1 = vsel %vm481_vm10, 1.0, %v2671_v6  ;;  %vm483_vm12 = vcmp.eq.s32.totalorder %v2419_v41, %v2864_v28 }
  0x98   : > { %514 = vst [vmem:[#allocation3 + $0x148] sm:$0xff] %v506_v61  ;;  %v498_v12 = vsel %vm482_vm11, 1.0, %v2671_v6  ;;  %vm484_vm13 = vcmp.eq.s32.totalorder %v2419_v41, %v2867_v29  ;;  %v499_v13 = vsel %vm483_vm12, 1.0, %v2671_v6  ;;  %vm485_vm14 = vcmp.eq.s32.totalorder %v2419_v41, %v2875_v31 }
  0x99   : > { %515 = vst [vmem:[#allocation3 + $0x1a8] sm:$0xff] %v507_v0  ;;  %v508_v14 = vpack.c.bf16 %v498_v12, %v497_v1  ;;  %v500_v15 = vsel %vm484_vm13, 1.0, %v2671_v6  ;;  %vm486_vm15 = vcmp.eq.s32.totalorder %v2419_v41, %v2887_v38  ;;  %v501_v16 = vsel %vm485_vm14, 1.0, %v2671_v6 }
  0x9a   : > { %v509_v17 = vpack.c.bf16 %v500_v15, %v499_v13  ;;  %v502_v18 = vsel %vm486_vm15, 1.0, %v2671_v6  ;;  %vm524_vm0 = vcmp.eq.s32.totalorder %v2420_v7, %v2799_v2  ;;  %vm525_vm1 = vcmp.eq.s32.totalorder %v2420_v7, %v2802_v3 }
  0x9b   : > { %516 = vst [vmem:[#allocation3 + $0x208] sm:$0xff] %v508_v14  ;;  %v510_v20 = vpack.c.bf16 %v502_v18, %v501_v16  ;;  %v540_v21 = vsel %vm524_vm0, 1.0, %v2671_v6  ;;  %v541_v22 = vsel %vm525_vm1, 1.0, %v2671_v6  ;;  %vm526_vm2 = vcmp.eq.s32.totalorder %v2420_v7, %v2807_v4  ;;  %v2422_v14 = vld [vmem:[#allocation8 + $0x8] ss:$0 sm:$0xff] }
  0x9c   : > { %517 = vst [vmem:[#allocation3 + $0x268] sm:$0xff] %v509_v17  ;;  %v556_v24 = vpack.c.bf16 %v541_v22, %v540_v21  ;;  %vm527_vm3 = vcmp.eq.s32.totalorder %v2420_v7, %v2810_v5  ;;  %v542_v27 = vsel %vm526_vm2, 1.0, %v2671_v6  ;;  %vm528_vm4 = vcmp.eq.s32.totalorder %v2420_v7, %v2814_v8 }
  0x9d   : > { %518 = vst [vmem:[#allocation3 + $0x2c8] sm:$0xff] %v510_v20  ;;  %v543_v30 = vsel %vm527_vm3, 1.0, %v2671_v6  ;;  %vm529_vm5 = vcmp.eq.s32.totalorder %v2420_v7, %v2817_v9  ;;  %v544_v32 = vsel %vm528_vm4, 1.0, %v2671_v6  ;;  %vm530_vm6 = vcmp.eq.s32.totalorder %v2420_v7, %v2820_v10 }
  0x9e   : > { %564 = vst [vmem:[#allocation3 + $0x30] sm:$0xff] %v556_v24  ;;  %v557_v33 = vpack.c.bf16 %v543_v30, %v542_v27  ;;  %v545_v34 = vsel %vm529_vm5, 1.0, %v2671_v6  ;;  %vm531_vm7 = vcmp.eq.s32.totalorder %v2420_v7, %v2829_v11  ;;  %v546_v35 = vsel %vm530_vm6, 1.0, %v2671_v6 }
  0x9f   : > { %v558_v36 = vpack.c.bf16 %v545_v34, %v544_v32  ;;  %v547_v37 = vsel %vm531_vm7, 1.0, %v2671_v6  ;;  %vm532_vm8 = vcmp.eq.s32.totalorder %v2420_v7, %v2845_v19  ;;  %vm533_vm9 = vcmp.eq.s32.totalorder %v2420_v7, %v2850_v23 }
  0xa0   : > { %565 = vst [vmem:[#allocation3 + $0x90] sm:$0xff] %v557_v33  ;;  %v559_v39 = vpack.c.bf16 %v547_v37, %v546_v35  ;;  %v548_v40 = vsel %vm532_vm8, 1.0, %v2671_v6  ;;  %v549_v41 = vsel %vm533_vm9, 1.0, %v2671_v6  ;;  %vm534_vm10 = vcmp.eq.s32.totalorder %v2420_v7, %v2855_v25 }
  0xa1   : > { %566 = vst [vmem:[#allocation3 + $0xf0] sm:$0xff] %v558_v36  ;;  %v560_v42 = vpack.c.bf16 %v549_v41, %v548_v40  ;;  %vm535_vm11 = vcmp.eq.s32.totalorder %v2420_v7, %v2858_v26  ;;  %v550_v43 = vsel %vm534_vm10, 1.0, %v2671_v6  ;;  %vm536_vm12 = vcmp.eq.s32.totalorder %v2420_v7, %v2864_v28 }
  0xa2   : > { %567 = vst [vmem:[#allocation3 + $0x150] sm:$0xff] %v559_v39  ;;  %v551_v45 = vsel %vm535_vm11, 1.0, %v2671_v6  ;;  %vm537_vm13 = vcmp.eq.s32.totalorder %v2420_v7, %v2867_v29  ;;  %v552_v46 = vsel %vm536_vm12, 1.0, %v2671_v6  ;;  %vm538_vm14 = vcmp.eq.s32.totalorder %v2420_v7, %v2875_v31 }
  0xa3   : > { %568 = vst [vmem:[#allocation3 + $0x1b0] sm:$0xff] %v560_v42  ;;  %v561_v47 = vpack.c.bf16 %v551_v45, %v550_v43  ;;  %v553_v48 = vsel %vm537_vm13, 1.0, %v2671_v6  ;;  %vm539_vm15 = vcmp.eq.s32.totalorder %v2420_v7, %v2887_v38  ;;  %v554_v49 = vsel %vm538_vm14, 1.0, %v2671_v6 }
  0xa4   : > { %v562_v50 = vpack.c.bf16 %v553_v48, %v552_v46  ;;  %v555_v51 = vsel %vm539_vm15, 1.0, %v2671_v6  ;;  %vm577_vm0 = vcmp.eq.s32.totalorder %v2421_v44, %v2799_v2  ;;  %vm578_vm1 = vcmp.eq.s32.totalorder %v2421_v44, %v2802_v3 }
  0xa5   : > { %569 = vst [vmem:[#allocation3 + $0x210] sm:$0xff] %v561_v47  ;;  %v563_v52 = vpack.c.bf16 %v555_v51, %v554_v49  ;;  %v593_v53 = vsel %vm577_vm0, 1.0, %v2671_v6  ;;  %v594_v54 = vsel %vm578_vm1, 1.0, %v2671_v6  ;;  %vm579_vm2 = vcmp.eq.s32.totalorder %v2421_v44, %v2807_v4  ;;  %v2423_v47 = vld [vmem:[#allocation8 + $0x9] ss:$0 sm:$0xff] }
  0xa6   : > { %570 = vst [vmem:[#allocation3 + $0x270] sm:$0xff] %v562_v50  ;;  %v609_v55 = vpack.c.bf16 %v594_v54, %v593_v53  ;;  %vm580_vm3 = vcmp.eq.s32.totalorder %v2421_v44, %v2810_v5  ;;  %v595_v56 = vsel %vm579_vm2, 1.0, %v2671_v6  ;;  %vm581_vm4 = vcmp.eq.s32.totalorder %v2421_v44, %v2814_v8 }
  0xa7   : > { %571 = vst [vmem:[#allocation3 + $0x2d0] sm:$0xff] %v563_v52  ;;  %v596_v57 = vsel %vm580_vm3, 1.0, %v2671_v6  ;;  %vm582_vm5 = vcmp.eq.s32.totalorder %v2421_v44, %v2817_v9  ;;  %v597_v58 = vsel %vm581_vm4, 1.0, %v2671_v6  ;;  %vm583_vm6 = vcmp.eq.s32.totalorder %v2421_v44, %v2820_v10 }
  0xa8   : > { %617 = vst [vmem:[#allocation3 + $0x38] sm:$0xff] %v609_v55  ;;  %v610_v59 = vpack.c.bf16 %v596_v57, %v595_v56  ;;  %v598_v60 = vsel %vm582_vm5, 1.0, %v2671_v6  ;;  %vm584_vm7 = vcmp.eq.s32.totalorder %v2421_v44, %v2829_v11  ;;  %v599_v61 = vsel %vm583_vm6, 1.0, %v2671_v6 }
  0xa9   : > { %v611_v62 = vpack.c.bf16 %v598_v60, %v597_v58  ;;  %v600_v63 = vsel %vm584_vm7, 1.0, %v2671_v6  ;;  %vm585_vm8 = vcmp.eq.s32.totalorder %v2421_v44, %v2845_v19  ;;  %vm586_vm9 = vcmp.eq.s32.totalorder %v2421_v44, %v2850_v23 }
  0xaa   : > { %618 = vst [vmem:[#allocation3 + $0x98] sm:$0xff] %v610_v59  ;;  %v612_v0 = vpack.c.bf16 %v600_v63, %v599_v61  ;;  %v601_v1 = vsel %vm585_vm8, 1.0, %v2671_v6  ;;  %v602_v7 = vsel %vm586_vm9, 1.0, %v2671_v6  ;;  %vm587_vm10 = vcmp.eq.s32.totalorder %v2421_v44, %v2855_v25 }
  0xab   : > { %619 = vst [vmem:[#allocation3 + $0xf8] sm:$0xff] %v611_v62  ;;  %v613_v12 = vpack.c.bf16 %v602_v7, %v601_v1  ;;  %vm588_vm11 = vcmp.eq.s32.totalorder %v2421_v44, %v2858_v26  ;;  %v603_v13 = vsel %vm587_vm10, 1.0, %v2671_v6  ;;  %vm589_vm12 = vcmp.eq.s32.totalorder %v2421_v44, %v2864_v28 }
  0xac   : > { %620 = vst [vmem:[#allocation3 + $0x158] sm:$0xff] %v612_v0  ;;  %v604_v15 = vsel %vm588_vm11, 1.0, %v2671_v6  ;;  %vm590_vm13 = vcmp.eq.s32.totalorder %v2421_v44, %v2867_v29  ;;  %v605_v16 = vsel %vm589_vm12, 1.0, %v2671_v6  ;;  %vm591_vm14 = vcmp.eq.s32.totalorder %v2421_v44, %v2875_v31 }
  0xad   : > { %621 = vst [vmem:[#allocation3 + $0x1b8] sm:$0xff] %v613_v12  ;;  %v614_v17 = vpack.c.bf16 %v604_v15, %v603_v13  ;;  %v606_v18 = vsel %vm590_vm13, 1.0, %v2671_v6  ;;  %vm592_vm15 = vcmp.eq.s32.totalorder %v2421_v44, %v2887_v38  ;;  %v607_v20 = vsel %vm591_vm14, 1.0, %v2671_v6 }
  0xae   : > { %v615_v21 = vpack.c.bf16 %v606_v18, %v605_v16  ;;  %v608_v22 = vsel %vm592_vm15, 1.0, %v2671_v6  ;;  %vm630_vm0 = vcmp.eq.s32.totalorder %v2422_v14, %v2799_v2  ;;  %vm631_vm1 = vcmp.eq.s32.totalorder %v2422_v14, %v2802_v3 }
  0xaf   : > { %622 = vst [vmem:[#allocation3 + $0x218] sm:$0xff] %v614_v17  ;;  %v616_v24 = vpack.c.bf16 %v608_v22, %v607_v20  ;;  %v646_v27 = vsel %vm630_vm0, 1.0, %v2671_v6  ;;  %v647_v30 = vsel %vm631_vm1, 1.0, %v2671_v6  ;;  %vm632_vm2 = vcmp.eq.s32.totalorder %v2422_v14, %v2807_v4  ;;  %v2424_v17 = vld [vmem:[#allocation8 + $0xa] ss:$0 sm:$0xff] }
  0xb0   : > { %623 = vst [vmem:[#allocation3 + $0x278] sm:$0xff] %v615_v21  ;;  %v662_v32 = vpack.c.bf16 %v647_v30, %v646_v27  ;;  %vm633_vm3 = vcmp.eq.s32.totalorder %v2422_v14, %v2810_v5  ;;  %v648_v33 = vsel %vm632_vm2, 1.0, %v2671_v6  ;;  %vm634_vm4 = vcmp.eq.s32.totalorder %v2422_v14, %v2814_v8 }
  0xb1   : > { %624 = vst [vmem:[#allocation3 + $0x2d8] sm:$0xff] %v616_v24  ;;  %v649_v34 = vsel %vm633_vm3, 1.0, %v2671_v6  ;;  %vm635_vm5 = vcmp.eq.s32.totalorder %v2422_v14, %v2817_v9  ;;  %v650_v35 = vsel %vm634_vm4, 1.0, %v2671_v6  ;;  %vm636_vm6 = vcmp.eq.s32.totalorder %v2422_v14, %v2820_v10 }
  0xb2   : > { %670 = vst [vmem:[#allocation3 + $0x40] sm:$0xff] %v662_v32  ;;  %v663_v36 = vpack.c.bf16 %v649_v34, %v648_v33  ;;  %v651_v37 = vsel %vm635_vm5, 1.0, %v2671_v6  ;;  %vm637_vm7 = vcmp.eq.s32.totalorder %v2422_v14, %v2829_v11  ;;  %v652_v39 = vsel %vm636_vm6, 1.0, %v2671_v6 }
  0xb3   : > { %v664_v40 = vpack.c.bf16 %v651_v37, %v650_v35  ;;  %v653_v41 = vsel %vm637_vm7, 1.0, %v2671_v6  ;;  %vm638_vm8 = vcmp.eq.s32.totalorder %v2422_v14, %v2845_v19  ;;  %vm639_vm9 = vcmp.eq.s32.totalorder %v2422_v14, %v2850_v23 }
  0xb4   : > { %671 = vst [vmem:[#allocation3 + $0xa0] sm:$0xff] %v663_v36  ;;  %v665_v42 = vpack.c.bf16 %v653_v41, %v652_v39  ;;  %v654_v43 = vsel %vm638_vm8, 1.0, %v2671_v6  ;;  %v655_v44 = vsel %vm639_vm9, 1.0, %v2671_v6  ;;  %vm640_vm10 = vcmp.eq.s32.totalorder %v2422_v14, %v2855_v25 }
  0xb5   : > { %672 = vst [vmem:[#allocation3 + $0x100] sm:$0xff] %v664_v40  ;;  %v666_v45 = vpack.c.bf16 %v655_v44, %v654_v43  ;;  %vm641_vm11 = vcmp.eq.s32.totalorder %v2422_v14, %v2858_v26  ;;  %v656_v46 = vsel %vm640_vm10, 1.0, %v2671_v6  ;;  %vm642_vm12 = vcmp.eq.s32.totalorder %v2422_v14, %v2864_v28 }
  0xb6   : > { %673 = vst [vmem:[#allocation3 + $0x160] sm:$0xff] %v665_v42  ;;  %v657_v48 = vsel %vm641_vm11, 1.0, %v2671_v6  ;;  %vm643_vm13 = vcmp.eq.s32.totalorder %v2422_v14, %v2867_v29  ;;  %v658_v49 = vsel %vm642_vm12, 1.0, %v2671_v6  ;;  %vm644_vm14 = vcmp.eq.s32.totalorder %v2422_v14, %v2875_v31 }
  0xb7   : > { %674 = vst [vmem:[#allocation3 + $0x1c0] sm:$0xff] %v666_v45  ;;  %v667_v50 = vpack.c.bf16 %v657_v48, %v656_v46  ;;  %v659_v51 = vsel %vm643_vm13, 1.0, %v2671_v6  ;;  %vm645_vm15 = vcmp.eq.s32.totalorder %v2422_v14, %v2887_v38  ;;  %v660_v52 = vsel %vm644_vm14, 1.0, %v2671_v6 }
  0xb8   : > { %v668_v53 = vpack.c.bf16 %v659_v51, %v658_v49  ;;  %v661_v54 = vsel %vm645_vm15, 1.0, %v2671_v6  ;;  %vm683_vm0 = vcmp.eq.s32.totalorder %v2423_v47, %v2799_v2  ;;  %vm684_vm1 = vcmp.eq.s32.totalorder %v2423_v47, %v2802_v3 }
  0xb9   : > { %675 = vst [vmem:[#allocation3 + $0x220] sm:$0xff] %v667_v50  ;;  %v669_v55 = vpack.c.bf16 %v661_v54, %v660_v52  ;;  %v699_v56 = vsel %vm683_vm0, 1.0, %v2671_v6  ;;  %v700_v57 = vsel %vm684_vm1, 1.0, %v2671_v6  ;;  %vm685_vm2 = vcmp.eq.s32.totalorder %v2423_v47, %v2807_v4  ;;  %v3224_v50 = vld [vmem:[#allocation8 + $0xb] ss:$0 sm:$0xff] }
  0xba   : > { %676 = vst [vmem:[#allocation3 + $0x280] sm:$0xff] %v668_v53  ;;  %v715_v58 = vpack.c.bf16 %v700_v57, %v699_v56  ;;  %vm686_vm3 = vcmp.eq.s32.totalorder %v2423_v47, %v2810_v5  ;;  %v701_v59 = vsel %vm685_vm2, 1.0, %v2671_v6  ;;  %vm687_vm4 = vcmp.eq.s32.totalorder %v2423_v47, %v2814_v8 }
  0xbb   : > { %677 = vst [vmem:[#allocation3 + $0x2e0] sm:$0xff] %v669_v55  ;;  %v702_v60 = vsel %vm686_vm3, 1.0, %v2671_v6  ;;  %vm688_vm5 = vcmp.eq.s32.totalorder %v2423_v47, %v2817_v9  ;;  %v703_v61 = vsel %vm687_vm4, 1.0, %v2671_v6  ;;  %vm689_vm6 = vcmp.eq.s32.totalorder %v2423_v47, %v2820_v10 }
  0xbc   : > { %723 = vst [vmem:[#allocation3 + $0x48] sm:$0xff] %v715_v58  ;;  %v716_v62 = vpack.c.bf16 %v702_v60, %v701_v59  ;;  %v704_v63 = vsel %vm688_vm5, 1.0, %v2671_v6  ;;  %vm690_vm7 = vcmp.eq.s32.totalorder %v2423_v47, %v2829_v11  ;;  %v705_v0 = vsel %vm689_vm6, 1.0, %v2671_v6 }
  0xbd   : > { %v717_v1 = vpack.c.bf16 %v704_v63, %v703_v61  ;;  %v706_v7 = vsel %vm690_vm7, 1.0, %v2671_v6  ;;  %vm691_vm8 = vcmp.eq.s32.totalorder %v2423_v47, %v2845_v19  ;;  %vm692_vm9 = vcmp.eq.s32.totalorder %v2423_v47, %v2850_v23 }
  0xbe   : > { %724 = vst [vmem:[#allocation3 + $0xa8] sm:$0xff] %v716_v62  ;;  %v718_v12 = vpack.c.bf16 %v706_v7, %v705_v0  ;;  %v707_v13 = vsel %vm691_vm8, 1.0, %v2671_v6  ;;  %v708_v14 = vsel %vm692_vm9, 1.0, %v2671_v6  ;;  %vm693_vm10 = vcmp.eq.s32.totalorder %v2423_v47, %v2855_v25 }
  0xbf   : > { %725 = vst [vmem:[#allocation3 + $0x108] sm:$0xff] %v717_v1  ;;  %v719_v15 = vpack.c.bf16 %v708_v14, %v707_v13  ;;  %vm694_vm11 = vcmp.eq.s32.totalorder %v2423_v47, %v2858_v26  ;;  %v709_v16 = vsel %vm693_vm10, 1.0, %v2671_v6  ;;  %vm695_vm12 = vcmp.eq.s32.totalorder %v2423_v47, %v2864_v28  ;;  %v1475_v13 = vld [vmem:[#allocation4] sm:$0xff] }
  0xc0   : > { %726 = vst [vmem:[#allocation3 + $0x168] sm:$0xff] %v718_v12  ;;  %v710_v18 = vsel %vm694_vm11, 1.0, %v2671_v6  ;;  %vm696_vm13 = vcmp.eq.s32.totalorder %v2423_v47, %v2867_v29  ;;  %v711_v20 = vsel %vm695_vm12, 1.0, %v2671_v6  ;;  %vm697_vm14 = vcmp.eq.s32.totalorder %v2423_v47, %v2875_v31  ;;  %1476 = vst [vmem:[#allocation2] sm:$0xff] %v1475_v13 }
  0xc1   : > { %727 = vst [vmem:[#allocation3 + $0x1c8] sm:$0xff] %v719_v15  ;;  %v720_v21 = vpack.c.bf16 %v710_v18, %v709_v16  ;;  %v712_v22 = vsel %vm696_vm13, 1.0, %v2671_v6  ;;  %vm698_vm15 = vcmp.eq.s32.totalorder %v2423_v47, %v2887_v38  ;;  %v713_v24 = vsel %vm697_vm14, 1.0, %v2671_v6 }
  0xc2   : > { %v721_v27 = vpack.c.bf16 %v712_v22, %v711_v20  ;;  %v714_v30 = vsel %vm698_vm15, 1.0, %v2671_v6  ;;  %vm736_vm0 = vcmp.eq.s32.totalorder %v2424_v17, %v2799_v2  ;;  %vm737_vm1 = vcmp.eq.s32.totalorder %v2424_v17, %v2802_v3  ;;  %v2426_v22 = vld [vmem:[#allocation8 + $0xc] ss:$0 sm:$0xff] }
  0xc3   : > { %728 = vst [vmem:[#allocation3 + $0x228] sm:$0xff] %v720_v21  ;;  %v722_v32 = vpack.c.bf16 %v714_v30, %v713_v24  ;;  %v752_v33 = vsel %vm736_vm0, 1.0, %v2671_v6  ;;  %v753_v34 = vsel %vm737_vm1, 1.0, %v2671_v6  ;;  %vm738_vm2 = vcmp.eq.s32.totalorder %v2424_v17, %v2807_v4 }
  0xc4   : > { %729 = vst [vmem:[#allocation3 + $0x288] sm:$0xff] %v721_v27  ;;  %v768_v35 = vpack.c.bf16 %v753_v34, %v752_v33  ;;  %vm739_vm3 = vcmp.eq.s32.totalorder %v2424_v17, %v2810_v5  ;;  %v754_v36 = vsel %vm738_vm2, 1.0, %v2671_v6  ;;  %vm740_vm4 = vcmp.eq.s32.totalorder %v2424_v17, %v2814_v8 }
  0xc5   : > { %730 = vst [vmem:[#allocation3 + $0x2e8] sm:$0xff] %v722_v32  ;;  %v755_v37 = vsel %vm739_vm3, 1.0, %v2671_v6  ;;  %vm741_vm5 = vcmp.eq.s32.totalorder %v2424_v17, %v2817_v9  ;;  %v756_v39 = vsel %vm740_vm4, 1.0, %v2671_v6  ;;  %vm742_vm6 = vcmp.eq.s32.totalorder %v2424_v17, %v2820_v10 }
  0xc6   : > { %776 = vst [vmem:[#allocation3 + $0x50] sm:$0xff] %v768_v35  ;;  %v769_v40 = vpack.c.bf16 %v755_v37, %v754_v36  ;;  %v757_v41 = vsel %vm741_vm5, 1.0, %v2671_v6  ;;  %vm743_vm7 = vcmp.eq.s32.totalorder %v2424_v17, %v2829_v11  ;;  %v758_v42 = vsel %vm742_vm6, 1.0, %v2671_v6 }
  0xc7   : > { %v770_v43 = vpack.c.bf16 %v757_v41, %v756_v39  ;;  %v759_v44 = vsel %vm743_vm7, 1.0, %v2671_v6  ;;  %vm744_vm8 = vcmp.eq.s32.totalorder %v2424_v17, %v2845_v19  ;;  %vm745_vm9 = vcmp.eq.s32.totalorder %v2424_v17, %v2850_v23 }
  0xc8   : > { %777 = vst [vmem:[#allocation3 + $0xb0] sm:$0xff] %v769_v40  ;;  %v771_v45 = vpack.c.bf16 %v759_v44, %v758_v42  ;;  %v760_v46 = vsel %vm744_vm8, 1.0, %v2671_v6  ;;  %v761_v47 = vsel %vm745_vm9, 1.0, %v2671_v6  ;;  %vm746_vm10 = vcmp.eq.s32.totalorder %v2424_v17, %v2855_v25 }
  0xc9   : > { %778 = vst [vmem:[#allocation3 + $0x110] sm:$0xff] %v770_v43  ;;  %v772_v48 = vpack.c.bf16 %v761_v47, %v760_v46  ;;  %vm747_vm11 = vcmp.eq.s32.totalorder %v2424_v17, %v2858_v26  ;;  %v762_v49 = vsel %vm746_vm10, 1.0, %v2671_v6  ;;  %vm748_vm12 = vcmp.eq.s32.totalorder %v2424_v17, %v2864_v28 }
  0xca   : > { %779 = vst [vmem:[#allocation3 + $0x170] sm:$0xff] %v771_v45  ;;  %v763_v51 = vsel %vm747_vm11, 1.0, %v2671_v6  ;;  %vm749_vm13 = vcmp.eq.s32.totalorder %v2424_v17, %v2867_v29  ;;  %v764_v52 = vsel %vm748_vm12, 1.0, %v2671_v6  ;;  %vm750_vm14 = vcmp.eq.s32.totalorder %v2424_v17, %v2875_v31 }
  0xcb   : > { %780 = vst [vmem:[#allocation3 + $0x1d0] sm:$0xff] %v772_v48  ;;  %v773_v53 = vpack.c.bf16 %v763_v51, %v762_v49  ;;  %v765_v54 = vsel %vm749_vm13, 1.0, %v2671_v6  ;;  %vm751_vm15 = vcmp.eq.s32.totalorder %v2424_v17, %v2887_v38  ;;  %v766_v55 = vsel %vm750_vm14, 1.0, %v2671_v6 }
  0xcc   : > { %v774_v56 = vpack.c.bf16 %v765_v54, %v764_v52  ;;  %v767_v57 = vsel %vm751_vm15, 1.0, %v2671_v6  ;;  %vm789_vm0 = vcmp.eq.s32.totalorder %v3224_v50, %v2799_v2  ;;  %vm790_vm1 = vcmp.eq.s32.totalorder %v3224_v50, %v2802_v3  ;;  %v2427_v54 = vld [vmem:[#allocation8 + $0xd] ss:$0 sm:$0xff] }
  0xcd   : > { %781 = vst [vmem:[#allocation3 + $0x230] sm:$0xff] %v773_v53  ;;  %v775_v58 = vpack.c.bf16 %v767_v57, %v766_v55  ;;  %v805_v59 = vsel %vm789_vm0, 1.0, %v2671_v6  ;;  %v806_v60 = vsel %vm790_vm1, 1.0, %v2671_v6  ;;  %vm791_vm2 = vcmp.eq.s32.totalorder %v3224_v50, %v2807_v4 }
  0xce   : > { %782 = vst [vmem:[#allocation3 + $0x290] sm:$0xff] %v774_v56  ;;  %v821_v61 = vpack.c.bf16 %v806_v60, %v805_v59  ;;  %vm792_vm3 = vcmp.eq.s32.totalorder %v3224_v50, %v2810_v5  ;;  %v807_v62 = vsel %vm791_vm2, 1.0, %v2671_v6  ;;  %vm793_vm4 = vcmp.eq.s32.totalorder %v3224_v50, %v2814_v8 }
  0xcf   : > { %783 = vst [vmem:[#allocation3 + $0x2f0] sm:$0xff] %v775_v58  ;;  %v808_v63 = vsel %vm792_vm3, 1.0, %v2671_v6  ;;  %vm794_vm5 = vcmp.eq.s32.totalorder %v3224_v50, %v2817_v9  ;;  %v809_v0 = vsel %vm793_vm4, 1.0, %v2671_v6  ;;  %vm795_vm6 = vcmp.eq.s32.totalorder %v3224_v50, %v2820_v10 }
  0xd0   : > { %829 = vst [vmem:[#allocation3 + $0x58] sm:$0xff] %v821_v61  ;;  %v822_v1 = vpack.c.bf16 %v808_v63, %v807_v62  ;;  %v810_v7 = vsel %vm794_vm5, 1.0, %v2671_v6  ;;  %vm796_vm7 = vcmp.eq.s32.totalorder %v3224_v50, %v2829_v11  ;;  %v811_v12 = vsel %vm795_vm6, 1.0, %v2671_v6 }
  0xd1   : > { %v823_v14 = vpack.c.bf16 %v810_v7, %v809_v0  ;;  %v812_v15 = vsel %vm796_vm7, 1.0, %v2671_v6  ;;  %vm797_vm8 = vcmp.eq.s32.totalorder %v3224_v50, %v2845_v19  ;;  %vm798_vm9 = vcmp.eq.s32.totalorder %v3224_v50, %v2850_v23 }
  0xd2   : > { %830 = vst [vmem:[#allocation3 + $0xb8] sm:$0xff] %v822_v1  ;;  %v824_v16 = vpack.c.bf16 %v812_v15, %v811_v12  ;;  %v813_v17 = vsel %vm797_vm8, 1.0, %v2671_v6  ;;  %v814_v18 = vsel %vm798_vm9, 1.0, %v2671_v6  ;;  %vm799_vm10 = vcmp.eq.s32.totalorder %v3224_v50, %v2855_v25 }
  0xd3   : > { %831 = vst [vmem:[#allocation3 + $0x118] sm:$0xff] %v823_v14  ;;  %v825_v20 = vpack.c.bf16 %v814_v18, %v813_v17  ;;  %vm800_vm11 = vcmp.eq.s32.totalorder %v3224_v50, %v2858_v26  ;;  %v815_v21 = vsel %vm799_vm10, 1.0, %v2671_v6  ;;  %vm801_vm12 = vcmp.eq.s32.totalorder %v3224_v50, %v2864_v28 }
  0xd4   : > { %832 = vst [vmem:[#allocation3 + $0x178] sm:$0xff] %v824_v16  ;;  %v816_v24 = vsel %vm800_vm11, 1.0, %v2671_v6  ;;  %vm802_vm13 = vcmp.eq.s32.totalorder %v3224_v50, %v2867_v29  ;;  %v817_v27 = vsel %vm801_vm12, 1.0, %v2671_v6  ;;  %vm803_vm14 = vcmp.eq.s32.totalorder %v3224_v50, %v2875_v31 }
  0xd5   : > { %833 = vst [vmem:[#allocation3 + $0x1d8] sm:$0xff] %v825_v20  ;;  %v826_v30 = vpack.c.bf16 %v816_v24, %v815_v21  ;;  %v818_v32 = vsel %vm802_vm13, 1.0, %v2671_v6  ;;  %vm804_vm15 = vcmp.eq.s32.totalorder %v3224_v50, %v2887_v38  ;;  %v819_v33 = vsel %vm803_vm14, 1.0, %v2671_v6 }
  0xd6   : > { %v827_v34 = vpack.c.bf16 %v818_v32, %v817_v27  ;;  %v820_v35 = vsel %vm804_vm15, 1.0, %v2671_v6  ;;  %vm843_vm0 = vcmp.eq.s32.totalorder %v2426_v22, %v2799_v2  ;;  %vm844_vm1 = vcmp.eq.s32.totalorder %v2426_v22, %v2802_v3 }
  0xd7   : > { %834 = vst [vmem:[#allocation3 + $0x238] sm:$0xff] %v826_v30  ;;  %v828_v36 = vpack.c.bf16 %v820_v35, %v819_v33  ;;  %v859_v37 = vsel %vm843_vm0, 1.0, %v2671_v6  ;;  %v860_v39 = vsel %vm844_vm1, 1.0, %v2671_v6  ;;  %vm845_vm2 = vcmp.eq.s32.totalorder %v2426_v22, %v2807_v4  ;;  %v2428_v30 = vld [vmem:[#allocation8 + $0xe] ss:$0 sm:$0xff] }
  0xd8   : > { %835 = vst [vmem:[#allocation3 + $0x298] sm:$0xff] %v827_v34  ;;  %v875_v40 = vpack.c.bf16 %v860_v39, %v859_v37  ;;  %vm846_vm3 = vcmp.eq.s32.totalorder %v2426_v22, %v2810_v5  ;;  %v861_v41 = vsel %vm845_vm2, 1.0, %v2671_v6  ;;  %vm847_vm4 = vcmp.eq.s32.totalorder %v2426_v22, %v2814_v8 }
  0xd9   : > { %836 = vst [vmem:[#allocation3 + $0x2f8] sm:$0xff] %v828_v36  ;;  %v862_v42 = vsel %vm846_vm3, 1.0, %v2671_v6  ;;  %vm848_vm5 = vcmp.eq.s32.totalorder %v2426_v22, %v2817_v9  ;;  %v863_v43 = vsel %vm847_vm4, 1.0, %v2671_v6  ;;  %vm849_vm6 = vcmp.eq.s32.totalorder %v2426_v22, %v2820_v10 }
  0xda   : > { %884 = vst [vmem:[#allocation3 + $0x300] sm:$0xff] %v875_v40  ;;  %v876_v44 = vpack.c.bf16 %v862_v42, %v861_v41  ;;  %v864_v45 = vsel %vm848_vm5, 1.0, %v2671_v6  ;;  %vm850_vm7 = vcmp.eq.s32.totalorder %v2426_v22, %v2829_v11  ;;  %v865_v46 = vsel %vm849_vm6, 1.0, %v2671_v6 }
  0xdb   : > { %v877_v47 = vpack.c.bf16 %v864_v45, %v863_v43  ;;  %v866_v48 = vsel %vm850_vm7, 1.0, %v2671_v6  ;;  %vm851_vm8 = vcmp.eq.s32.totalorder %v2426_v22, %v2845_v19  ;;  %vm852_vm9 = vcmp.eq.s32.totalorder %v2426_v22, %v2850_v23 }
  0xdc   : > { %885 = vst [vmem:[#allocation3 + $0x360] sm:$0xff] %v876_v44  ;;  %v878_v49 = vpack.c.bf16 %v866_v48, %v865_v46  ;;  %v867_v50 = vsel %vm851_vm8, 1.0, %v2671_v6  ;;  %v868_v51 = vsel %vm852_vm9, 1.0, %v2671_v6  ;;  %vm853_vm10 = vcmp.eq.s32.totalorder %v2426_v22, %v2855_v25 }
  0xdd   : > { %886 = vst [vmem:[#allocation3 + $0x3c0] sm:$0xff] %v877_v47  ;;  %v879_v52 = vpack.c.bf16 %v868_v51, %v867_v50  ;;  %vm854_vm11 = vcmp.eq.s32.totalorder %v2426_v22, %v2858_v26  ;;  %v869_v53 = vsel %vm853_vm10, 1.0, %v2671_v6  ;;  %vm855_vm12 = vcmp.eq.s32.totalorder %v2426_v22, %v2864_v28 }
  0xde   : > { %887 = vst [vmem:[#allocation3 + $0x420] sm:$0xff] %v878_v49  ;;  %v870_v55 = vsel %vm854_vm11, 1.0, %v2671_v6  ;;  %vm856_vm13 = vcmp.eq.s32.totalorder %v2426_v22, %v2867_v29  ;;  %v871_v56 = vsel %vm855_vm12, 1.0, %v2671_v6  ;;  %vm857_vm14 = vcmp.eq.s32.totalorder %v2426_v22, %v2875_v31 }
  0xdf   : > { %888 = vst [vmem:[#allocation3 + $0x480] sm:$0xff] %v879_v52  ;;  %v880_v57 = vpack.c.bf16 %v870_v55, %v869_v53  ;;  %v872_v58 = vsel %vm856_vm13, 1.0, %v2671_v6  ;;  %vm858_vm15 = vcmp.eq.s32.totalorder %v2426_v22, %v2887_v38  ;;  %v873_v59 = vsel %vm857_vm14, 1.0, %v2671_v6 }
  0xe0   : > { %v881_v60 = vpack.c.bf16 %v872_v58, %v871_v56  ;;  %v874_v61 = vsel %vm858_vm15, 1.0, %v2671_v6  ;;  %vm897_vm0 = vcmp.eq.s32.totalorder %v2427_v54, %v2799_v2  ;;  %vm898_vm1 = vcmp.eq.s32.totalorder %v2427_v54, %v2802_v3 }
  0xe1   : > { %889 = vst [vmem:[#allocation3 + $0x4e0] sm:$0xff] %v880_v57  ;;  %v882_v62 = vpack.c.bf16 %v874_v61, %v873_v59  ;;  %v913_v63 = vsel %vm897_vm0, 1.0, %v2671_v6  ;;  %v914_v0 = vsel %vm898_vm1, 1.0, %v2671_v6  ;;  %vm899_vm2 = vcmp.eq.s32.totalorder %v2427_v54, %v2807_v4  ;;  %v2429_v57 = vld [vmem:[#allocation8 + $0xf] ss:$0 sm:$0xff] }
  0xe2   : > { %890 = vst [vmem:[#allocation3 + $0x540] sm:$0xff] %v881_v60  ;;  %v929_v1 = vpack.c.bf16 %v914_v0, %v913_v63  ;;  %vm900_vm3 = vcmp.eq.s32.totalorder %v2427_v54, %v2810_v5  ;;  %v915_v7 = vsel %vm899_vm2, 1.0, %v2671_v6  ;;  %vm901_vm4 = vcmp.eq.s32.totalorder %v2427_v54, %v2814_v8 }
  0xe3   : > { %891 = vst [vmem:[#allocation3 + $0x5a0] sm:$0xff] %v882_v62  ;;  %v916_v12 = vsel %vm900_vm3, 1.0, %v2671_v6  ;;  %vm902_vm5 = vcmp.eq.s32.totalorder %v2427_v54, %v2817_v9  ;;  %v917_v13 = vsel %vm901_vm4, 1.0, %v2671_v6  ;;  %vm903_vm6 = vcmp.eq.s32.totalorder %v2427_v54, %v2820_v10 }
  0xe4   : > { %937 = vst [vmem:[#allocation3 + $0x308] sm:$0xff] %v929_v1  ;;  %v930_v14 = vpack.c.bf16 %v916_v12, %v915_v7  ;;  %v918_v15 = vsel %vm902_vm5, 1.0, %v2671_v6  ;;  %vm904_vm7 = vcmp.eq.s32.totalorder %v2427_v54, %v2829_v11  ;;  %v919_v16 = vsel %vm903_vm6, 1.0, %v2671_v6 }
  0xe5   : > { %v931_v17 = vpack.c.bf16 %v918_v15, %v917_v13  ;;  %v920_v18 = vsel %vm904_vm7, 1.0, %v2671_v6  ;;  %vm905_vm8 = vcmp.eq.s32.totalorder %v2427_v54, %v2845_v19  ;;  %vm906_vm9 = vcmp.eq.s32.totalorder %v2427_v54, %v2850_v23 }
  0xe6   : > { %938 = vst [vmem:[#allocation3 + $0x368] sm:$0xff] %v930_v14  ;;  %v932_v20 = vpack.c.bf16 %v920_v18, %v919_v16  ;;  %v921_v21 = vsel %vm905_vm8, 1.0, %v2671_v6  ;;  %v922_v22 = vsel %vm906_vm9, 1.0, %v2671_v6  ;;  %vm907_vm10 = vcmp.eq.s32.totalorder %v2427_v54, %v2855_v25 }
  0xe7   : > { %939 = vst [vmem:[#allocation3 + $0x3c8] sm:$0xff] %v931_v17  ;;  %v933_v24 = vpack.c.bf16 %v922_v22, %v921_v21  ;;  %vm908_vm11 = vcmp.eq.s32.totalorder %v2427_v54, %v2858_v26  ;;  %v923_v27 = vsel %vm907_vm10, 1.0, %v2671_v6  ;;  %vm909_vm12 = vcmp.eq.s32.totalorder %v2427_v54, %v2864_v28 }
  0xe8   : > { %940 = vst [vmem:[#allocation3 + $0x428] sm:$0xff] %v932_v20  ;;  %v924_v32 = vsel %vm908_vm11, 1.0, %v2671_v6  ;;  %vm910_vm13 = vcmp.eq.s32.totalorder %v2427_v54, %v2867_v29  ;;  %v925_v33 = vsel %vm909_vm12, 1.0, %v2671_v6  ;;  %vm911_vm14 = vcmp.eq.s32.totalorder %v2427_v54, %v2875_v31 }
  0xe9   : > { %941 = vst [vmem:[#allocation3 + $0x488] sm:$0xff] %v933_v24  ;;  %v934_v34 = vpack.c.bf16 %v924_v32, %v923_v27  ;;  %v926_v35 = vsel %vm910_vm13, 1.0, %v2671_v6  ;;  %vm912_vm15 = vcmp.eq.s32.totalorder %v2427_v54, %v2887_v38  ;;  %v927_v36 = vsel %vm911_vm14, 1.0, %v2671_v6 }
  0xea   : > { %v935_v37 = vpack.c.bf16 %v926_v35, %v925_v33  ;;  %v928_v39 = vsel %vm912_vm15, 1.0, %v2671_v6  ;;  %vm950_vm0 = vcmp.eq.s32.totalorder %v2428_v30, %v2799_v2  ;;  %vm951_vm1 = vcmp.eq.s32.totalorder %v2428_v30, %v2802_v3 }
  0xeb   : > { %942 = vst [vmem:[#allocation3 + $0x4e8] sm:$0xff] %v934_v34  ;;  %v936_v40 = vpack.c.bf16 %v928_v39, %v927_v36  ;;  %v966_v41 = vsel %vm950_vm0, 1.0, %v2671_v6  ;;  %v967_v42 = vsel %vm951_vm1, 1.0, %v2671_v6  ;;  %vm952_vm2 = vcmp.eq.s32.totalorder %v2428_v30, %v2807_v4  ;;  %v2430_v34 = vld [vmem:[#allocation8 + $0x10] ss:$0 sm:$0xff] }
  0xec   : > { %943 = vst [vmem:[#allocation3 + $0x548] sm:$0xff] %v935_v37  ;;  %v982_v43 = vpack.c.bf16 %v967_v42, %v966_v41  ;;  %vm953_vm3 = vcmp.eq.s32.totalorder %v2428_v30, %v2810_v5  ;;  %v968_v44 = vsel %vm952_vm2, 1.0, %v2671_v6  ;;  %vm954_vm4 = vcmp.eq.s32.totalorder %v2428_v30, %v2814_v8 }
  0xed   : > { %944 = vst [vmem:[#allocation3 + $0x5a8] sm:$0xff] %v936_v40  ;;  %v969_v45 = vsel %vm953_vm3, 1.0, %v2671_v6  ;;  %vm955_vm5 = vcmp.eq.s32.totalorder %v2428_v30, %v2817_v9  ;;  %v970_v46 = vsel %vm954_vm4, 1.0, %v2671_v6  ;;  %vm956_vm6 = vcmp.eq.s32.totalorder %v2428_v30, %v2820_v10 }
  0xee   : > { %990 = vst [vmem:[#allocation3 + $0x310] sm:$0xff] %v982_v43  ;;  %v983_v47 = vpack.c.bf16 %v969_v45, %v968_v44  ;;  %v971_v48 = vsel %vm955_vm5, 1.0, %v2671_v6  ;;  %vm957_vm7 = vcmp.eq.s32.totalorder %v2428_v30, %v2829_v11  ;;  %v972_v49 = vsel %vm956_vm6, 1.0, %v2671_v6 }
  0xef   : > { %v984_v50 = vpack.c.bf16 %v971_v48, %v970_v46  ;;  %v973_v51 = vsel %vm957_vm7, 1.0, %v2671_v6  ;;  %vm958_vm8 = vcmp.eq.s32.totalorder %v2428_v30, %v2845_v19  ;;  %vm959_vm9 = vcmp.eq.s32.totalorder %v2428_v30, %v2850_v23 }
  0xf0   : > { %991 = vst [vmem:[#allocation3 + $0x370] sm:$0xff] %v983_v47  ;;  %v985_v52 = vpack.c.bf16 %v973_v51, %v972_v49  ;;  %v974_v53 = vsel %vm958_vm8, 1.0, %v2671_v6  ;;  %v975_v54 = vsel %vm959_vm9, 1.0, %v2671_v6  ;;  %vm960_vm10 = vcmp.eq.s32.totalorder %v2428_v30, %v2855_v25 }
  0xf1   : > { %992 = vst [vmem:[#allocation3 + $0x3d0] sm:$0xff] %v984_v50  ;;  %v986_v55 = vpack.c.bf16 %v975_v54, %v974_v53  ;;  %vm961_vm11 = vcmp.eq.s32.totalorder %v2428_v30, %v2858_v26  ;;  %v976_v56 = vsel %vm960_vm10, 1.0, %v2671_v6  ;;  %vm962_vm12 = vcmp.eq.s32.totalorder %v2428_v30, %v2864_v28 }
  0xf2   : > { %993 = vst [vmem:[#allocation3 + $0x430] sm:$0xff] %v985_v52  ;;  %v977_v58 = vsel %vm961_vm11, 1.0, %v2671_v6  ;;  %vm963_vm13 = vcmp.eq.s32.totalorder %v2428_v30, %v2867_v29  ;;  %v978_v59 = vsel %vm962_vm12, 1.0, %v2671_v6  ;;  %vm964_vm14 = vcmp.eq.s32.totalorder %v2428_v30, %v2875_v31 }
  0xf3   : > { %994 = vst [vmem:[#allocation3 + $0x490] sm:$0xff] %v986_v55  ;;  %v987_v60 = vpack.c.bf16 %v977_v58, %v976_v56  ;;  %v979_v61 = vsel %vm963_vm13, 1.0, %v2671_v6  ;;  %vm965_vm15 = vcmp.eq.s32.totalorder %v2428_v30, %v2887_v38  ;;  %v980_v62 = vsel %vm964_vm14, 1.0, %v2671_v6 }
  0xf4   : > { %v988_v63 = vpack.c.bf16 %v979_v61, %v978_v59  ;;  %v981_v0 = vsel %vm965_vm15, 1.0, %v2671_v6  ;;  %vm1003_vm0 = vcmp.eq.s32.totalorder %v2429_v57, %v2799_v2  ;;  %vm1004_vm1 = vcmp.eq.s32.totalorder %v2429_v57, %v2802_v3 }
  0xf5   : > { %995 = vst [vmem:[#allocation3 + $0x4f0] sm:$0xff] %v987_v60  ;;  %v989_v1 = vpack.c.bf16 %v981_v0, %v980_v62  ;;  %v1019_v7 = vsel %vm1003_vm0, 1.0, %v2671_v6  ;;  %v1020_v12 = vsel %vm1004_vm1, 1.0, %v2671_v6  ;;  %vm1005_vm2 = vcmp.eq.s32.totalorder %v2429_v57, %v2807_v4  ;;  %v2431_v60 = vld [vmem:[#allocation8 + $0x11] ss:$0 sm:$0xff] }
  0xf6   : > { %996 = vst [vmem:[#allocation3 + $0x550] sm:$0xff] %v988_v63  ;;  %v1035_v13 = vpack.c.bf16 %v1020_v12, %v1019_v7  ;;  %vm1006_vm3 = vcmp.eq.s32.totalorder %v2429_v57, %v2810_v5  ;;  %v1021_v14 = vsel %vm1005_vm2, 1.0, %v2671_v6  ;;  %vm1007_vm4 = vcmp.eq.s32.totalorder %v2429_v57, %v2814_v8 }
  0xf7   : > { %997 = vst [vmem:[#allocation3 + $0x5b0] sm:$0xff] %v989_v1  ;;  %v1022_v15 = vsel %vm1006_vm3, 1.0, %v2671_v6  ;;  %vm1008_vm5 = vcmp.eq.s32.totalorder %v2429_v57, %v2817_v9  ;;  %v1023_v16 = vsel %vm1007_vm4, 1.0, %v2671_v6  ;;  %vm1009_vm6 = vcmp.eq.s32.totalorder %v2429_v57, %v2820_v10 }
  0xf8   : > { %1043 = vst [vmem:[#allocation3 + $0x318] sm:$0xff] %v1035_v13  ;;  %v1036_v17 = vpack.c.bf16 %v1022_v15, %v1021_v14  ;;  %v1024_v18 = vsel %vm1008_vm5, 1.0, %v2671_v6  ;;  %vm1010_vm7 = vcmp.eq.s32.totalorder %v2429_v57, %v2829_v11  ;;  %v1025_v20 = vsel %vm1009_vm6, 1.0, %v2671_v6 }
  0xf9   : > { %v1037_v21 = vpack.c.bf16 %v1024_v18, %v1023_v16  ;;  %v1026_v22 = vsel %vm1010_vm7, 1.0, %v2671_v6  ;;  %vm1011_vm8 = vcmp.eq.s32.totalorder %v2429_v57, %v2845_v19  ;;  %vm1012_vm9 = vcmp.eq.s32.totalorder %v2429_v57, %v2850_v23 }
  0xfa   : > { %1044 = vst [vmem:[#allocation3 + $0x378] sm:$0xff] %v1036_v17  ;;  %v1038_v24 = vpack.c.bf16 %v1026_v22, %v1025_v20  ;;  %v1027_v27 = vsel %vm1011_vm8, 1.0, %v2671_v6  ;;  %v1028_v30 = vsel %vm1012_vm9, 1.0, %v2671_v6  ;;  %vm1013_vm10 = vcmp.eq.s32.totalorder %v2429_v57, %v2855_v25 }
  0xfb   : > { %1045 = vst [vmem:[#allocation3 + $0x3d8] sm:$0xff] %v1037_v21  ;;  %v1039_v32 = vpack.c.bf16 %v1028_v30, %v1027_v27  ;;  %vm1014_vm11 = vcmp.eq.s32.totalorder %v2429_v57, %v2858_v26  ;;  %v1029_v33 = vsel %vm1013_vm10, 1.0, %v2671_v6  ;;  %vm1015_vm12 = vcmp.eq.s32.totalorder %v2429_v57, %v2864_v28 }
  0xfc   : > { %1046 = vst [vmem:[#allocation3 + $0x438] sm:$0xff] %v1038_v24  ;;  %v1030_v35 = vsel %vm1014_vm11, 1.0, %v2671_v6  ;;  %vm1016_vm13 = vcmp.eq.s32.totalorder %v2429_v57, %v2867_v29  ;;  %v1031_v36 = vsel %vm1015_vm12, 1.0, %v2671_v6  ;;  %vm1017_vm14 = vcmp.eq.s32.totalorder %v2429_v57, %v2875_v31 }
  0xfd   : > { %1047 = vst [vmem:[#allocation3 + $0x498] sm:$0xff] %v1039_v32  ;;  %v1040_v37 = vpack.c.bf16 %v1030_v35, %v1029_v33  ;;  %v1032_v39 = vsel %vm1016_vm13, 1.0, %v2671_v6  ;;  %vm1018_vm15 = vcmp.eq.s32.totalorder %v2429_v57, %v2887_v38  ;;  %v1033_v40 = vsel %vm1017_vm14, 1.0, %v2671_v6 }
  0xfe   : > { %v1041_v41 = vpack.c.bf16 %v1032_v39, %v1031_v36  ;;  %v1034_v42 = vsel %vm1018_vm15, 1.0, %v2671_v6  ;;  %vm1056_vm0 = vcmp.eq.s32.totalorder %v2430_v34, %v2799_v2  ;;  %vm1057_vm1 = vcmp.eq.s32.totalorder %v2430_v34, %v2802_v3 }
  0xff   : > { %1048 = vst [vmem:[#allocation3 + $0x4f8] sm:$0xff] %v1040_v37  ;;  %v1042_v43 = vpack.c.bf16 %v1034_v42, %v1033_v40  ;;  %v1072_v44 = vsel %vm1056_vm0, 1.0, %v2671_v6  ;;  %v1073_v45 = vsel %vm1057_vm1, 1.0, %v2671_v6  ;;  %vm1058_vm2 = vcmp.eq.s32.totalorder %v2430_v34, %v2807_v4  ;;  %v2432_v37 = vld [vmem:[#allocation8 + $0x12] ss:$0 sm:$0xff] }
 0x100   : > { %1049 = vst [vmem:[#allocation3 + $0x558] sm:$0xff] %v1041_v41  ;;  %v1088_v46 = vpack.c.bf16 %v1073_v45, %v1072_v44  ;;  %vm1059_vm3 = vcmp.eq.s32.totalorder %v2430_v34, %v2810_v5  ;;  %v1074_v47 = vsel %vm1058_vm2, 1.0, %v2671_v6  ;;  %vm1060_vm4 = vcmp.eq.s32.totalorder %v2430_v34, %v2814_v8 }
 0x101   : > { %1050 = vst [vmem:[#allocation3 + $0x5b8] sm:$0xff] %v1042_v43  ;;  %v1075_v48 = vsel %vm1059_vm3, 1.0, %v2671_v6  ;;  %vm1061_vm5 = vcmp.eq.s32.totalorder %v2430_v34, %v2817_v9  ;;  %v1076_v49 = vsel %vm1060_vm4, 1.0, %v2671_v6  ;;  %vm1062_vm6 = vcmp.eq.s32.totalorder %v2430_v34, %v2820_v10 }
 0x102   : > { %1096 = vst [vmem:[#allocation3 + $0x320] sm:$0xff] %v1088_v46  ;;  %v1089_v50 = vpack.c.bf16 %v1075_v48, %v1074_v47  ;;  %v1077_v51 = vsel %vm1061_vm5, 1.0, %v2671_v6  ;;  %vm1063_vm7 = vcmp.eq.s32.totalorder %v2430_v34, %v2829_v11  ;;  %v1078_v52 = vsel %vm1062_vm6, 1.0, %v2671_v6 }
 0x103   : > { %v1090_v53 = vpack.c.bf16 %v1077_v51, %v1076_v49  ;;  %v1079_v54 = vsel %vm1063_vm7, 1.0, %v2671_v6  ;;  %vm1064_vm8 = vcmp.eq.s32.totalorder %v2430_v34, %v2845_v19  ;;  %vm1065_vm9 = vcmp.eq.s32.totalorder %v2430_v34, %v2850_v23 }
 0x104   : > { %1097 = vst [vmem:[#allocation3 + $0x380] sm:$0xff] %v1089_v50  ;;  %v1091_v55 = vpack.c.bf16 %v1079_v54, %v1078_v52  ;;  %v1080_v56 = vsel %vm1064_vm8, 1.0, %v2671_v6  ;;  %v1081_v57 = vsel %vm1065_vm9, 1.0, %v2671_v6  ;;  %vm1066_vm10 = vcmp.eq.s32.totalorder %v2430_v34, %v2855_v25 }
 0x105   : > { %1098 = vst [vmem:[#allocation3 + $0x3e0] sm:$0xff] %v1090_v53  ;;  %v1092_v58 = vpack.c.bf16 %v1081_v57, %v1080_v56  ;;  %vm1067_vm11 = vcmp.eq.s32.totalorder %v2430_v34, %v2858_v26  ;;  %v1082_v59 = vsel %vm1066_vm10, 1.0, %v2671_v6  ;;  %vm1068_vm12 = vcmp.eq.s32.totalorder %v2430_v34, %v2864_v28 }
 0x106   : > { %1099 = vst [vmem:[#allocation3 + $0x440] sm:$0xff] %v1091_v55  ;;  %v1083_v61 = vsel %vm1067_vm11, 1.0, %v2671_v6  ;;  %vm1069_vm13 = vcmp.eq.s32.totalorder %v2430_v34, %v2867_v29  ;;  %v1084_v62 = vsel %vm1068_vm12, 1.0, %v2671_v6  ;;  %vm1070_vm14 = vcmp.eq.s32.totalorder %v2430_v34, %v2875_v31 }
 0x107   : > { %1100 = vst [vmem:[#allocation3 + $0x4a0] sm:$0xff] %v1092_v58  ;;  %v1093_v63 = vpack.c.bf16 %v1083_v61, %v1082_v59  ;;  %v1085_v0 = vsel %vm1069_vm13, 1.0, %v2671_v6  ;;  %vm1071_vm15 = vcmp.eq.s32.totalorder %v2430_v34, %v2887_v38  ;;  %v1086_v1 = vsel %vm1070_vm14, 1.0, %v2671_v6 }
 0x108   : > { %v1094_v7 = vpack.c.bf16 %v1085_v0, %v1084_v62  ;;  %v1087_v12 = vsel %vm1071_vm15, 1.0, %v2671_v6  ;;  %vm1109_vm0 = vcmp.eq.s32.totalorder %v2431_v60, %v2799_v2  ;;  %vm1110_vm1 = vcmp.eq.s32.totalorder %v2431_v60, %v2802_v3 }
 0x109   : > { %1101 = vst [vmem:[#allocation3 + $0x500] sm:$0xff] %v1093_v63  ;;  %v1095_v13 = vpack.c.bf16 %v1087_v12, %v1086_v1  ;;  %v1125_v14 = vsel %vm1109_vm0, 1.0, %v2671_v6  ;;  %v1126_v15 = vsel %vm1110_vm1, 1.0, %v2671_v6  ;;  %vm1111_vm2 = vcmp.eq.s32.totalorder %v2431_v60, %v2807_v4  ;;  %v2433_v63 = vld [vmem:[#allocation8 + $0x13] ss:$0 sm:$0xff] }
 0x10a   : > { %1102 = vst [vmem:[#allocation3 + $0x560] sm:$0xff] %v1094_v7  ;;  %v1141_v16 = vpack.c.bf16 %v1126_v15, %v1125_v14  ;;  %vm1112_vm3 = vcmp.eq.s32.totalorder %v2431_v60, %v2810_v5  ;;  %v1127_v17 = vsel %vm1111_vm2, 1.0, %v2671_v6  ;;  %vm1113_vm4 = vcmp.eq.s32.totalorder %v2431_v60, %v2814_v8 }
 0x10b   : > { %1103 = vst [vmem:[#allocation3 + $0x5c0] sm:$0xff] %v1095_v13  ;;  %v1128_v18 = vsel %vm1112_vm3, 1.0, %v2671_v6  ;;  %vm1114_vm5 = vcmp.eq.s32.totalorder %v2431_v60, %v2817_v9  ;;  %v1129_v20 = vsel %vm1113_vm4, 1.0, %v2671_v6  ;;  %vm1115_vm6 = vcmp.eq.s32.totalorder %v2431_v60, %v2820_v10 }
 0x10c   : > { %1149 = vst [vmem:[#allocation3 + $0x328] sm:$0xff] %v1141_v16  ;;  %v1142_v21 = vpack.c.bf16 %v1128_v18, %v1127_v17  ;;  %v1130_v22 = vsel %vm1114_vm5, 1.0, %v2671_v6  ;;  %vm1116_vm7 = vcmp.eq.s32.totalorder %v2431_v60, %v2829_v11  ;;  %v1131_v24 = vsel %vm1115_vm6, 1.0, %v2671_v6 }
 0x10d   : > { %v1143_v27 = vpack.c.bf16 %v1130_v22, %v1129_v20  ;;  %v1132_v30 = vsel %vm1116_vm7, 1.0, %v2671_v6  ;;  %vm1117_vm8 = vcmp.eq.s32.totalorder %v2431_v60, %v2845_v19  ;;  %vm1118_vm9 = vcmp.eq.s32.totalorder %v2431_v60, %v2850_v23 }
 0x10e   : > { %1150 = vst [vmem:[#allocation3 + $0x388] sm:$0xff] %v1142_v21  ;;  %v1144_v32 = vpack.c.bf16 %v1132_v30, %v1131_v24  ;;  %v1133_v33 = vsel %vm1117_vm8, 1.0, %v2671_v6  ;;  %v1134_v34 = vsel %vm1118_vm9, 1.0, %v2671_v6  ;;  %vm1119_vm10 = vcmp.eq.s32.totalorder %v2431_v60, %v2855_v25 }
 0x10f   : > { %1151 = vst [vmem:[#allocation3 + $0x3e8] sm:$0xff] %v1143_v27  ;;  %v1145_v35 = vpack.c.bf16 %v1134_v34, %v1133_v33  ;;  %vm1120_vm11 = vcmp.eq.s32.totalorder %v2431_v60, %v2858_v26  ;;  %v1135_v36 = vsel %vm1119_vm10, 1.0, %v2671_v6  ;;  %vm1121_vm12 = vcmp.eq.s32.totalorder %v2431_v60, %v2864_v28 }
 0x110   : > { %1152 = vst [vmem:[#allocation3 + $0x448] sm:$0xff] %v1144_v32  ;;  %v1136_v39 = vsel %vm1120_vm11, 1.0, %v2671_v6  ;;  %vm1122_vm13 = vcmp.eq.s32.totalorder %v2431_v60, %v2867_v29  ;;  %v1137_v40 = vsel %vm1121_vm12, 1.0, %v2671_v6  ;;  %vm1123_vm14 = vcmp.eq.s32.totalorder %v2431_v60, %v2875_v31 }
 0x111   : > { %1153 = vst [vmem:[#allocation3 + $0x4a8] sm:$0xff] %v1145_v35  ;;  %v1146_v41 = vpack.c.bf16 %v1136_v39, %v1135_v36  ;;  %v1138_v42 = vsel %vm1122_vm13, 1.0, %v2671_v6  ;;  %vm1124_vm15 = vcmp.eq.s32.totalorder %v2431_v60, %v2887_v38  ;;  %v1139_v43 = vsel %vm1123_vm14, 1.0, %v2671_v6 }
 0x112   : > { %v1147_v44 = vpack.c.bf16 %v1138_v42, %v1137_v40  ;;  %v1140_v45 = vsel %vm1124_vm15, 1.0, %v2671_v6  ;;  %vm1162_vm0 = vcmp.eq.s32.totalorder %v2432_v37, %v2799_v2  ;;  %vm1163_vm1 = vcmp.eq.s32.totalorder %v2432_v37, %v2802_v3 }
 0x113   : > { %1154 = vst [vmem:[#allocation3 + $0x508] sm:$0xff] %v1146_v41  ;;  %v1148_v46 = vpack.c.bf16 %v1140_v45, %v1139_v43  ;;  %v1178_v47 = vsel %vm1162_vm0, 1.0, %v2671_v6  ;;  %v1179_v48 = vsel %vm1163_vm1, 1.0, %v2671_v6  ;;  %vm1164_vm2 = vcmp.eq.s32.totalorder %v2432_v37, %v2807_v4  ;;  %v2434_v41 = vld [vmem:[#allocation8 + $0x14] ss:$0 sm:$0xff] }
 0x114   : > { %1155 = vst [vmem:[#allocation3 + $0x568] sm:$0xff] %v1147_v44  ;;  %v1194_v49 = vpack.c.bf16 %v1179_v48, %v1178_v47  ;;  %vm1165_vm3 = vcmp.eq.s32.totalorder %v2432_v37, %v2810_v5  ;;  %v1180_v50 = vsel %vm1164_vm2, 1.0, %v2671_v6  ;;  %vm1166_vm4 = vcmp.eq.s32.totalorder %v2432_v37, %v2814_v8 }
 0x115   : > { %1156 = vst [vmem:[#allocation3 + $0x5c8] sm:$0xff] %v1148_v46  ;;  %v1181_v51 = vsel %vm1165_vm3, 1.0, %v2671_v6  ;;  %vm1167_vm5 = vcmp.eq.s32.totalorder %v2432_v37, %v2817_v9  ;;  %v1182_v52 = vsel %vm1166_vm4, 1.0, %v2671_v6  ;;  %vm1168_vm6 = vcmp.eq.s32.totalorder %v2432_v37, %v2820_v10 }
 0x116   : > { %1202 = vst [vmem:[#allocation3 + $0x330] sm:$0xff] %v1194_v49  ;;  %v1195_v53 = vpack.c.bf16 %v1181_v51, %v1180_v50  ;;  %v1183_v54 = vsel %vm1167_vm5, 1.0, %v2671_v6  ;;  %vm1169_vm7 = vcmp.eq.s32.totalorder %v2432_v37, %v2829_v11  ;;  %v1184_v55 = vsel %vm1168_vm6, 1.0, %v2671_v6 }
 0x117   : > { %v1196_v56 = vpack.c.bf16 %v1183_v54, %v1182_v52  ;;  %v1185_v57 = vsel %vm1169_vm7, 1.0, %v2671_v6  ;;  %vm1170_vm8 = vcmp.eq.s32.totalorder %v2432_v37, %v2845_v19  ;;  %vm1171_vm9 = vcmp.eq.s32.totalorder %v2432_v37, %v2850_v23 }
 0x118   : > { %1203 = vst [vmem:[#allocation3 + $0x390] sm:$0xff] %v1195_v53  ;;  %v1197_v58 = vpack.c.bf16 %v1185_v57, %v1184_v55  ;;  %v1186_v59 = vsel %vm1170_vm8, 1.0, %v2671_v6  ;;  %v1187_v60 = vsel %vm1171_vm9, 1.0, %v2671_v6  ;;  %vm1172_vm10 = vcmp.eq.s32.totalorder %v2432_v37, %v2855_v25 }
 0x119   : > { %1204 = vst [vmem:[#allocation3 + $0x3f0] sm:$0xff] %v1196_v56  ;;  %v1198_v61 = vpack.c.bf16 %v1187_v60, %v1186_v59  ;;  %vm1173_vm11 = vcmp.eq.s32.totalorder %v2432_v37, %v2858_v26  ;;  %v1188_v62 = vsel %vm1172_vm10, 1.0, %v2671_v6  ;;  %vm1174_vm12 = vcmp.eq.s32.totalorder %v2432_v37, %v2864_v28 }
 0x11a   : > { %1205 = vst [vmem:[#allocation3 + $0x450] sm:$0xff] %v1197_v58  ;;  %v1189_v0 = vsel %vm1173_vm11, 1.0, %v2671_v6  ;;  %vm1175_vm13 = vcmp.eq.s32.totalorder %v2432_v37, %v2867_v29  ;;  %v1190_v1 = vsel %vm1174_vm12, 1.0, %v2671_v6  ;;  %vm1176_vm14 = vcmp.eq.s32.totalorder %v2432_v37, %v2875_v31 }
 0x11b   : > { %1206 = vst [vmem:[#allocation3 + $0x4b0] sm:$0xff] %v1198_v61  ;;  %v1199_v7 = vpack.c.bf16 %v1189_v0, %v1188_v62  ;;  %v1191_v12 = vsel %vm1175_vm13, 1.0, %v2671_v6  ;;  %vm1177_vm15 = vcmp.eq.s32.totalorder %v2432_v37, %v2887_v38  ;;  %v1192_v13 = vsel %vm1176_vm14, 1.0, %v2671_v6 }
 0x11c   : > { %v1200_v14 = vpack.c.bf16 %v1191_v12, %v1190_v1  ;;  %v1193_v15 = vsel %vm1177_vm15, 1.0, %v2671_v6  ;;  %vm1215_vm0 = vcmp.eq.s32.totalorder %v2433_v63, %v2799_v2  ;;  %vm1216_vm1 = vcmp.eq.s32.totalorder %v2433_v63, %v2802_v3 }
 0x11d   : > { %1207 = vst [vmem:[#allocation3 + $0x510] sm:$0xff] %v1199_v7  ;;  %v1201_v16 = vpack.c.bf16 %v1193_v15, %v1192_v13  ;;  %v1231_v17 = vsel %vm1215_vm0, 1.0, %v2671_v6  ;;  %v1232_v18 = vsel %vm1216_vm1, 1.0, %v2671_v6  ;;  %vm1217_vm2 = vcmp.eq.s32.totalorder %v2433_v63, %v2807_v4  ;;  %v2435_v7 = vld [vmem:[#allocation8 + $0x15] ss:$0 sm:$0xff] }
 0x11e   : > { %1208 = vst [vmem:[#allocation3 + $0x570] sm:$0xff] %v1200_v14  ;;  %v1247_v20 = vpack.c.bf16 %v1232_v18, %v1231_v17  ;;  %vm1218_vm3 = vcmp.eq.s32.totalorder %v2433_v63, %v2810_v5  ;;  %v1233_v21 = vsel %vm1217_vm2, 1.0, %v2671_v6  ;;  %vm1219_vm4 = vcmp.eq.s32.totalorder %v2433_v63, %v2814_v8 }
 0x11f   : > { %1209 = vst [vmem:[#allocation3 + $0x5d0] sm:$0xff] %v1201_v16  ;;  %v1234_v22 = vsel %vm1218_vm3, 1.0, %v2671_v6  ;;  %vm1220_vm5 = vcmp.eq.s32.totalorder %v2433_v63, %v2817_v9  ;;  %v1235_v24 = vsel %vm1219_vm4, 1.0, %v2671_v6  ;;  %vm1221_vm6 = vcmp.eq.s32.totalorder %v2433_v63, %v2820_v10 }
 0x120   : > { %1255 = vst [vmem:[#allocation3 + $0x338] sm:$0xff] %v1247_v20  ;;  %v1248_v27 = vpack.c.bf16 %v1234_v22, %v1233_v21  ;;  %v1236_v30 = vsel %vm1220_vm5, 1.0, %v2671_v6  ;;  %vm1222_vm7 = vcmp.eq.s32.totalorder %v2433_v63, %v2829_v11  ;;  %v1237_v32 = vsel %vm1221_vm6, 1.0, %v2671_v6 }
 0x121   : > { %v1249_v33 = vpack.c.bf16 %v1236_v30, %v1235_v24  ;;  %v1238_v34 = vsel %vm1222_vm7, 1.0, %v2671_v6  ;;  %vm1223_vm8 = vcmp.eq.s32.totalorder %v2433_v63, %v2845_v19  ;;  %vm1224_vm9 = vcmp.eq.s32.totalorder %v2433_v63, %v2850_v23 }
 0x122   : > { %1256 = vst [vmem:[#allocation3 + $0x398] sm:$0xff] %v1248_v27  ;;  %v1250_v35 = vpack.c.bf16 %v1238_v34, %v1237_v32  ;;  %v1239_v36 = vsel %vm1223_vm8, 1.0, %v2671_v6  ;;  %v1240_v37 = vsel %vm1224_vm9, 1.0, %v2671_v6  ;;  %vm1225_vm10 = vcmp.eq.s32.totalorder %v2433_v63, %v2855_v25 }
 0x123   : > { %1257 = vst [vmem:[#allocation3 + $0x3f8] sm:$0xff] %v1249_v33  ;;  %v1251_v39 = vpack.c.bf16 %v1240_v37, %v1239_v36  ;;  %vm1226_vm11 = vcmp.eq.s32.totalorder %v2433_v63, %v2858_v26  ;;  %v1241_v40 = vsel %vm1225_vm10, 1.0, %v2671_v6  ;;  %vm1227_vm12 = vcmp.eq.s32.totalorder %v2433_v63, %v2864_v28 }
 0x124   : > { %1258 = vst [vmem:[#allocation3 + $0x458] sm:$0xff] %v1250_v35  ;;  %v1242_v42 = vsel %vm1226_vm11, 1.0, %v2671_v6  ;;  %vm1228_vm13 = vcmp.eq.s32.totalorder %v2433_v63, %v2867_v29  ;;  %v1243_v43 = vsel %vm1227_vm12, 1.0, %v2671_v6  ;;  %vm1229_vm14 = vcmp.eq.s32.totalorder %v2433_v63, %v2875_v31 }
 0x125   : > { %1259 = vst [vmem:[#allocation3 + $0x4b8] sm:$0xff] %v1251_v39  ;;  %v1252_v44 = vpack.c.bf16 %v1242_v42, %v1241_v40  ;;  %v1244_v45 = vsel %vm1228_vm13, 1.0, %v2671_v6  ;;  %vm1230_vm15 = vcmp.eq.s32.totalorder %v2433_v63, %v2887_v38  ;;  %v1245_v46 = vsel %vm1229_vm14, 1.0, %v2671_v6 }
 0x126   : > { %v1253_v47 = vpack.c.bf16 %v1244_v45, %v1243_v43  ;;  %v1246_v48 = vsel %vm1230_vm15, 1.0, %v2671_v6  ;;  %vm1268_vm0 = vcmp.eq.s32.totalorder %v2434_v41, %v2799_v2  ;;  %vm1269_vm1 = vcmp.eq.s32.totalorder %v2434_v41, %v2802_v3 }
 0x127   : > { %1260 = vst [vmem:[#allocation3 + $0x518] sm:$0xff] %v1252_v44  ;;  %v1254_v49 = vpack.c.bf16 %v1246_v48, %v1245_v46  ;;  %v1284_v50 = vsel %vm1268_vm0, 1.0, %v2671_v6  ;;  %v1285_v51 = vsel %vm1269_vm1, 1.0, %v2671_v6  ;;  %vm1270_vm2 = vcmp.eq.s32.totalorder %v2434_v41, %v2807_v4  ;;  %v2436_v44 = vld [vmem:[#allocation8 + $0x16] ss:$0 sm:$0xff] }
 0x128   : > { %1261 = vst [vmem:[#allocation3 + $0x578] sm:$0xff] %v1253_v47  ;;  %v1300_v52 = vpack.c.bf16 %v1285_v51, %v1284_v50  ;;  %vm1271_vm3 = vcmp.eq.s32.totalorder %v2434_v41, %v2810_v5  ;;  %v1286_v53 = vsel %vm1270_vm2, 1.0, %v2671_v6  ;;  %vm1272_vm4 = vcmp.eq.s32.totalorder %v2434_v41, %v2814_v8 }
 0x129   : > { %1262 = vst [vmem:[#allocation3 + $0x5d8] sm:$0xff] %v1254_v49  ;;  %v1287_v54 = vsel %vm1271_vm3, 1.0, %v2671_v6  ;;  %vm1273_vm5 = vcmp.eq.s32.totalorder %v2434_v41, %v2817_v9  ;;  %v1288_v55 = vsel %vm1272_vm4, 1.0, %v2671_v6  ;;  %vm1274_vm6 = vcmp.eq.s32.totalorder %v2434_v41, %v2820_v10 }
 0x12a   : > { %1308 = vst [vmem:[#allocation3 + $0x340] sm:$0xff] %v1300_v52  ;;  %v1301_v56 = vpack.c.bf16 %v1287_v54, %v1286_v53  ;;  %v1289_v57 = vsel %vm1273_vm5, 1.0, %v2671_v6  ;;  %vm1275_vm7 = vcmp.eq.s32.totalorder %v2434_v41, %v2829_v11  ;;  %v1290_v58 = vsel %vm1274_vm6, 1.0, %v2671_v6 }
 0x12b   : > { %v1302_v59 = vpack.c.bf16 %v1289_v57, %v1288_v55  ;;  %v1291_v60 = vsel %vm1275_vm7, 1.0, %v2671_v6  ;;  %vm1276_vm8 = vcmp.eq.s32.totalorder %v2434_v41, %v2845_v19  ;;  %vm1277_vm9 = vcmp.eq.s32.totalorder %v2434_v41, %v2850_v23 }
 0x12c   : > { %1309 = vst [vmem:[#allocation3 + $0x3a0] sm:$0xff] %v1301_v56  ;;  %v1303_v61 = vpack.c.bf16 %v1291_v60, %v1290_v58  ;;  %v1292_v62 = vsel %vm1276_vm8, 1.0, %v2671_v6  ;;  %v1293_v63 = vsel %vm1277_vm9, 1.0, %v2671_v6  ;;  %vm1278_vm10 = vcmp.eq.s32.totalorder %v2434_v41, %v2855_v25 }
 0x12d   : > { %1310 = vst [vmem:[#allocation3 + $0x400] sm:$0xff] %v1302_v59  ;;  %v1304_v0 = vpack.c.bf16 %v1293_v63, %v1292_v62  ;;  %vm1279_vm11 = vcmp.eq.s32.totalorder %v2434_v41, %v2858_v26  ;;  %v1294_v1 = vsel %vm1278_vm10, 1.0, %v2671_v6  ;;  %vm1280_vm12 = vcmp.eq.s32.totalorder %v2434_v41, %v2864_v28 }
 0x12e   : > { %1311 = vst [vmem:[#allocation3 + $0x460] sm:$0xff] %v1303_v61  ;;  %v1295_v12 = vsel %vm1279_vm11, 1.0, %v2671_v6  ;;  %vm1281_vm13 = vcmp.eq.s32.totalorder %v2434_v41, %v2867_v29  ;;  %v1296_v13 = vsel %vm1280_vm12, 1.0, %v2671_v6  ;;  %vm1282_vm14 = vcmp.eq.s32.totalorder %v2434_v41, %v2875_v31 }
 0x12f   : > { %1312 = vst [vmem:[#allocation3 + $0x4c0] sm:$0xff] %v1304_v0  ;;  %v1305_v14 = vpack.c.bf16 %v1295_v12, %v1294_v1  ;;  %v1297_v15 = vsel %vm1281_vm13, 1.0, %v2671_v6  ;;  %vm1283_vm15 = vcmp.eq.s32.totalorder %v2434_v41, %v2887_v38  ;;  %v1298_v16 = vsel %vm1282_vm14, 1.0, %v2671_v6 }
 0x130   : > { %v1306_v17 = vpack.c.bf16 %v1297_v15, %v1296_v13  ;;  %v1299_v18 = vsel %vm1283_vm15, 1.0, %v2671_v6  ;;  %vm1321_vm0 = vcmp.eq.s32.totalorder %v2435_v7, %v2799_v2  ;;  %vm1322_vm1 = vcmp.eq.s32.totalorder %v2435_v7, %v2802_v3 }
 0x131   : > { %1313 = vst [vmem:[#allocation3 + $0x520] sm:$0xff] %v1305_v14  ;;  %v1307_v20 = vpack.c.bf16 %v1299_v18, %v1298_v16  ;;  %v1337_v21 = vsel %vm1321_vm0, 1.0, %v2671_v6  ;;  %v1338_v22 = vsel %vm1322_vm1, 1.0, %v2671_v6  ;;  %vm1323_vm2 = vcmp.eq.s32.totalorder %v2435_v7, %v2807_v4  ;;  %v2437_v14 = vld [vmem:[#allocation8 + $0x17] ss:$0 sm:$0xff] }
 0x132   : > { %1314 = vst [vmem:[#allocation3 + $0x580] sm:$0xff] %v1306_v17  ;;  %v1353_v24 = vpack.c.bf16 %v1338_v22, %v1337_v21  ;;  %vm1324_vm3 = vcmp.eq.s32.totalorder %v2435_v7, %v2810_v5  ;;  %v1339_v27 = vsel %vm1323_vm2, 1.0, %v2671_v6  ;;  %vm1325_vm4 = vcmp.eq.s32.totalorder %v2435_v7, %v2814_v8 }
 0x133   : > { %1315 = vst [vmem:[#allocation3 + $0x5e0] sm:$0xff] %v1307_v20  ;;  %v1340_v30 = vsel %vm1324_vm3, 1.0, %v2671_v6  ;;  %vm1326_vm5 = vcmp.eq.s32.totalorder %v2435_v7, %v2817_v9  ;;  %v1341_v32 = vsel %vm1325_vm4, 1.0, %v2671_v6  ;;  %vm1327_vm6 = vcmp.eq.s32.totalorder %v2435_v7, %v2820_v10 }
 0x134   : > { %1361 = vst [vmem:[#allocation3 + $0x348] sm:$0xff] %v1353_v24  ;;  %v1354_v33 = vpack.c.bf16 %v1340_v30, %v1339_v27  ;;  %v1342_v34 = vsel %vm1326_vm5, 1.0, %v2671_v6  ;;  %vm1328_vm7 = vcmp.eq.s32.totalorder %v2435_v7, %v2829_v11  ;;  %v1343_v35 = vsel %vm1327_vm6, 1.0, %v2671_v6 }
 0x135   : > { %v1355_v36 = vpack.c.bf16 %v1342_v34, %v1341_v32  ;;  %v1344_v37 = vsel %vm1328_vm7, 1.0, %v2671_v6  ;;  %vm1329_vm8 = vcmp.eq.s32.totalorder %v2435_v7, %v2845_v19  ;;  %vm1330_vm9 = vcmp.eq.s32.totalorder %v2435_v7, %v2850_v23 }
 0x136   : > { %1362 = vst [vmem:[#allocation3 + $0x3a8] sm:$0xff] %v1354_v33  ;;  %v1356_v39 = vpack.c.bf16 %v1344_v37, %v1343_v35  ;;  %v1345_v40 = vsel %vm1329_vm8, 1.0, %v2671_v6  ;;  %v1346_v41 = vsel %vm1330_vm9, 1.0, %v2671_v6  ;;  %vm1331_vm10 = vcmp.eq.s32.totalorder %v2435_v7, %v2855_v25 }
 0x137   : > { %1363 = vst [vmem:[#allocation3 + $0x408] sm:$0xff] %v1355_v36  ;;  %v1357_v42 = vpack.c.bf16 %v1346_v41, %v1345_v40  ;;  %vm1332_vm11 = vcmp.eq.s32.totalorder %v2435_v7, %v2858_v26  ;;  %v1347_v43 = vsel %vm1331_vm10, 1.0, %v2671_v6  ;;  %vm1333_vm12 = vcmp.eq.s32.totalorder %v2435_v7, %v2864_v28 }
 0x138   : > { %1364 = vst [vmem:[#allocation3 + $0x468] sm:$0xff] %v1356_v39  ;;  %v1348_v45 = vsel %vm1332_vm11, 1.0, %v2671_v6  ;;  %vm1334_vm13 = vcmp.eq.s32.totalorder %v2435_v7, %v2867_v29  ;;  %v1349_v46 = vsel %vm1333_vm12, 1.0, %v2671_v6  ;;  %vm1335_vm14 = vcmp.eq.s32.totalorder %v2435_v7, %v2875_v31 }
 0x139   : > { %1365 = vst [vmem:[#allocation3 + $0x4c8] sm:$0xff] %v1357_v42  ;;  %v1358_v47 = vpack.c.bf16 %v1348_v45, %v1347_v43  ;;  %v1350_v48 = vsel %vm1334_vm13, 1.0, %v2671_v6  ;;  %vm1336_vm15 = vcmp.eq.s32.totalorder %v2435_v7, %v2887_v38  ;;  %v1351_v49 = vsel %vm1335_vm14, 1.0, %v2671_v6 }
 0x13a   : > { %v1359_v50 = vpack.c.bf16 %v1350_v48, %v1349_v46  ;;  %v1352_v51 = vsel %vm1336_vm15, 1.0, %v2671_v6  ;;  %vm1374_vm0 = vcmp.eq.s32.totalorder %v2436_v44, %v2799_v2  ;;  %vm1375_vm1 = vcmp.eq.s32.totalorder %v2436_v44, %v2802_v3 }
 0x13b   : > { %1366 = vst [vmem:[#allocation3 + $0x528] sm:$0xff] %v1358_v47  ;;  %v1360_v52 = vpack.c.bf16 %v1352_v51, %v1351_v49  ;;  %v1390_v53 = vsel %vm1374_vm0, 1.0, %v2671_v6  ;;  %v1391_v54 = vsel %vm1375_vm1, 1.0, %v2671_v6  ;;  %vm1376_vm2 = vcmp.eq.s32.totalorder %v2436_v44, %v2807_v4 }
 0x13c   : > { %1367 = vst [vmem:[#allocation3 + $0x588] sm:$0xff] %v1359_v50  ;;  %v1406_v55 = vpack.c.bf16 %v1391_v54, %v1390_v53  ;;  %vm1377_vm3 = vcmp.eq.s32.totalorder %v2436_v44, %v2810_v5  ;;  %v1392_v56 = vsel %vm1376_vm2, 1.0, %v2671_v6  ;;  %vm1378_vm4 = vcmp.eq.s32.totalorder %v2436_v44, %v2814_v8 }
 0x13d   : > { %1368 = vst [vmem:[#allocation3 + $0x5e8] sm:$0xff] %v1360_v52  ;;  %v1393_v57 = vsel %vm1377_vm3, 1.0, %v2671_v6  ;;  %vm1379_vm5 = vcmp.eq.s32.totalorder %v2436_v44, %v2817_v9  ;;  %v1394_v58 = vsel %vm1378_vm4, 1.0, %v2671_v6  ;;  %vm1380_vm6 = vcmp.eq.s32.totalorder %v2436_v44, %v2820_v10 }
 0x13e   : > { %1414 = vst [vmem:[#allocation3 + $0x350] sm:$0xff] %v1406_v55  ;;  %v1407_v59 = vpack.c.bf16 %v1393_v57, %v1392_v56  ;;  %v1395_v60 = vsel %vm1379_vm5, 1.0, %v2671_v6  ;;  %vm1381_vm7 = vcmp.eq.s32.totalorder %v2436_v44, %v2829_v11  ;;  %v1396_v61 = vsel %vm1380_vm6, 1.0, %v2671_v6 }
 0x13f   : > { %v1408_v62 = vpack.c.bf16 %v1395_v60, %v1394_v58  ;;  %v1397_v63 = vsel %vm1381_vm7, 1.0, %v2671_v6  ;;  %vm1382_vm8 = vcmp.eq.s32.totalorder %v2436_v44, %v2845_v19  ;;  %vm1383_vm9 = vcmp.eq.s32.totalorder %v2436_v44, %v2850_v23 }
 0x140   : > { %1415 = vst [vmem:[#allocation3 + $0x3b0] sm:$0xff] %v1407_v59  ;;  %v1409_v0 = vpack.c.bf16 %v1397_v63, %v1396_v61  ;;  %v1398_v1 = vsel %vm1382_vm8, 1.0, %v2671_v6  ;;  %v1399_v7 = vsel %vm1383_vm9, 1.0, %v2671_v6  ;;  %vm1384_vm10 = vcmp.eq.s32.totalorder %v2436_v44, %v2855_v25 }
 0x141   : > { %1416 = vst [vmem:[#allocation3 + $0x410] sm:$0xff] %v1408_v62  ;;  %v1410_v12 = vpack.c.bf16 %v1399_v7, %v1398_v1  ;;  %vm1385_vm11 = vcmp.eq.s32.totalorder %v2436_v44, %v2858_v26  ;;  %v1400_v13 = vsel %vm1384_vm10, 1.0, %v2671_v6  ;;  %vm1386_vm12 = vcmp.eq.s32.totalorder %v2436_v44, %v2864_v28 }
 0x142   : > { %1417 = vst [vmem:[#allocation3 + $0x470] sm:$0xff] %v1409_v0  ;;  %v1401_v15 = vsel %vm1385_vm11, 1.0, %v2671_v6  ;;  %vm1387_vm13 = vcmp.eq.s32.totalorder %v2436_v44, %v2867_v29  ;;  %v1402_v16 = vsel %vm1386_vm12, 1.0, %v2671_v6  ;;  %vm1388_vm14 = vcmp.eq.s32.totalorder %v2436_v44, %v2875_v31 }
 0x143   : > { %1418 = vst [vmem:[#allocation3 + $0x4d0] sm:$0xff] %v1410_v12  ;;  %v1411_v17 = vpack.c.bf16 %v1401_v15, %v1400_v13  ;;  %v1403_v18 = vsel %vm1387_vm13, 1.0, %v2671_v6  ;;  %vm1389_vm15 = vcmp.eq.s32.totalorder %v2436_v44, %v2887_v38  ;;  %v1404_v20 = vsel %vm1388_vm14, 1.0, %v2671_v6 }
 0x144   : > { %v1412_v21 = vpack.c.bf16 %v1403_v18, %v1402_v16  ;;  %v1405_v22 = vsel %vm1389_vm15, 1.0, %v2671_v6  ;;  %vm1427_vm0 = vcmp.eq.s32.totalorder %v2437_v14, %v2799_v2  ;;  %vm1428_vm1 = vcmp.eq.s32.totalorder %v2437_v14, %v2802_v3 }
 0x145   : > { %1419 = vst [vmem:[#allocation3 + $0x530] sm:$0xff] %v1411_v17  ;;  %v1413_v24 = vpack.c.bf16 %v1405_v22, %v1404_v20  ;;  %v1443_v27 = vsel %vm1427_vm0, 1.0, %v2671_v6  ;;  %v1444_v30 = vsel %vm1428_vm1, 1.0, %v2671_v6  ;;  %vm1429_vm2 = vcmp.eq.s32.totalorder %v2437_v14, %v2807_v4 }
 0x146   : > { %1420 = vst [vmem:[#allocation3 + $0x590] sm:$0xff] %v1412_v21  ;;  %v1459_v32 = vpack.c.bf16 %v1444_v30, %v1443_v27  ;;  %vm1430_vm3 = vcmp.eq.s32.totalorder %v2437_v14, %v2810_v5  ;;  %v1445_v33 = vsel %vm1429_vm2, 1.0, %v2671_v6  ;;  %vm1431_vm4 = vcmp.eq.s32.totalorder %v2437_v14, %v2814_v8 }
 0x147   : > { %1421 = vst [vmem:[#allocation3 + $0x5f0] sm:$0xff] %v1413_v24  ;;  %v1446_v2 = vsel %vm1430_vm3, 1.0, %v2671_v6  ;;  %vm1432_vm5 = vcmp.eq.s32.totalorder %v2437_v14, %v2817_v9  ;;  %v1447_v3 = vsel %vm1431_vm4, 1.0, %v2671_v6  ;;  %vm1433_vm6 = vcmp.eq.s32.totalorder %v2437_v14, %v2820_v10 }
 0x148   : > { %1467 = vst [vmem:[#allocation3 + $0x358] sm:$0xff] %v1459_v32  ;;  %v1460_v34 = vpack.c.bf16 %v1446_v2, %v1445_v33  ;;  %v1448_v4 = vsel %vm1432_vm5, 1.0, %v2671_v6  ;;  %vm1434_vm7 = vcmp.eq.s32.totalorder %v2437_v14, %v2829_v11  ;;  %v1449_v5 = vsel %vm1433_vm6, 1.0, %v2671_v6 }
 0x149   : > { %v1461_v35 = vpack.c.bf16 %v1448_v4, %v1447_v3  ;;  %v1450_v8 = vsel %vm1434_vm7, 1.0, %v2671_v6  ;;  %vm1435_vm8 = vcmp.eq.s32.totalorder %v2437_v14, %v2845_v19  ;;  %vm1436_vm9 = vcmp.eq.s32.totalorder %v2437_v14, %v2850_v23 }
 0x14a   : > { %1468 = vst [vmem:[#allocation3 + $0x3b8] sm:$0xff] %v1460_v34  ;;  %v1462_v9 = vpack.c.bf16 %v1450_v8, %v1449_v5  ;;  %v1451_v36 = vsel %vm1435_vm8, 1.0, %v2671_v6  ;;  %v1452_v10 = vsel %vm1436_vm9, 1.0, %v2671_v6  ;;  %vm1437_vm10 = vcmp.eq.s32.totalorder %v2437_v14, %v2855_v25 }
 0x14b   : > { %1469 = vst [vmem:[#allocation3 + $0x418] sm:$0xff] %v1461_v35  ;;  %v1463_v37 = vpack.c.bf16 %v1452_v10, %v1451_v36  ;;  %vm1438_vm11 = vcmp.eq.s32.totalorder %v2437_v14, %v2858_v26  ;;  %v1453_v11 = vsel %vm1437_vm10, 1.0, %v2671_v6  ;;  %vm1439_vm12 = vcmp.eq.s32.totalorder %v2437_v14, %v2864_v28 }
 0x14c   : > { %1470 = vst [vmem:[#allocation3 + $0x478] sm:$0xff] %v1462_v9  ;;  %v1454_v19 = vsel %vm1438_vm11, 1.0, %v2671_v6  ;;  %vm1440_vm13 = vcmp.eq.s32.totalorder %v2437_v14, %v2867_v29  ;;  %v1455_v23 = vsel %vm1439_vm12, 1.0, %v2671_v6  ;;  %vm1441_vm14 = vcmp.eq.s32.totalorder %v2437_v14, %v2875_v31 }
 0x14d   : > { %1471 = vst [vmem:[#allocation3 + $0x4d8] sm:$0xff] %v1463_v37  ;;  %v1464_v39 = vpack.c.bf16 %v1454_v19, %v1453_v11  ;;  %v1456_v25 = vsel %vm1440_vm13, 1.0, %v2671_v6  ;;  %vm1442_vm15 = vcmp.eq.s32.totalorder %v2437_v14, %v2887_v38  ;;  %v1457_v26 = vsel %vm1441_vm14, 1.0, %v2671_v6 }
 0x14e   : > { %v1465_v40 = vpack.c.bf16 %v1456_v25, %v1455_v23  ;;  %v1458_v28 = vsel %vm1442_vm15, 1.0, %v2671_v6 }
 0x14f   : > { %1472 = vst [vmem:[#allocation3 + $0x538] sm:$0xff] %v1464_v39  ;;  %v1466_v41 = vpack.c.bf16 %v1458_v28, %v1457_v26 }
 0x150   : > { %1473 = vst [vmem:[#allocation3 + $0x598] sm:$0xff] %v1465_v40 }
 0x151   : > { %1474 = vst [vmem:[#allocation3 + $0x5f8] sm:$0xff] %v1466_v41 }
 0x152 PF: > { %v1480_v29 = vld [vmem:[#allocation3 + $0x8] sm:$0xff]  ;;  %v1482_v42 = vld [vmem:[#allocation3 + $0x18] sm:$0xff]  ;;  %v1479_v43 = vld [vmem:[#allocation3] sm:$0xff]  ;;  %v2672_v48 = vmov 0   ;;  %s2260_s21 = sld [smem:[#allocation10]]  ;;  %s2438_s27 = sld [smem:[#allocation10 + $0x1]] }
 0x153   : > { %1575 = vmatprep.subr.bf16.mxu0 %v1480_v29  ;;  %1616 = vmatprep.subr.bf16.mxu1 %v1482_v42  ;;  %v1481_v31 = vld [vmem:[#allocation3 + $0x10] sm:$0xff]  ;;  %v1492_v44 = vld [vmem:[#allocation3 + $0x68] sm:$0xff]  ;;  %v1494_v45 = vld [vmem:[#allocation3 + $0x78] sm:$0xff]  ;;  %s2439_s22 = sld [smem:[#allocation10 + $0x80]]  ;;  %s2440_s28 = sld [smem:[#allocation10 + $0x81]] }
 0x154   : > { %1576 = vmatpush1.bf16.msra.mxu0 %v1479_v43  ;;  %1617 = vmatpush1.bf16.msra.mxu1 %v1481_v31  ;;  %v1491_v38 = vld [vmem:[#allocation3 + $0x60] sm:$0xff]  ;;  %v1493_v46 = vld [vmem:[#allocation3 + $0x70] sm:$0xff]  ;;  %v1504_v6 = vld [vmem:[#allocation3 + $0xc8] sm:$0xff]  ;;  %p2441_p9 = scmp.ne.s32.totalorder %s2700_s13, 2 }
 0x155   : > { %1577 = vmatprep.subr.bf16.mxu0 %v1492_v44  ;;  %1618 = vmatprep.subr.bf16.mxu1 %v1494_v45  ;;  %v1506_v47 = vld [vmem:[#allocation3 + $0xd8] sm:$0xff]  ;;  %v1503_v49 = vld [vmem:[#allocation3 + $0xc0] sm:$0xff]  ;;  %v1505_v50 = vld [vmem:[#allocation3 + $0xd0] sm:$0xff] }
 0x156   : > { %1607 = vmatprep.mubr.bf16.mxu0 %v2672_v48  ;;  %1648 = vmatprep.mubr.bf16.mxu1 %v2672_v48  ;;  %v1516_v51 = vld [vmem:[#allocation3 + $0x128] sm:$0xff]  ;;  %v1518_v52 = vld [vmem:[#allocation3 + $0x138] sm:$0xff]  ;;  %v1515_v53 = vld [vmem:[#allocation3 + $0x120] sm:$0xff] }
 0x157   : > { %v1517_v54 = vld [vmem:[#allocation3 + $0x130] sm:$0xff]  ;;  %v1528_v55 = vld [vmem:[#allocation3 + $0x188] sm:$0xff]  ;;  %v1530_v56 = vld [vmem:[#allocation3 + $0x198] sm:$0xff] }
 0x158   : > { %1578 = vmatpush1.bf16.msra.mxu0 %v1491_v38  ;;  %1619 = vmatpush1.bf16.msra.mxu1 %v1493_v46  ;;  %v1527_v57 = vld [vmem:[#allocation3 + $0x180] sm:$0xff]  ;;  %v1529_v58 = vld [vmem:[#allocation3 + $0x190] sm:$0xff]  ;;  %v1540_v59 = vld [vmem:[#allocation3 + $0x1e8] sm:$0xff] }
 0x159   : > { %1579 = vmatprep.subr.bf16.mxu0 %v1504_v6  ;;  %1620 = vmatprep.subr.bf16.mxu1 %v1506_v47  ;;  %v1542_v60 = vld [vmem:[#allocation3 + $0x1f8] sm:$0xff]  ;;  %v1539_v61 = vld [vmem:[#allocation3 + $0x1e0] sm:$0xff]  ;;  %v1541_v62 = vld [vmem:[#allocation3 + $0x1f0] sm:$0xff] }
 0x15a   : > { %v1552_v63 = vld [vmem:[#allocation3 + $0x248] sm:$0xff]  ;;  %v1554_v0 = vld [vmem:[#allocation3 + $0x258] sm:$0xff]  ;;  %v1551_v1 = vld [vmem:[#allocation3 + $0x240] sm:$0xff] }
 0x15b   : > { %v1553_v7 = vld [vmem:[#allocation3 + $0x250] sm:$0xff]  ;;  %v1564_v12 = vld [vmem:[#allocation3 + $0x2a8] sm:$0xff]  ;;  %v1566_v13 = vld [vmem:[#allocation3 + $0x2b8] sm:$0xff] }
 0x15c   : > { %1580 = vmatpush1.bf16.msra.mxu0 %v1503_v49  ;;  %1621 = vmatpush1.bf16.msra.mxu1 %v1505_v50  ;;  %v1477_v14 = vld [vmem:[#allocation2] sm:$0xff]  ;;  %v1563_v15 = vld [vmem:[#allocation3 + $0x2a0] sm:$0xff]  ;;  %v1565_v16 = vld [vmem:[#allocation3 + $0x2b0] sm:$0xff] }
 0x15d   : > { %1581 = vmatprep.subr.bf16.mxu0 %v1516_v51  ;;  %1622 = vmatprep.subr.bf16.mxu1 %v1518_v52  ;;  %v1484_v17 = vld [vmem:[#allocation3 + $0x28] sm:$0xff]  ;;  %v1486_v18 = vld [vmem:[#allocation3 + $0x38] sm:$0xff]  ;;  %v3668_v20 = vpack.c.bf16 %v1477_v14, %v1477_v14  ;;  %v1483_v21 = vld [vmem:[#allocation3 + $0x20] sm:$0xff] }
 0x15e   : > { %v1485_v22 = vld [vmem:[#allocation3 + $0x30] sm:$0xff]  ;;  %v1496_v24 = vld [vmem:[#allocation3 + $0x88] sm:$0xff]  ;;  %v1498_v27 = vld [vmem:[#allocation3 + $0x98] sm:$0xff] }
 0x15f   : > { %v1495_v30 = vld [vmem:[#allocation3 + $0x80] sm:$0xff]  ;;  %v1497_v32 = vld [vmem:[#allocation3 + $0x90] sm:$0xff]  ;;  %v1508_v33 = vld [vmem:[#allocation3 + $0xe8] sm:$0xff] }
 0x160   : > { %1582 = vmatpush1.bf16.msra.mxu0 %v1515_v53  ;;  %1623 = vmatpush1.bf16.msra.mxu1 %v1517_v54  ;;  %v1510_v2 = vld [vmem:[#allocation3 + $0xf8] sm:$0xff]  ;;  %v1507_v3 = vld [vmem:[#allocation3 + $0xe0] sm:$0xff]  ;;  %v1509_v34 = vld [vmem:[#allocation3 + $0xf0] sm:$0xff] }
 0x161   : > { %1583 = vmatprep.subr.bf16.mxu0 %v1528_v55  ;;  %1624 = vmatprep.subr.bf16.mxu1 %v1530_v56  ;;  %v1520_v4 = vld [vmem:[#allocation3 + $0x148] sm:$0xff]  ;;  %v1522_v5 = vld [vmem:[#allocation3 + $0x158] sm:$0xff]  ;;  %v1519_v35 = vld [vmem:[#allocation3 + $0x140] sm:$0xff] }
 0x162   : > { %v1521_v8 = vld [vmem:[#allocation3 + $0x150] sm:$0xff]  ;;  %v1532_v9 = vld [vmem:[#allocation3 + $0x1a8] sm:$0xff]  ;;  %v1534_v36 = vld [vmem:[#allocation3 + $0x1b8] sm:$0xff] }
 0x163   : > { %v1531_v10 = vld [vmem:[#allocation3 + $0x1a0] sm:$0xff]  ;;  %v1533_v37 = vld [vmem:[#allocation3 + $0x1b0] sm:$0xff]  ;;  %v1544_v11 = vld [vmem:[#allocation3 + $0x208] sm:$0xff] }
 0x164   : > { %1584 = vmatpush1.bf16.msra.mxu0 %v1527_v57  ;;  %1625 = vmatpush1.bf16.msra.mxu1 %v1529_v58  ;;  %v1546_v19 = vld [vmem:[#allocation3 + $0x218] sm:$0xff]  ;;  %v1543_v23 = vld [vmem:[#allocation3 + $0x200] sm:$0xff]  ;;  %v1545_v39 = vld [vmem:[#allocation3 + $0x210] sm:$0xff] }
 0x165   : > { %1585 = vmatprep.subr.bf16.mxu0 %v1540_v59  ;;  %1626 = vmatprep.subr.bf16.mxu1 %v1542_v60  ;;  %v1556_v25 = vld [vmem:[#allocation3 + $0x268] sm:$0xff]  ;;  %v1558_v26 = vld [vmem:[#allocation3 + $0x278] sm:$0xff]  ;;  %v1555_v40 = vld [vmem:[#allocation3 + $0x260] sm:$0xff] }
 0x166   : > { %v1557_v28 = vld [vmem:[#allocation3 + $0x270] sm:$0xff]  ;;  %v1568_v41 = vld [vmem:[#allocation3 + $0x2c8] sm:$0xff]  ;;  %v1570_v29 = vld [vmem:[#allocation3 + $0x2d8] sm:$0xff] }
 0x167   : > { %v1567_v42 = vld [vmem:[#allocation3 + $0x2c0] sm:$0xff]  ;;  %v1569_v43 = vld [vmem:[#allocation3 + $0x2d0] sm:$0xff]  ;;  %v1488_v31 = vld [vmem:[#allocation3 + $0x48] sm:$0xff] }
 0x168   : > { %1586 = vmatpush1.bf16.msra.mxu0 %v1539_v61  ;;  %1627 = vmatpush1.bf16.msra.mxu1 %v1541_v62  ;;  %v1490_v44 = vld [vmem:[#allocation3 + $0x58] sm:$0xff]  ;;  %v1487_v45 = vld [vmem:[#allocation3 + $0x40] sm:$0xff]  ;;  %v1489_v38 = vld [vmem:[#allocation3 + $0x50] sm:$0xff] }
 0x169   : > { %1587 = vmatprep.subr.bf16.mxu0 %v1552_v63  ;;  %1628 = vmatprep.subr.bf16.mxu1 %v1554_v0  ;;  %v1500_v46 = vld [vmem:[#allocation3 + $0xa8] sm:$0xff]  ;;  %v1502_v6 = vld [vmem:[#allocation3 + $0xb8] sm:$0xff]  ;;  %v1499_v47 = vld [vmem:[#allocation3 + $0xa0] sm:$0xff] }
 0x16a   : > { %v1501_v49 = vld [vmem:[#allocation3 + $0xb0] sm:$0xff]  ;;  %v1512_v50 = vld [vmem:[#allocation3 + $0x108] sm:$0xff]  ;;  %v1514_v51 = vld [vmem:[#allocation3 + $0x118] sm:$0xff] }
 0x16b   : > { %v1511_v52 = vld [vmem:[#allocation3 + $0x100] sm:$0xff]  ;;  %v1513_v53 = vld [vmem:[#allocation3 + $0x110] sm:$0xff]  ;;  %v1524_v54 = vld [vmem:[#allocation3 + $0x168] sm:$0xff] }
 0x16c   : > { %1588 = vmatpush1.bf16.msra.mxu0 %v1551_v1  ;;  %1629 = vmatpush1.bf16.msra.mxu1 %v1553_v7  ;;  %v1526_v55 = vld [vmem:[#allocation3 + $0x178] sm:$0xff]  ;;  %v1523_v56 = vld [vmem:[#allocation3 + $0x160] sm:$0xff]  ;;  %v1525_v57 = vld [vmem:[#allocation3 + $0x170] sm:$0xff] }
 0x16d   : > { %1589 = vmatprep.subr.bf16.mxu0 %v1564_v12  ;;  %1630 = vmatprep.subr.bf16.mxu1 %v1566_v13  ;;  %v1536_v58 = vld [vmem:[#allocation3 + $0x1c8] sm:$0xff]  ;;  %v1538_v59 = vld [vmem:[#allocation3 + $0x1d8] sm:$0xff]  ;;  %v1535_v60 = vld [vmem:[#allocation3 + $0x1c0] sm:$0xff] }
 0x16e   : > { %v1537_v61 = vld [vmem:[#allocation3 + $0x1d0] sm:$0xff]  ;;  %v1548_v62 = vld [vmem:[#allocation3 + $0x228] sm:$0xff]  ;;  %v1550_v63 = vld [vmem:[#allocation3 + $0x238] sm:$0xff] }
 0x16f   : > { %v1547_v0 = vld [vmem:[#allocation3 + $0x220] sm:$0xff]  ;;  %v1549_v1 = vld [vmem:[#allocation3 + $0x230] sm:$0xff]  ;;  %v1560_v7 = vld [vmem:[#allocation3 + $0x288] sm:$0xff] }
 0x170   : > { %1590 = vmatpush1.bf16.msra.mxu0 %v1563_v15  ;;  %1631 = vmatpush1.bf16.msra.mxu1 %v1565_v16  ;;  %v1562_v12 = vld [vmem:[#allocation3 + $0x298] sm:$0xff]  ;;  %v1559_v13 = vld [vmem:[#allocation3 + $0x280] sm:$0xff]  ;;  %v1561_v14 = vld [vmem:[#allocation3 + $0x290] sm:$0xff] }
 0x171   : > { %1657 = vmatprep.subr.bf16.mxu0 %v1484_v17  ;;  %1698 = vmatprep.subr.bf16.mxu1 %v1486_v18  ;;  %v1572_v15 = vld [vmem:[#allocation3 + $0x2e8] sm:$0xff]  ;;  %v1574_v16 = vld [vmem:[#allocation3 + $0x2f8] sm:$0xff]  ;;  %v1571_v17 = vld [vmem:[#allocation3 + $0x2e0] sm:$0xff] }
 0x172   : > { %v1573_v18 = vld [vmem:[#allocation3 + $0x2f0] sm:$0xff] }
 0x173   : > { %1608 = vmatmul.mubr.bf16.vlgmr.msra.gmra.mrb[0].mxu0 %v3668_v20  ;;  %1649 = vmatmul.mubr.bf16.vlgmr.msra.gmra.mrb[0].mxu1 %v3668_v20 }
 0x174   : > { %1658 = vmatpush1.bf16.msra.mxu0 %v1483_v21  ;;  %1699 = vmatpush1.bf16.msra.mxu1 %v1485_v22  ;;  %v1871_v21 = vld [vmem:[#allocation3 + $0x308] sm:$0xff]  ;;  %v1873_v22 = vld [vmem:[#allocation3 + $0x318] sm:$0xff] }
 0x175   : > { %1659 = vmatprep.subr.bf16.mxu0 %v1496_v24  ;;  %1700 = vmatprep.subr.bf16.mxu1 %v1498_v27  ;;  %v1870_v24 = vld [vmem:[#allocation3 + $0x300] sm:$0xff]  ;;  %v1872_v27 = vld [vmem:[#allocation3 + $0x310] sm:$0xff] }
 0x176   : > { %1689 = vmatprep.mubr.bf16.mxu0 %v2672_v48  ;;  %1730 = vmatprep.mubr.bf16.mxu1 %v2672_v48 }
 0x178   : > { %1660 = vmatpush1.bf16.msra.mxu0 %v1495_v30  ;;  %1701 = vmatpush1.bf16.msra.mxu1 %v1497_v32  ;;  %v1883_v30 = vld [vmem:[#allocation3 + $0x368] sm:$0xff]  ;;  %v1885_v32 = vld [vmem:[#allocation3 + $0x378] sm:$0xff] }
 0x179   : > { %1661 = vmatprep.subr.bf16.mxu0 %v1508_v33  ;;  %1702 = vmatprep.subr.bf16.mxu1 %v1510_v2  ;;  %v1882_v33 = vld [vmem:[#allocation3 + $0x360] sm:$0xff]  ;;  %v1884_v2 = vld [vmem:[#allocation3 + $0x370] sm:$0xff] }
 0x17c   : > { %1662 = vmatpush1.bf16.msra.mxu0 %v1507_v3  ;;  %1703 = vmatpush1.bf16.msra.mxu1 %v1509_v34  ;;  %v1895_v3 = vld [vmem:[#allocation3 + $0x3c8] sm:$0xff]  ;;  %v1897_v34 = vld [vmem:[#allocation3 + $0x3d8] sm:$0xff] }
 0x17d   : > { %1663 = vmatprep.subr.bf16.mxu0 %v1520_v4  ;;  %1704 = vmatprep.subr.bf16.mxu1 %v1522_v5  ;;  %v1894_v4 = vld [vmem:[#allocation3 + $0x3c0] sm:$0xff]  ;;  %v1896_v5 = vld [vmem:[#allocation3 + $0x3d0] sm:$0xff] }
 0x180   : > { %1664 = vmatpush1.bf16.msra.mxu0 %v1519_v35  ;;  %1705 = vmatpush1.bf16.msra.mxu1 %v1521_v8  ;;  %v1907_v35 = vld [vmem:[#allocation3 + $0x428] sm:$0xff]  ;;  %v1909_v8 = vld [vmem:[#allocation3 + $0x438] sm:$0xff] }
 0x181   : > { %1665 = vmatprep.subr.bf16.mxu0 %v1532_v9  ;;  %1706 = vmatprep.subr.bf16.mxu1 %v1534_v36  ;;  %v1906_v9 = vld [vmem:[#allocation3 + $0x420] sm:$0xff]  ;;  %v1908_v36 = vld [vmem:[#allocation3 + $0x430] sm:$0xff] }
 0x184   : > { %1666 = vmatpush1.bf16.msra.mxu0 %v1531_v10  ;;  %1707 = vmatpush1.bf16.msra.mxu1 %v1533_v37  ;;  %v1919_v10 = vld [vmem:[#allocation3 + $0x488] sm:$0xff]  ;;  %v1921_v37 = vld [vmem:[#allocation3 + $0x498] sm:$0xff] }
 0x185   : > { %1667 = vmatprep.subr.bf16.mxu0 %v1544_v11  ;;  %1708 = vmatprep.subr.bf16.mxu1 %v1546_v19  ;;  %v1918_v11 = vld [vmem:[#allocation3 + $0x480] sm:$0xff]  ;;  %v1920_v19 = vld [vmem:[#allocation3 + $0x490] sm:$0xff] }
 0x188   : > { %1668 = vmatpush1.bf16.msra.mxu0 %v1543_v23  ;;  %1709 = vmatpush1.bf16.msra.mxu1 %v1545_v39  ;;  %v1931_v23 = vld [vmem:[#allocation3 + $0x4e8] sm:$0xff]  ;;  %v1933_v39 = vld [vmem:[#allocation3 + $0x4f8] sm:$0xff] }
 0x189   : > { %1669 = vmatprep.subr.bf16.mxu0 %v1556_v25  ;;  %1710 = vmatprep.subr.bf16.mxu1 %v1558_v26  ;;  %v1930_v25 = vld [vmem:[#allocation3 + $0x4e0] sm:$0xff]  ;;  %v1932_v26 = vld [vmem:[#allocation3 + $0x4f0] sm:$0xff] }
 0x18c   : > { %1670 = vmatpush1.bf16.msra.mxu0 %v1555_v40  ;;  %1711 = vmatpush1.bf16.msra.mxu1 %v1557_v28  ;;  %v1943_v40 = vld [vmem:[#allocation3 + $0x548] sm:$0xff]  ;;  %v1945_v28 = vld [vmem:[#allocation3 + $0x558] sm:$0xff] }
 0x18d   : > { %1671 = vmatprep.subr.bf16.mxu0 %v1568_v41  ;;  %1712 = vmatprep.subr.bf16.mxu1 %v1570_v29  ;;  %v1942_v41 = vld [vmem:[#allocation3 + $0x540] sm:$0xff]  ;;  %v1944_v29 = vld [vmem:[#allocation3 + $0x550] sm:$0xff] }
 0x190   : > { %1672 = vmatpush1.bf16.msra.mxu0 %v1567_v42  ;;  %1713 = vmatpush1.bf16.msra.mxu1 %v1569_v43  ;;  %v1955_v42 = vld [vmem:[#allocation3 + $0x5a8] sm:$0xff]  ;;  %v1957_v43 = vld [vmem:[#allocation3 + $0x5b8] sm:$0xff] }
 0x191   : > { %1739 = vmatprep.subr.bf16.mxu0 %v1488_v31  ;;  %1780 = vmatprep.subr.bf16.mxu1 %v1490_v44  ;;  %v1954_v31 = vld [vmem:[#allocation3 + $0x5a0] sm:$0xff]  ;;  %v1956_v44 = vld [vmem:[#allocation3 + $0x5b0] sm:$0xff] }
 0x193   : > { %1690 = vmatmul.mubr.bf16.vlgmr.msra.gmra.mrb[4].mxu0 %v3668_v20  ;;  %1731 = vmatmul.mubr.bf16.vlgmr.msra.gmra.mrb[4].mxu1 %v3668_v20 }
 0x194   : > { %1740 = vmatpush1.bf16.msra.mxu0 %v1487_v45  ;;  %1781 = vmatpush1.bf16.msra.mxu1 %v1489_v38  ;;  %v1875_v45 = vld [vmem:[#allocation3 + $0x328] sm:$0xff]  ;;  %v1877_v38 = vld [vmem:[#allocation3 + $0x338] sm:$0xff] }
 0x195   : > { %1741 = vmatprep.subr.bf16.mxu0 %v1500_v46  ;;  %1782 = vmatprep.subr.bf16.mxu1 %v1502_v6  ;;  %v1874_v46 = vld [vmem:[#allocation3 + $0x320] sm:$0xff]  ;;  %v1876_v6 = vld [vmem:[#allocation3 + $0x330] sm:$0xff] }
 0x196   : > { %1771 = vmatprep.mubr.bf16.mxu0 %v2672_v48  ;;  %1812 = vmatprep.mubr.bf16.mxu1 %v2672_v48 }
 0x198   : > { %1742 = vmatpush1.bf16.msra.mxu0 %v1499_v47  ;;  %1783 = vmatpush1.bf16.msra.mxu1 %v1501_v49  ;;  %v1887_v47 = vld [vmem:[#allocation3 + $0x388] sm:$0xff]  ;;  %v1889_v49 = vld [vmem:[#allocation3 + $0x398] sm:$0xff] }
 0x199   : > { %1743 = vmatprep.subr.bf16.mxu0 %v1512_v50  ;;  %1784 = vmatprep.subr.bf16.mxu1 %v1514_v51  ;;  %v1886_v50 = vld [vmem:[#allocation3 + $0x380] sm:$0xff]  ;;  %v1888_v51 = vld [vmem:[#allocation3 + $0x390] sm:$0xff] }
 0x19c   : > { %1744 = vmatpush1.bf16.msra.mxu0 %v1511_v52  ;;  %1785 = vmatpush1.bf16.msra.mxu1 %v1513_v53  ;;  %v1899_v52 = vld [vmem:[#allocation3 + $0x3e8] sm:$0xff]  ;;  %v1901_v53 = vld [vmem:[#allocation3 + $0x3f8] sm:$0xff] }
 0x19d   : > { %1745 = vmatprep.subr.bf16.mxu0 %v1524_v54  ;;  %1786 = vmatprep.subr.bf16.mxu1 %v1526_v55  ;;  %v1898_v54 = vld [vmem:[#allocation3 + $0x3e0] sm:$0xff]  ;;  %v1900_v55 = vld [vmem:[#allocation3 + $0x3f0] sm:$0xff] }
 0x1a0   : > { %1746 = vmatpush1.bf16.msra.mxu0 %v1523_v56  ;;  %1787 = vmatpush1.bf16.msra.mxu1 %v1525_v57  ;;  %v1911_v56 = vld [vmem:[#allocation3 + $0x448] sm:$0xff]  ;;  %v1913_v57 = vld [vmem:[#allocation3 + $0x458] sm:$0xff] }
 0x1a1   : > { %1747 = vmatprep.subr.bf16.mxu0 %v1536_v58  ;;  %1788 = vmatprep.subr.bf16.mxu1 %v1538_v59  ;;  %v1910_v58 = vld [vmem:[#allocation3 + $0x440] sm:$0xff]  ;;  %v1912_v59 = vld [vmem:[#allocation3 + $0x450] sm:$0xff] }
 0x1a4   : > { %1748 = vmatpush1.bf16.msra.mxu0 %v1535_v60  ;;  %1789 = vmatpush1.bf16.msra.mxu1 %v1537_v61  ;;  %v1923_v60 = vld [vmem:[#allocation3 + $0x4a8] sm:$0xff]  ;;  %v1925_v61 = vld [vmem:[#allocation3 + $0x4b8] sm:$0xff] }
 0x1a5   : > { %1749 = vmatprep.subr.bf16.mxu0 %v1548_v62  ;;  %1790 = vmatprep.subr.bf16.mxu1 %v1550_v63  ;;  %v1922_v62 = vld [vmem:[#allocation3 + $0x4a0] sm:$0xff]  ;;  %v1924_v63 = vld [vmem:[#allocation3 + $0x4b0] sm:$0xff] }
 0x1a8   : > { %1750 = vmatpush1.bf16.msra.mxu0 %v1547_v0  ;;  %1791 = vmatpush1.bf16.msra.mxu1 %v1549_v1  ;;  %v1935_v0 = vld [vmem:[#allocation3 + $0x508] sm:$0xff]  ;;  %v1937_v1 = vld [vmem:[#allocation3 + $0x518] sm:$0xff] }
 0x1a9   : > { %1751 = vmatprep.subr.bf16.mxu0 %v1560_v7  ;;  %1792 = vmatprep.subr.bf16.mxu1 %v1562_v12  ;;  %v1934_v7 = vld [vmem:[#allocation3 + $0x500] sm:$0xff]  ;;  %v1936_v12 = vld [vmem:[#allocation3 + $0x510] sm:$0xff] }
 0x1ac   : > { %1752 = vmatpush1.bf16.msra.mxu0 %v1559_v13  ;;  %1793 = vmatpush1.bf16.msra.mxu1 %v1561_v14  ;;  %v1947_v13 = vld [vmem:[#allocation3 + $0x568] sm:$0xff]  ;;  %v1949_v14 = vld [vmem:[#allocation3 + $0x578] sm:$0xff] }
 0x1ad   : > { %1753 = vmatprep.subr.bf16.mxu0 %v1572_v15  ;;  %1794 = vmatprep.subr.bf16.mxu1 %v1574_v16  ;;  %v1946_v15 = vld [vmem:[#allocation3 + $0x560] sm:$0xff]  ;;  %v1948_v16 = vld [vmem:[#allocation3 + $0x570] sm:$0xff] }
 0x1b0   : > { %1754 = vmatpush1.bf16.msra.mxu0 %v1571_v17  ;;  %1795 = vmatpush1.bf16.msra.mxu1 %v1573_v18  ;;  %v1959_v17 = vld [vmem:[#allocation3 + $0x5c8] sm:$0xff]  ;;  %v1961_v18 = vld [vmem:[#allocation3 + $0x5d8] sm:$0xff] }
 0x1b1   : > { %1966 = vmatprep.subr.bf16.mxu0 %v1871_v21  ;;  %2007 = vmatprep.subr.bf16.mxu1 %v1873_v22  ;;  %v1958_v21 = vld [vmem:[#allocation3 + $0x5c0] sm:$0xff]  ;;  %v1960_v22 = vld [vmem:[#allocation3 + $0x5d0] sm:$0xff] }
 0x1b3   : > { %1772 = vmatmul.mubr.bf16.vlgmr.msra.gmra.mrb[8].mxu0 %v3668_v20  ;;  %1813 = vmatmul.mubr.bf16.vlgmr.msra.gmra.mrb[8].mxu1 %v3668_v20 }
 0x1b4   : > { %1967 = vmatpush1.bf16.msra.mxu0 %v1870_v24  ;;  %2008 = vmatpush1.bf16.msra.mxu1 %v1872_v27  ;;  %v1879_v24 = vld [vmem:[#allocation3 + $0x348] sm:$0xff]  ;;  %v1881_v27 = vld [vmem:[#allocation3 + $0x358] sm:$0xff] }
 0x1b5   : > { %1968 = vmatprep.subr.bf16.mxu0 %v1883_v30  ;;  %2009 = vmatprep.subr.bf16.mxu1 %v1885_v32  ;;  %v1878_v30 = vld [vmem:[#allocation3 + $0x340] sm:$0xff]  ;;  %v1880_v32 = vld [vmem:[#allocation3 + $0x350] sm:$0xff] }
 0x1b6   : > { %1998 = vmatprep.mubr.bf16.mxu0 %v2672_v48  ;;  %2039 = vmatprep.mubr.bf16.mxu1 %v2672_v48 }
 0x1b8   : > { %1969 = vmatpush1.bf16.msra.mxu0 %v1882_v33  ;;  %2010 = vmatpush1.bf16.msra.mxu1 %v1884_v2  ;;  %v1891_v33 = vld [vmem:[#allocation3 + $0x3a8] sm:$0xff]  ;;  %v1893_v2 = vld [vmem:[#allocation3 + $0x3b8] sm:$0xff] }
 0x1b9   : > { %1970 = vmatprep.subr.bf16.mxu0 %v1895_v3  ;;  %2011 = vmatprep.subr.bf16.mxu1 %v1897_v34  ;;  %v1890_v3 = vld [vmem:[#allocation3 + $0x3a0] sm:$0xff]  ;;  %v1892_v34 = vld [vmem:[#allocation3 + $0x3b0] sm:$0xff] }
 0x1bc   : > { %1971 = vmatpush1.bf16.msra.mxu0 %v1894_v4  ;;  %2012 = vmatpush1.bf16.msra.mxu1 %v1896_v5  ;;  %v1903_v4 = vld [vmem:[#allocation3 + $0x408] sm:$0xff]  ;;  %v1905_v5 = vld [vmem:[#allocation3 + $0x418] sm:$0xff] }
 0x1bd   : > { %1972 = vmatprep.subr.bf16.mxu0 %v1907_v35  ;;  %2013 = vmatprep.subr.bf16.mxu1 %v1909_v8  ;;  %v1902_v35 = vld [vmem:[#allocation3 + $0x400] sm:$0xff]  ;;  %v1904_v8 = vld [vmem:[#allocation3 + $0x410] sm:$0xff] }
 0x1c0   : > { %1973 = vmatpush1.bf16.msra.mxu0 %v1906_v9  ;;  %2014 = vmatpush1.bf16.msra.mxu1 %v1908_v36  ;;  %v1915_v9 = vld [vmem:[#allocation3 + $0x468] sm:$0xff]  ;;  %v1917_v36 = vld [vmem:[#allocation3 + $0x478] sm:$0xff] }
 0x1c1   : > { %1974 = vmatprep.subr.bf16.mxu0 %v1919_v10  ;;  %2015 = vmatprep.subr.bf16.mxu1 %v1921_v37  ;;  %v1914_v10 = vld [vmem:[#allocation3 + $0x460] sm:$0xff]  ;;  %v1916_v37 = vld [vmem:[#allocation3 + $0x470] sm:$0xff] }
 0x1c4   : > { %1975 = vmatpush1.bf16.msra.mxu0 %v1918_v11  ;;  %2016 = vmatpush1.bf16.msra.mxu1 %v1920_v19  ;;  %v1927_v11 = vld [vmem:[#allocation3 + $0x4c8] sm:$0xff]  ;;  %v1929_v19 = vld [vmem:[#allocation3 + $0x4d8] sm:$0xff] }
 0x1c5   : > { %1976 = vmatprep.subr.bf16.mxu0 %v1931_v23  ;;  %2017 = vmatprep.subr.bf16.mxu1 %v1933_v39  ;;  %v1928_v23 = vld [vmem:[#allocation3 + $0x4d0] sm:$0xff]  ;;  %v1939_v39 = vld [vmem:[#allocation3 + $0x528] sm:$0xff] }
 0x1c8   : > { %1977 = vmatpush1.bf16.msra.mxu0 %v1930_v25  ;;  %2018 = vmatpush1.bf16.msra.mxu1 %v1932_v26  ;;  %v1941_v25 = vld [vmem:[#allocation3 + $0x538] sm:$0xff]  ;;  %v1938_v26 = vld [vmem:[#allocation3 + $0x520] sm:$0xff] }
 0x1c9   : > { %1978 = vmatprep.subr.bf16.mxu0 %v1943_v40  ;;  %2019 = vmatprep.subr.bf16.mxu1 %v1945_v28  ;;  %v1940_v40 = vld [vmem:[#allocation3 + $0x530] sm:$0xff]  ;;  %v1951_v28 = vld [vmem:[#allocation3 + $0x588] sm:$0xff] }
 0x1cc   : > { %1979 = vmatpush1.bf16.msra.mxu0 %v1942_v41  ;;  %2020 = vmatpush1.bf16.msra.mxu1 %v1944_v29  ;;  %v1953_v41 = vld [vmem:[#allocation3 + $0x598] sm:$0xff]  ;;  %v1950_v29 = vld [vmem:[#allocation3 + $0x580] sm:$0xff] }
 0x1cd   : > { %1980 = vmatprep.subr.bf16.mxu0 %v1955_v42  ;;  %2021 = vmatprep.subr.bf16.mxu1 %v1957_v43  ;;  %v1952_v42 = vld [vmem:[#allocation3 + $0x590] sm:$0xff]  ;;  %v1963_v43 = vld [vmem:[#allocation3 + $0x5e8] sm:$0xff] }
 0x1d0   : > { %1981 = vmatpush1.bf16.msra.mxu0 %v1954_v31  ;;  %2022 = vmatpush1.bf16.msra.mxu1 %v1956_v44  ;;  %v1965_v31 = vld [vmem:[#allocation3 + $0x5f8] sm:$0xff]  ;;  %v1962_v44 = vld [vmem:[#allocation3 + $0x5e0] sm:$0xff] }
 0x1d1   : > { %2048 = vmatprep.subr.bf16.mxu0 %v1875_v45  ;;  %2089 = vmatprep.subr.bf16.mxu1 %v1877_v38  ;;  %v1964_v45 = vld [vmem:[#allocation3 + $0x5f0] sm:$0xff] }
 0x1d3   : > { %1999 = vmatmul.mubr.bf16.vlgmr.msra.gmra.mrb[12].mxu0 %v3668_v20  ;;  %2040 = vmatmul.mubr.bf16.vlgmr.msra.gmra.mrb[12].mxu1 %v3668_v20 }
 0x1d4   : > { %2049 = vmatpush1.bf16.msra.mxu0 %v1874_v46  ;;  %2090 = vmatpush1.bf16.msra.mxu1 %v1876_v6 }
 0x1d5   : > { %2050 = vmatprep.subr.bf16.mxu0 %v1887_v47  ;;  %2091 = vmatprep.subr.bf16.mxu1 %v1889_v49 }
 0x1d6   : > { %2080 = vmatprep.mubr.bf16.mxu0 %v2672_v48  ;;  %2121 = vmatprep.mubr.bf16.mxu1 %v2672_v48 }
 0x1d8   : > { %2051 = vmatpush1.bf16.msra.mxu0 %v1886_v50  ;;  %2092 = vmatpush1.bf16.msra.mxu1 %v1888_v51 }
 0x1d9   : > { %2052 = vmatprep.subr.bf16.mxu0 %v1899_v52  ;;  %2093 = vmatprep.subr.bf16.mxu1 %v1901_v53 }
 0x1dc   : > { %2053 = vmatpush1.bf16.msra.mxu0 %v1898_v54  ;;  %2094 = vmatpush1.bf16.msra.mxu1 %v1900_v55 }
 0x1dd   : > { %2054 = vmatprep.subr.bf16.mxu0 %v1911_v56  ;;  %2095 = vmatprep.subr.bf16.mxu1 %v1913_v57 }
 0x1e0   : > { %2055 = vmatpush1.bf16.msra.mxu0 %v1910_v58  ;;  %2096 = vmatpush1.bf16.msra.mxu1 %v1912_v59 }
 0x1e1   : > { %2056 = vmatprep.subr.bf16.mxu0 %v1923_v60  ;;  %2097 = vmatprep.subr.bf16.mxu1 %v1925_v61 }
 0x1e4   : > { %2057 = vmatpush1.bf16.msra.mxu0 %v1922_v62  ;;  %2098 = vmatpush1.bf16.msra.mxu1 %v1924_v63 }
 0x1e5   : > { %2058 = vmatprep.subr.bf16.mxu0 %v1935_v0  ;;  %2099 = vmatprep.subr.bf16.mxu1 %v1937_v1 }
 0x1e8   : > { %2059 = vmatpush1.bf16.msra.mxu0 %v1934_v7  ;;  %2100 = vmatpush1.bf16.msra.mxu1 %v1936_v12 }
 0x1e9   : > { %2060 = vmatprep.subr.bf16.mxu0 %v1947_v13  ;;  %2101 = vmatprep.subr.bf16.mxu1 %v1949_v14 }
 0x1ec   : > { %2061 = vmatpush1.bf16.msra.mxu0 %v1946_v15  ;;  %2102 = vmatpush1.bf16.msra.mxu1 %v1948_v16 }
 0x1ed   : > { %2062 = vmatprep.subr.bf16.mxu0 %v1959_v17  ;;  %2103 = vmatprep.subr.bf16.mxu1 %v1961_v18 }
 0x1f0   : > { %2063 = vmatpush1.bf16.msra.mxu0 %v1958_v21  ;;  %2104 = vmatpush1.bf16.msra.mxu1 %v1960_v22 }
 0x1f1   : > { %2130 = vmatprep.subr.bf16.mxu0 %v1879_v24  ;;  %2171 = vmatprep.subr.bf16.mxu1 %v1881_v27 }
 0x1f3   : > { %2081 = vmatmul.mubr.bf16.vlgmr.msra.gmra.mrb[16].mxu0 %v3668_v20  ;;  %2122 = vmatmul.mubr.bf16.vlgmr.msra.gmra.mrb[16].mxu1 %v3668_v20 }
 0x1f4   : > { %2131 = vmatpush1.bf16.msra.mxu0 %v1878_v30  ;;  %2172 = vmatpush1.bf16.msra.mxu1 %v1880_v32 }
 0x1f5   : > { %2132 = vmatprep.subr.bf16.mxu0 %v1891_v33  ;;  %2173 = vmatprep.subr.bf16.mxu1 %v1893_v2 }
 0x1f6   : > { %2162 = vmatprep.mubr.bf16.mxu0 %v2672_v48  ;;  %2203 = vmatprep.mubr.bf16.mxu1 %v2672_v48  ;;  %v1926_v48 = vld [vmem:[#allocation3 + $0x4c0] sm:$0xff] }
 0x1f8   : > { %2133 = vmatpush1.bf16.msra.mxu0 %v1890_v3  ;;  %2174 = vmatpush1.bf16.msra.mxu1 %v1892_v34 }
 0x1f9   : > { %2134 = vmatprep.subr.bf16.mxu0 %v1903_v4  ;;  %2175 = vmatprep.subr.bf16.mxu1 %v1905_v5 }
 0x1fc   : > { %2135 = vmatpush1.bf16.msra.mxu0 %v1902_v35  ;;  %2176 = vmatpush1.bf16.msra.mxu1 %v1904_v8 }
 0x1fd   : > { %2136 = vmatprep.subr.bf16.mxu0 %v1915_v9  ;;  %2177 = vmatprep.subr.bf16.mxu1 %v1917_v36 }
 0x200   : > { %2137 = vmatpush1.bf16.msra.mxu0 %v1914_v10  ;;  %2178 = vmatpush1.bf16.msra.mxu1 %v1916_v37 }
 0x201   : > { %2138 = vmatprep.subr.bf16.mxu0 %v1927_v11  ;;  %2179 = vmatprep.subr.bf16.mxu1 %v1929_v19 }
 0x204   : > { %2139 = vmatpush1.bf16.msra.mxu0 %v1926_v48  ;;  %2180 = vmatpush1.bf16.msra.mxu1 %v1928_v23 }
 0x205   : > { %2140 = vmatprep.subr.bf16.mxu0 %v1939_v39  ;;  %2181 = vmatprep.subr.bf16.mxu1 %v1941_v25 }
 0x208   : > { %2141 = vmatpush1.bf16.msra.mxu0 %v1938_v26  ;;  %2182 = vmatpush1.bf16.msra.mxu1 %v1940_v40 }
 0x209   : > { %2142 = vmatprep.subr.bf16.mxu0 %v1951_v28  ;;  %2183 = vmatprep.subr.bf16.mxu1 %v1953_v41 }
 0x20c   : > { %2143 = vmatpush1.bf16.msra.mxu0 %v1950_v29  ;;  %2184 = vmatpush1.bf16.msra.mxu1 %v1952_v42 }
 0x20d   : > { %2144 = vmatprep.subr.bf16.mxu0 %v1963_v43  ;;  %2185 = vmatprep.subr.bf16.mxu1 %v1965_v31 }
 0x210   : > { %2145 = vmatpush1.bf16.msra.mxu0 %v1962_v44  ;;  %2186 = vmatpush1.bf16.msra.mxu1 %v1964_v45 }
 0x213   : > { %2163 = vmatmul.mubr.bf16.vlgmr.msra.gmra.mrb[20].mxu0 %v3668_v20  ;;  %2204 = vmatmul.mubr.bf16.vlgmr.msra.gmra.mrb[20].mxu1 %v3668_v20 }
 0x246   : > { %v1609_v38 = vpop.f32.mrb[0].mxu0  ;;  %v1650_v46 = vpop.f32.mrb[0].mxu1 }
 0x247   : > { %v1611_v6 = vpop.f32.mrb[1].mxu0  ;;  %v1652_v47 = vpop.f32.mrb[1].mxu1 }
 0x248   : > { %v1821_v49 = vmul.f32 %v1611_v6, %v1609_v38  ;;  %v1613_v50 = vpop.f32.mrb[2].mxu0  ;;  %v1654_v51 = vpop.f32.mrb[2].mxu1 }
 0x249   : > { %v1614_v52 = vpop.f32.mrb[3].mxu0  ;;  %v1655_v53 = vpop.f32.mrb[3].mxu1 }
 0x24a   : > { %v1822_v54 = vmul.f32 %v1821_v49, %v1650_v46 }
 0x266   : > { %v1691_v55 = vpop.f32.mrb[4].mxu0  ;;  %v1732_v56 = vpop.f32.mrb[4].mxu1 }
 0x267   : > { %v1823_v57 = vmul.f32 %v1691_v55, %v1652_v47  ;;  %v1693_v58 = vpop.f32.mrb[5].mxu0  ;;  %v1734_v59 = vpop.f32.mrb[5].mxu1 }
 0x268   : > { %v1825_v60 = vmul.f32 %v1734_v59, %v1732_v56  ;;  %v1695_v61 = vpop.f32.mrb[6].mxu0  ;;  %v1736_v62 = vpop.f32.mrb[6].mxu1 }
 0x269   : > { %v1824_v63 = vmul.f32 %v1823_v57, %v1693_v58  ;;  %v1696_v20 = vpop.f32.mrb[7].mxu0  ;;  %v1737_v0 = vpop.f32.mrb[7].mxu1 }
 0x26b   : > { %v1829_v1 = vmax.f32 %v1822_v54, %v1824_v63 }
 0x286   : > { %v1773_v7 = vpop.f32.mrb[8].mxu0  ;;  %v1814_v12 = vpop.f32.mrb[8].mxu1 }
 0x287   : > { %v1826_v13 = vmul.f32 %v1825_v60, %v1773_v7  ;;  %v1775_v14 = vpop.f32.mrb[9].mxu0  ;;  %v1816_v15 = vpop.f32.mrb[9].mxu1 }
 0x288   : > { %v1827_v16 = vmul.f32 %v1814_v12, %v1775_v14  ;;  %v1777_v17 = vpop.f32.mrb[10].mxu0  ;;  %v1818_v18 = vpop.f32.mrb[10].mxu1 }
 0x289   : > { %v1830_v21 = vmax.f32 %v1829_v1, %v1826_v13  ;;  %v1778_v22 = vpop.f32.mrb[11].mxu0  ;;  %v1819_v24 = vpop.f32.mrb[11].mxu1 }
 0x28a   : > { %v1828_v27 = vmul.f32 %v1827_v16, %v1816_v15 }
 0x28c   : > { %v1831_v30 = vmax.f32 %v1830_v21, %v1828_v27 }
 0x28e   : > { %v1832_v32 = vsub.f32 %v1822_v54, %v1831_v30  ;;  %v1836_v33 = vsub.f32 %v1824_v63, %v1831_v30  ;;  %v1841_v2 = vsub.f32 %v1826_v13, %v1831_v30  ;;  %v1846_v3 = vsub.f32 %v1828_v27, %v1831_v30 }
 0x290   : > { %v1833_v34 = vmul.f32 100.0, %v1832_v32  ;;  %v1837_v4 = vmul.f32 100.0, %v1836_v33  ;;  %v1842_v5 = vmul.f32 100.0, %v1841_v2  ;;  %v1847_v35 = vmul.f32 100.0, %v1846_v3 }
 0x292   : > { %v1834_v8 = vmul.f32 1.442695, %v1833_v34  ;;  %v1838_v9 = vmul.f32 1.442695, %v1837_v4  ;;  %v1843_v36 = vmul.f32 1.442695, %v1842_v5 }
 0x293   : > { %v1848_v10 = vmul.f32 1.442695, %v1847_v35 }
 0x294   : > { %2504 = vpow2.f32 %v1834_v8 }
 0x295   : > { %2506 = vpow2.f32 %v1838_v9 }
 0x296   : > { %2508 = vpow2.f32 %v1843_v36 }
 0x297   : > { %2510 = vpow2.f32 %v1848_v10 }
 0x29e   : > { %v2505_v37 = vpop.eup %2504 }
 0x29f   : > { %v2507_v11 = vpop.eup %2506 }
 0x2a0   : > { %v1840_v19 = vadd.f32 %v2507_v11, %v2505_v37  ;;  %v2509_v48 = vpop.eup %2508 }
 0x2a1   : > { %v2511_v39 = vpop.eup %2510 }
 0x2a2   : > { %v1845_v23 = vadd.f32 %v2509_v48, %v1840_v19 }
 0x2a4   : > { %v1850_v25 = vadd.f32 %v2511_v39, %v1845_v23 }
 0x2a6   : > { %v2000_v26 = vpop.f32.mrb[12].mxu0  ;;  %v2041_v40 = vpop.f32.mrb[12].mxu1  ;;  %2512 = vlog2.f32 %v1850_v25 }
 0x2a7   : > { %v2002_v28 = vpop.f32.mrb[13].mxu0  ;;  %v2043_v41 = vpop.f32.mrb[13].mxu1 }
 0x2a8   : > { %v2212_v29 = vmul.f32 %v2002_v28, %v2000_v26  ;;  %v2004_v42 = vpop.f32.mrb[14].mxu0  ;;  %v2045_v43 = vpop.f32.mrb[14].mxu1 }
 0x2a9   : > { %v2005_v31 = vpop.f32.mrb[15].mxu0  ;;  %v2046_v44 = vpop.f32.mrb[15].mxu1 }
 0x2aa   : > { %v2213_v45 = vmul.f32 %v2212_v29, %v2041_v40 }
 0x2b0   : > { %v2513_v38 = vpop.eup %2512 }
 0x2b1   : > { %v1852_v46 = vmul.f32 0.6931472, %v2513_v38 }
 0x2b3   : > { %v1853_v6 = vmul.f32 0.01, %v1852_v46 }
 0x2b5   : > { %v3692_v47 = vadd.f32 %v1853_v6, %v1831_v30 }
 0x2b7   : > { %1855 = vmax.xlane.f32.xlu0 %v3692_v47 }
 0x2c6   : > { %v2082_v49 = vpop.f32.mrb[16].mxu0  ;;  %v2123_v50 = vpop.f32.mrb[16].mxu1 }
 0x2c7   : > { %v2214_v51 = vmul.f32 %v2082_v49, %v2043_v41  ;;  %v2084_v52 = vpop.f32.mrb[17].mxu0  ;;  %v2125_v53 = vpop.f32.mrb[17].mxu1 }
 0x2c8   : > { %v2216_v54 = vmul.f32 %v2125_v53, %v2123_v50  ;;  %v2086_v55 = vpop.f32.mrb[18].mxu0  ;;  %v2127_v56 = vpop.f32.mrb[18].mxu1 }
 0x2c9   : > { %v2215_v57 = vmul.f32 %v2214_v51, %v2084_v52  ;;  %v2087_v58 = vpop.f32.mrb[19].mxu0  ;;  %v2128_v59 = vpop.f32.mrb[19].mxu1  ;;  %v2268_v55 = vstv %s2439_s22 }
 0x2ca   : > { %v2271_v58 = vstv %s2440_s28 }
 0x2cb   : > { %v2220_v60 = vmax.f32 %v2213_v45, %v2215_v57 }
 0x2e6   : > { %v2164_v61 = vpop.f32.mrb[20].mxu0  ;;  %v2205_v62 = vpop.f32.mrb[20].mxu1 }
 0x2e7   : > { %v2217_v63 = vmul.f32 %v2216_v54, %v2164_v61  ;;  %v2166_v20 = vpop.f32.mrb[21].mxu0  ;;  %v2207_v0 = vpop.f32.mrb[21].mxu1  ;;  %v2261_v54 = vstv %s2260_s21 }
 0x2e8   : > { %v2218_v1 = vmul.f32 %v2205_v62, %v2166_v20  ;;  %v2168_v7 = vpop.f32.mrb[22].mxu0  ;;  %v2209_v12 = vpop.f32.mrb[22].mxu1 }
 0x2e9   : > { %v2221_v13 = vmax.f32 %v2220_v60, %v2217_v63  ;;  %v2169_v14 = vpop.f32.mrb[23].mxu0  ;;  %v2210_v15 = vpop.f32.mrb[23].mxu1 }
 0x2ea   : > { %v2219_v16 = vmul.f32 %v2218_v1, %v2207_v0 }
 0x2ec   : > { %v2222_v17 = vmax.f32 %v2221_v13, %v2219_v16 }
 0x2ee   : > { %v2223_v18 = vsub.f32 %v2213_v45, %v2222_v17  ;;  %v2227_v21 = vsub.f32 %v2215_v57, %v2222_v17  ;;  %v2232_v22 = vsub.f32 %v2217_v63, %v2222_v17  ;;  %v2237_v24 = vsub.f32 %v2219_v16, %v2222_v17 }
 0x2ef   : > { %v2264_v57 = vstv %s2438_s27 }
 0x2f0   : > { %v2224_v27 = vmul.f32 100.0, %v2223_v18  ;;  %v2228_v30 = vmul.f32 100.0, %v2227_v21  ;;  %v2233_v32 = vmul.f32 100.0, %v2232_v22  ;;  %v2238_v33 = vmul.f32 100.0, %v2237_v24 }
 0x2f2   : > { %v2225_v2 = vmul.f32 1.442695, %v2224_v27  ;;  %v2229_v3 = vmul.f32 1.442695, %v2228_v30  ;;  %v2234_v34 = vmul.f32 1.442695, %v2233_v32 }
 0x2f3   : > { %v2239_v4 = vmul.f32 1.442695, %v2238_v33 }
 0x2f4   : > { %2514 = vpow2.f32 %v2225_v2 }
 0x2f5   : > { %2516 = vpow2.f32 %v2229_v3 }
 0x2f6   : > { %2518 = vpow2.f32 %v2234_v34 }
 0x2f7   : > { %2520 = vpow2.f32 %v2239_v4 }
 0x2fe   : > { %v2515_v5 = vpop.eup %2514 }
 0x2ff   : > { %v2517_v35 = vpop.eup %2516 }
 0x300   : > { %v2231_v8 = vadd.f32 %v2517_v35, %v2515_v5  ;;  %v2519_v9 = vpop.eup %2518 }
 0x301   : > { %v2521_v10 = vpop.eup %2520 }
 0x302   : > { %v2236_v36 = vadd.f32 %v2519_v9, %v2231_v8 }
 0x304   : > { %v2241_v37 = vadd.f32 %v2521_v10, %v2236_v36  ;;  %v2544_v36 = vld [vmem:[#allocation2] sm:$0xff] }
 0x306   : > { %2522 = vlog2.f32 %v2241_v37 }
 0x310   : > { %v2523_v11 = vpop.eup %2522 }
 0x311   : > { %v2243_v19 = vmul.f32 0.6931472, %v2523_v11 }
 0x313   : > { %v2244_v48 = vmul.f32 0.01, %v2243_v19 }
 0x315   : > { %v2245_v23 = vadd.f32 %v2244_v48, %v2222_v17 }
 0x317   : > { %2246 = vmax.xlane.f32.xlu0 %v2245_v23 }
 0x344   : > { %v1856_v39 = vpop.xlane.xlu0 %1855 }
 0x345   : > { %v1857_v25 = vrot.slane %v1856_v39, 4 }
 0x347   : > { %v1858_v26 = vmax.f32 %v1856_v39, %v1857_v25 }
 0x349   : > { %v1859_v40 = vrot.slane %v1858_v26, 2 }
 0x34b   : > { %v1860_v28 = vmax.f32 %v1858_v26, %v1859_v40 }
 0x34d   : > { %v1861_v41 = vrot.slane %v1860_v28, 1 }
 0x34f   : > { %v1862_v29 = vmax.f32 %v1860_v28, %v1861_v41 }
 0x351   : > { %2446 = vpush %v1862_v29 }
 0x382   : > { %s2447_s16 = spop %2446 }
 0x383   : > { %v1864_v6 = vstv %s2447_s16 }
 0x384   : > { %2524 = vrcp.f32 %v1864_v6  ;;  %vm1865_vm0 = vcmp.gt.f32.partialorder %v1864_v6, 1.0 }
 0x38e   : > { %v2525_v50 = vpop.eup %2524 }
 0x38f   : > { %v1867_v51 = vsel %vm1865_vm0, %v2525_v50, 1.0 }
 0x390   : > { %v1868_v53 = vmul.f32 %v1867_v51, %v3692_v47 }
 0x392   : > { %v2262_v60 = vmul.f32 %v2261_v54, %v1868_v53  ;;  %v2269_v61 = vmul.f32 %v2268_v55, %v1868_v53 }
 0x3a4   : > { %v2247_v42 = vpop.xlane.xlu0 %2246 }
 0x3a5   : > { %v2248_v43 = vrot.slane %v2247_v42, 4 }
 0x3a7   : > { %v2249_v31 = vmax.f32 %v2247_v42, %v2248_v43 }
 0x3a9   : > { %v2250_v44 = vrot.slane %v2249_v31, 2 }
 0x3ab   : > { %v2251_v45 = vmax.f32 %v2249_v31, %v2250_v44 }
 0x3ad   : > { %v2252_v38 = vrot.slane %v2251_v45, 1 }
 0x3af   : > { %v2253_v46 = vmax.f32 %v2251_v45, %v2252_v38 }
 0x3b1   : > { %2448 = vpush %v2253_v46 }
 0x3e2   : > { %s2449_s18 = spop %2448 }
 0x3e3   : > { %v2255_v49 = vstv %s2449_s18 }
 0x3e4   : > { %2526 = vrcp.f32 %v2255_v49  ;;  %vm2256_vm1 = vcmp.gt.f32.partialorder %v2255_v49, 1.0 }
 0x3ee   : > { %v2527_v52 = vpop.eup %2526 }
 0x3ef   : > { %v2258_v56 = vsel %vm2256_vm1, %v2527_v52, 1.0 }
 0x3f0   : > { %v2259_v59 = vmul.f32 %v2258_v56, %v2245_v23 }
 0x3f2   : > { %v2265_v62 = vmul.f32 %v2264_v57, %v2259_v59  ;;  %v2272_v63 = vmul.f32 %v2271_v58, %v2259_v59 }
 0x3f4   : > { %v2266_v20 = vadd.f32 %v2265_v62, %v2262_v60  ;;  %v2273_v0 = vadd.f32 %v2272_v63, %v2269_v61 }
 0x3f6   : > { %v2274_v1 = vmax.f32 %v2266_v20, %v2273_v0 }
 0x3f8   : > { %v2275_v7 = vsub.f32 %v2266_v20, %v2274_v1  ;;  %v2279_v12 = vsub.f32 %v2273_v0, %v2274_v1 }
 0x3fa   : > { %v2276_v13 = vmul.f32 100.0, %v2275_v7  ;;  %v2280_v14 = vmul.f32 100.0, %v2279_v12 }
 0x3fc   : > { %v2277_v15 = vmul.f32 1.442695, %v2276_v13  ;;  %v2281_v47 = vmul.f32 1.442695, %v2280_v14 }
 0x3fe   : > { %2528 = vpow2.f32 %v2277_v15 }
 0x3ff   : > { %2530 = vpow2.f32 %v2281_v47 }
 0x408   : > { %v2529_v16 = vpop.eup %2528 }
 0x409   : > { %v2531_v17 = vpop.eup %2530 }
 0x40a   : > { %v2283_v18 = vadd.f32 %v2531_v17, %v2529_v16 }
 0x40c   : > { %2532 = vlog2.f32 %v2283_v18 }
 0x416   : > { %v2533_v21 = vpop.eup %2532 }
 0x417   : > { %v2285_v22 = vmul.f32 0.6931472, %v2533_v21 }
 0x419   : > { %v2286_v24 = vmul.f32 0.01, %v2285_v22 }
 0x41b   : > { %v2287_v27 = vadd.f32 %v2286_v24, %v2274_v1 }
 0x41d   : > { %2288 = vmax.xlane.f32.xlu1 %v2287_v27 }
 0x4aa   : > { %v2289_v30 = vpop.xlane.xlu1 %2288 }
 0x4ab   : > { %v2290_v32 = vrot.slane %v2289_v30, 4 }
 0x4ad   : > { %v2291_v33 = vmax.f32 %v2289_v30, %v2290_v32 }
 0x4af   : > { %v2292_v2 = vrot.slane %v2291_v33, 2 }
 0x4b1   : > { %v2293_v3 = vmax.f32 %v2291_v33, %v2292_v2 }
 0x4b3   : > { %v2294_v34 = vrot.slane %v2293_v3, 1 }
 0x4b5   : > { %v2295_v4 = vmax.f32 %v2293_v3, %v2294_v34 }
 0x4b7   : > { %2450 = vpush %v2295_v4 }
 0x4e8   : > { %s2451_s29 = spop %2450 }
 0x4e9   : > { %v2297_v5 = vstv %s2451_s29 }
 0x4ea   : > { %2534 = vrcp.f32 %v2297_v5  ;;  %vm2298_vm2 = vcmp.gt.f32.partialorder %v2297_v5, 1.0 }
 0x4f4   : > { %v2535_v35 = vpop.eup %2534 }
 0x4f5   : > { %v2300_v8 = vsel %vm2298_vm2, %v2535_v35, 1.0 }
 0x4f6   : > { %v2301_v9 = vmul.f32 %v2300_v8, %v2287_v27 }
 0x4f8   : > { %v2302_v10 = vmax.f32 %v2544_v36, %v2301_v9 }
 0x4fa   : > { %v2303_v37 = vsub.f32 %v2544_v36, %v2302_v10  ;;  %v2307_v11 = vsub.f32 %v2301_v9, %v2302_v10 }
 0x4fc   : > { %v2304_v19 = vmul.f32 100.0, %v2303_v37  ;;  %v2308_v48 = vmul.f32 100.0, %v2307_v11 }
 0x4fe   : > { %v2305_v23 = vmul.f32 1.442695, %v2304_v19  ;;  %v2309_v39 = vmul.f32 1.442695, %v2308_v48 }
 0x500   : > { %2536 = vpow2.f32 %v2305_v23 }
 0x501   : > { %2538 = vpow2.f32 %v2309_v39 }
 0x50a   : > { %v2537_v25 = vpop.eup %2536 }
 0x50b   : > { %v2539_v26 = vpop.eup %2538 }
 0x50c   : > { %v2311_v40 = vadd.f32 %v2539_v26, %v2537_v25 }
 0x50e   : > { %2540 = vlog2.f32 %v2311_v40 }
 0x518   : > { %v2541_v28 = vpop.eup %2540 }
 0x519   : > { %v2313_v41 = vmul.f32 0.6931472, %v2541_v28 }
 0x51b   : > { %v2314_v29 = vmul.f32 0.01, %v2313_v41 }
 0x51d   : > { %v2315_v42 = vadd.f32 %v2314_v29, %v2302_v10 }
 0x51f   : > { %2316 = vmax.xlane.f32.xlu1 %v2315_v42 }
 0x5ac   : > { %v2317_v43 = vpop.xlane.xlu1 %2316 }
 0x5ad   : > { %v2318_v31 = vrot.slane %v2317_v43, 4 }
 0x5af   : > { %v2319_v44 = vmax.f32 %v2317_v43, %v2318_v31 }
 0x5b1   : > { %v2320_v45 = vrot.slane %v2319_v44, 2 }
 0x5b3   : > { %v2321_v38 = vmax.f32 %v2319_v44, %v2320_v45 }
 0x5b5   : > { %v2322_v46 = vrot.slane %v2321_v38, 1 }
 0x5b7   : > { %v2323_v6 = vmax.f32 %v2321_v38, %v2322_v46 }
 0x5b9   : > { %2452 = vpush %v2323_v6 }
 0x5ea   : > { %s2453_s30 = spop %2452 }
 0x5eb   : > { %v2325_v49 = vstv %s2453_s30 }
 0x5ec   : > { %2542 = vrcp.f32 %v2325_v49  ;;  %vm2326_vm3 = vcmp.gt.f32.partialorder %v2325_v49, 1.0 }
 0x5f4   : > { %2334 = sbr.rel (%p2441_p9) target bundleno = 1531 (0x5fb), region = 52 }
 0x5f6   : > { %v2543_v50 = vpop.eup %2542 }
 0x5f7   : > { %v2328_v51 = vsel %vm2326_vm3, %v2543_v50, 1.0 }
 0x5f8   : > { %v2329_v52 = vmul.f32 %v2328_v51, %v2315_v42 }
 0x5fa   : > { %2330 = vst [vmem:[#allocation2] sm:$0xff] %v2329_v52  ;;  %2335 = vst [vmem:[#allocation11] sm:$0xff] (!%p2441_p9), %v2329_v52 }
 0x5fb PF: > { %p2486_p2 = scmp.eq.s32.totalorder %s2700_s13, 2  ;;  %s2673_s4 = smov [#allocation11]  }
 0x5fc   : > { %s2343_s5 = sshll.u32 %s2673_s4, 4  ;;  %s2344_s5 = int_to_ptr.vmem [resolvable:$true] %s2343_s5 }
 0x5fd   : > { %s2616_s6 = scalar_lea.vmem %s2344_s5, 128  ;;  %p2623_p11 = scmp.lt.s32.totalorder %s2344_s5, %s2344_s5 }
 0x5fe   : > { %p2617_p3 = scmp.ne.s32.totalorder %s2344_s5, %s2616_s6  ;;  %p2624_p12 = scmp.lt.s32.totalorder %s2616_s6, %s2616_s6 }
 0x600   : > { %p2618_p4 = pnand %p2617_p3, %p2486_p2  ;;  %p2625_p13 = por %p2624_p12, %p2623_p11 }
 0x602   : > { %p2619_p10 = pneg %p2618_p4 }
 0x604   : > { %p2626_p8 = pnand %p2625_p13, %p2619_p10 }
 0x606   : > { %2629 = shalt.err (!%p2626_p8)
}
 0x607   : > { %s2630_s9 = scalar_lea.hbm %s3726_s3, 128 }
 0x608   : > { %p2631_p0 = scmp.ne.s32.totalorder %s3726_s3, %s2630_s9  ;;  %p2636_p6 = scmp.lt.u32.totalorder %s2630_s9, %s3726_s3 }
 0x60a   : > { %p2632_p1 = pnand %p2631_p0, %p2486_p2 }
 0x60c   : > { %p2633_p5 = pneg %p2632_p1 }
 0x60e   : > { %p2638_p7 = pnand %p2636_p6, %p2633_p5 }
 0x610   : > { %2641 = shalt.err (!%p2638_p7)
}
 0x611   : > { %2467 = dma.vmem_to_hbm [thread:$0]  (%p2486_p2), %s2344_s5, 128, %s3726_s3, [#allocation6]  }
 0x612   : > { %2659 = dma.done.wait (%p2486_p2), [#allocation6], 128  }
 0x613   : > { %2661 = vsyncadd (%p2486_p2), [#allocation6], 4294967168 }
 0x614 PF: > { %s17_s12 = sadd.s32 1, %s2664_s12  }
 0x615   : > { %p14_p9 = scmp.ge.s32.totalorder %s17_s12, 5  }
 0x617   :  { %16 = sbr.rel (!%p14_p9) target bundleno = 4 (0x4), region = 81 }
 0x61e   :  { %2356 = vsyncpa [#allocation5], 1 }
 0x61f   :  { %2358 = vsyncpa [#allocation5 + $0x1], 1 }
 0x620   :  { %2359 = vsyncpa [#allocation9], 1 }
 0x621   :  { %2360 = vsyncpa [#allocation6], 1 }
 0x622   :  { %2362 = vsyncpa [#allocation6 + $0x1], 1 }
 0x623   :  { %2363 = vsyncpa [#allocation7], 1 }
 0x624   :  { %2365 = vsyncpa [#allocation7 + $0x1], 1 }

</bundles_post_ra>
